<compile_context>
chip_gen: v5e
topology: v5e:2x2
jax: 0.10.0
libtpu: 0.0.40
codegen_flags: <defaults>
</compile_context>

<pallas_src>
import functools

import jax
import jax.numpy as jnp
from jax import random
from jax.experimental import pallas as pl
from jax.experimental.pallas import tpu as pltpu


def _round_up(x, m):
    return ((x + m - 1) // m) * m


def _pad128(c):
    return _round_up(c, 128)


# ----------------------------------------------------------------------------
# Pallas kernel 1: grid-tiled matmul + (folded-BN) bias + optional ReLU
# ----------------------------------------------------------------------------
def _matmul_bias_kernel(a_ref, w_ref, b_ref, o_ref, acc_ref, *, apply_relu):
    @pl.when(pl.program_id(2) == 0)
    def _():
        acc_ref[...] = jnp.zeros_like(acc_ref)

    acc_ref[...] += jnp.dot(a_ref[...], w_ref[...],
                            preferred_element_type=jnp.float32)

    @pl.when(pl.program_id(2) == pl.num_programs(2) - 1)
    def _():
        out = acc_ref[...] + b_ref[...]
        if apply_relu:
            out = jnp.maximum(out, 0.0)
        o_ref[...] = out.astype(o_ref.dtype)


def _pick_divisor_tile(dim, candidates):
    for c in candidates:
        if dim % c == 0:
            return c
    return candidates[-1]


def _pick_m_tile(mp, candidates, cap):
    """Largest tile that exactly divides mp AND leaves >=2 blocks (megacore)."""
    for cand in candidates:
        if mp % cand == 0 and mp // cand >= 2:
            return cand
    return mp if mp <= cap else cap


def matmul_bias(a, w, bias, relu, out_dtype=jnp.bfloat16):
    """o = maybe_relu(a @ w + bias); bf16 operands, f32 accumulate, tiled grid.

    `w` is a pre-packed [K, Npad] bf16 matrix (BN folded), `bias` is [1, Npad]
    f32, K and Npad are multiples of 128, and the Npad-wide bf16 output is
    returned without slicing so the padded-channel layout persists.
    """
    M, K = a.shape
    K2, Npad = w.shape
    assert K == K2 and K % 128 == 0 and Npad % 128 == 0

    # Exact-divisor K/N tiles: no zero-padding waste on the reduction axis.
    TK = _pick_divisor_tile(K, (512, 384, 256, 128))
    TN = _pick_divisor_tile(Npad, (512, 384, 256, 128))

    # M tile: prefer >=2 blocks on the parallel axis (v7x has 2 TensorCores).
    Mp = _round_up(M, 8)
    TM = _pick_m_tile(Mp, (1024, 512, 384, 256, 128, 64), 1024)
    Mp = _round_up(Mp, TM)

    a = a.astype(jnp.bfloat16)
    if Mp != M:
        a = jnp.zeros((Mp, K), jnp.bfloat16).at[:M].set(a)

    # VMEM budget (double-buffered bf16 operands + f32 acc + bf16 out) stays
    # <~8 MiB even at TM=1024/TK=512/TN=512, i.e. safe under the 32 MiB scoped
    # limit on all of v5e/v6e/v7x.
    grid = (Mp // TM, Npad // TN, K // TK)
    kernel = functools.partial(_matmul_bias_kernel, apply_relu=relu)

    out = pl.pallas_call(
        kernel,
        out_shape=jax.ShapeDtypeStruct((Mp, Npad), out_dtype),
        grid_spec=pltpu.PrefetchScalarGridSpec(
            num_scalar_prefetch=0,
            grid=grid,
            in_specs=[
                pl.BlockSpec((TM, TK), lambda i, j, k: (i, k)),
                pl.BlockSpec((TK, TN), lambda i, j, k: (k, j)),
                pl.BlockSpec((1, TN), lambda i, j, k: (0, j)),
            ],
            out_specs=pl.BlockSpec((TM, TN), lambda i, j, k: (i, j)),
            scratch_shapes=[pltpu.VMEM((TM, TN), jnp.float32)],
        ),
        compiler_params=pltpu.CompilerParams(
            dimension_semantics=("parallel", "parallel", "arbitrary"),
            vmem_limit_bytes=32 * 1024 * 1024,
        ),
    )(a, w, bias)
    return out[:M] if Mp != M else out


# ----------------------------------------------------------------------------
# Pallas kernel 2: fused "concat + 1x1 conv" (ASPP projection)
#   Each branch is a separate input; the projection weight is sliced per-branch
#   inside the kernel, so the concatenated tensor never hits HBM.
# ----------------------------------------------------------------------------
def _fused_concat_matmul_kernel(*args, n_branches, kb, apply_relu):
    a_refs = args[:n_branches]
    w_ref = args[n_branches]
    b_ref = args[n_branches + 1]
    o_ref = args[n_branches + 2]

    acc = jnp.broadcast_to(b_ref[...], o_ref.shape).astype(jnp.float32)
    for t, a_ref in enumerate(a_refs):
        # 128-aligned static row slice of the packed projection weight.
        acc = acc + jnp.dot(a_ref[...], w_ref[t * kb:(t + 1) * kb, :],
                            preferred_element_type=jnp.float32)
    if apply_relu:
        acc = jnp.maximum(acc, 0.0)
    o_ref[...] = acc.astype(o_ref.dtype)


def fused_concat_matmul(branches, w, bias, relu, out_dtype=jnp.bfloat16):
    n = len(branches)
    M, KB = branches[0].shape
    Ktot, Npad = w.shape
    assert Ktot == n * KB and KB % 128 == 0 and Npad % 128 == 0

    Mp = _round_up(M, 8)
    TM = _pick_m_tile(Mp, (256, 128, 64), 256)   # small TM: no scratch acc here
    Mp = _round_up(Mp, TM)
    TN = _pick_divisor_tile(Npad, (256, 128))

    bs = []
    for b in branches:
        b = b.astype(jnp.bfloat16)
        if Mp != M:
            b = jnp.zeros((Mp, KB), jnp.bfloat16).at[:M].set(b)
        bs.append(b)

    kernel = functools.partial(_fused_concat_matmul_kernel,
                               n_branches=n, kb=KB, apply_relu=relu)
    in_specs = ([pl.BlockSpec((TM, KB), lambda i, j: (i, 0)) for _ in range(n)]
                + [pl.BlockSpec((Ktot, TN), lambda i, j: (0, j)),
                   pl.BlockSpec((1, TN), lambda i, j: (0, j))])

    out = pl.pallas_call(
        kernel,
        out_shape=jax.ShapeDtypeStruct((Mp, Npad), out_dtype),
        grid_spec=pltpu.PrefetchScalarGridSpec(
            num_scalar_prefetch=0,
            grid=(Mp // TM, Npad // TN),
            in_specs=in_specs,
            out_specs=pl.BlockSpec((TM, TN), lambda i, j: (i, j)),
        ),
        compiler_params=pltpu.CompilerParams(
            dimension_semantics=("parallel", "parallel"),
            vmem_limit_bytes=32 * 1024 * 1024,
        ),
    )(*bs, w, bias)
    return out[:M] if Mp != M else out


# ----------------------------------------------------------------------------
# Pallas kernel 3: global average pooling (bf16 in, f32 accumulate)
# ----------------------------------------------------------------------------
def _gap_kernel(x_ref, o_ref, acc_ref, *, inv_hw):
    @pl.when(pl.program_id(1) == 0)
    def _():
        acc_ref[...] = jnp.zeros_like(acc_ref)

    acc_ref[...] += jnp.sum(x_ref[...].astype(jnp.float32), axis=1)

    @pl.when(pl.program_id(1) == pl.num_programs(1) - 1)
    def _():
        o_ref[...] = acc_ref[...] * inv_hw


def global_avg_pool(x_nhwc):
    """AdaptiveAvgPool2d(1) -> [B, Cpad] f32; bf16 read, f32 accumulate."""
    B, H, W, C = x_nhwc.shape
    HW = H * W
    x3 = x_nhwc.astype(jnp.bfloat16).reshape(B, HW, C)

    if HW <= 2048:
        T, HWp = HW, HW                  # single tile: no wrapper-side padding
    else:
        T = 512
        HWp = _round_up(HW, T)
        x3 = jnp.pad(x3, ((0, 0), (0, HWp - HW), (0, 0)))   # bf16 tail pad only

    TC = 128 if C % 128 == 0 else C
    kernel = functools.partial(_gap_kernel, inv_hw=1.0 / HW)

    return pl.pallas_call(
        kernel,
        out_shape=jax.ShapeDtypeStruct((B, C), jnp.float32),
        grid_spec=pltpu.PrefetchScalarGridSpec(
            num_scalar_prefetch=0,
            grid=(C // TC, HWp // T),            # (parallel C blocks, HW reduce)
            in_specs=[pl.BlockSpec((B, T, TC), lambda c, i: (0, i, c))],
            out_specs=pl.BlockSpec((B, TC), lambda c, i: (0, c)),
            scratch_shapes=[pltpu.VMEM((B, TC), jnp.float32)],
        ),
        compiler_params=pltpu.CompilerParams(
            dimension_semantics=("parallel", "arbitrary"),
            vmem_limit_bytes=32 * 1024 * 1024,
        ),
    )(x3)


# ----------------------------------------------------------------------------
# JAX glue: im2col, conv wrapper, nearest resize, tiny 1x1 linear
# ----------------------------------------------------------------------------
def im2col(x, kh, kw, stride, dilation, padding):
    """x: [B, H, W, C] -> patches [B, Ho, Wo, kh*kw*C] (static slicing, bf16)."""
    B, H, W, C = x.shape
    xp = jnp.pad(x, ((0, 0), (padding, padding), (padding, padding), (0, 0)))
    Hp, Wp = H + 2 * padding, W + 2 * padding
    Ho = (Hp - dilation * (kh - 1) - 1) // stride + 1
    Wo = (Wp - dilation * (kw - 1) - 1) // stride + 1
    cols = []
    for i in range(kh):
        for j in range(kw):
            patch = xp[:, i * dilation: i * dilation + stride * (Ho - 1) + 1: stride,
                          j * dilation: j * dilation + stride * (Wo - 1) + 1: stride, :]
            cols.append(patch)
    return jnp.concatenate(cols, axis=-1), Ho, Wo


def conv2d(x, layer, k, *, stride=1, dilation=1, padding=0, relu=False,
           out_dtype=jnp.bfloat16):
    """Conv with pre-packed weight layer['w']:[K,Npad] bf16, layer['b']:[1,Npad]."""
    B = x.shape[0]
    if k == 1:
        Ho, Wo = x.shape[1], x.shape[2]
        a = x.reshape(B * Ho * Wo, x.shape[-1])
    else:
        patches, Ho, Wo = im2col(x, k, k, stride, dilation, padding)
        a = patches.reshape(B * Ho * Wo, patches.shape[-1])
    Kw = layer['w'].shape[0]
    if a.shape[1] != Kw:
        # Only the 3-channel stem conv needs lane padding of K (27 -> 128).
        a = jnp.zeros((a.shape[0], Kw), a.dtype).at[:, :a.shape[1]].set(a)
    out = matmul_bias(a, layer['w'], layer['b'], relu, out_dtype)
    return out.reshape(B, Ho, Wo, -1)


def linear_1x1(x2d, layer, relu=False):
    """Tiny [B, Cpad] x packed-1x1-conv weight in plain JAX (M=B rows)."""
    out = x2d.astype(jnp.float32) @ layer['w'].astype(jnp.float32) + layer['b'][0]
    if relu:
        out = jnp.maximum(out, 0.0)
    return out


def resize_nearest(x_nhwc, out_h, out_w):
    """F.interpolate(mode='nearest'): integer ratios use reshape+broadcast."""
    B, H, W, C = x_nhwc.shape
    if out_h % H == 0 and out_w % W == 0:
        fh, fw = out_h // H, out_w // W
        y = jnp.broadcast_to(x_nhwc[:, :, None, :, None, :], (B, H, fh, W, fw, C))
        return y.reshape(B, out_h, out_w, C)
    ridx = (jnp.arange(out_h) * H) // out_h
    cidx = (jnp.arange(out_w) * W) // out_w
    return x_nhwc[:, ridx][:, :, cidx]


# ----------------------------------------------------------------------------
# Deterministic parameter construction: BN folded, weights packed [K, Npad] bf16
# ----------------------------------------------------------------------------
def _conv_w(key, cout, cin, k):
    return 0.05 * random.normal(key, (cout, cin, k, k), jnp.float32)


def _bn_fold(key, c, eps=1e-5):
    k1, k2, k3, k4 = random.split(key, 4)
    gamma = 1.0 + 0.1 * random.normal(k1, (c,), jnp.float32)
    beta = 0.1 * random.normal(k2, (c,), jnp.float32)
    mean = 0.1 * random.normal(k3, (c,), jnp.float32)
    var = jnp.abs(1.0 + 0.1 * random.normal(k4, (c,), jnp.float32))
    scale = gamma / jnp.sqrt(var + eps)
    bias = beta - mean * scale
    return scale, bias


def _pack_conv_weight(w_oihw, in_groups, scale=None):
    """[Cout,Cin,kh,kw] -> [round_up(kh*kw*sum(layout),128), round_up(Cout,128)] bf16.

    in_groups: list of (c_real, c_layout) describing the padded-channel layout
    of the input the conv will see (concatenated in order).  BN scale is folded
    into the output channels.
    """
    cout, cin, kh, kw = w_oihw.shape
    assert sum(g[0] for g in in_groups) == cin
    npad = _pad128(cout)
    w = jnp.transpose(w_oihw, (2, 3, 1, 0))                 # [kh, kw, cin, cout]
    if scale is not None:
        w = w * scale.reshape(1, 1, 1, cout)
    cin_layout = sum(g[1] for g in in_groups)
    wf = jnp.zeros((kh, kw, cin_layout, npad), jnp.float32)
    src = dst = 0
    for c_real, c_lay in in_groups:
        wf = wf.at[:, :, dst:dst + c_real, :cout].set(w[:, :, src:src + c_real, :])
        src += c_real
        dst += c_lay
    K = kh * kw * cin_layout
    Kpad = _round_up(K, 128)
    out = jnp.zeros((Kpad, npad), jnp.float32).at[:K, :].set(wf.reshape(K, npad))
    return out.astype(jnp.bfloat16)


def _pack_bias(b, cout):
    npad = _pad128(cout)
    return jnp.zeros((1, npad), jnp.float32).at[0, :cout].set(b.astype(jnp.float32))


# Scaled-down channel schedule (stand-in for resnet's [64, 256, 512, 1024, 2048]).
IN_CHANNELS = [8, 16, 32, 64, 128]
BACKBONE_STRIDES = (2, 2, 2, 2, 1)   # static Python ints (NOT in params)
CLS_CLASSES = 20
SEG_CLASSES = 21
FEATURE_SIZE = 32          # ASPP / decoder feature width (scaled down from 256)
LOW_FEATURE = 16           # decoder low-level reduction (scaled down from 48)
ASPP_RATES = (6, 12, 18)   # output_stride=16


def init_params(key):
    ks = iter(random.split(key, 64))
    p = {}

    # --- backbone stand-in: 5 conv+BN+ReLU stages producing C1..C5 ---
    chans = [3] + IN_CHANNELS
    layouts = [3] + [_pad128(c) for c in IN_CHANNELS]
    bb = []
    for i in range(5):
        w = _conv_w(next(ks), chans[i + 1], chans[i], 3)
        s, b = _bn_fold(next(ks), chans[i + 1])
        bb.append(dict(w=_pack_conv_weight(w, [(chans[i], layouts[i])], s),
                       b=_pack_bias(b, chans[i + 1])))
    p['backbone'] = bb

    c5, c5p = IN_CHANNELS[-1], _pad128(IN_CHANNELS[-1])

    # --- classifier: Conv2d(in_channels[-1], cls_classes, 1, bias=False) ---
    wc = _conv_w(next(ks), CLS_CLASSES, c5, 1)
    p['classifier'] = dict(w=_pack_conv_weight(wc, [(c5, c5p)]),
                           b=_pack_bias(jnp.zeros((CLS_CLASSES,), jnp.float32),
                                        CLS_CLASSES))

    # --- ASPP ---
    fpad = _pad128(FEATURE_SIZE)
    aspp = {}
    w = _conv_w(next(ks), FEATURE_SIZE, c5, 1)
    s, b = _bn_fold(next(ks), FEATURE_SIZE)
    aspp['b0'] = dict(w=_pack_conv_weight(w, [(c5, c5p)], s),
                      b=_pack_bias(b, FEATURE_SIZE))
    for r in ASPP_RATES:
        w = _conv_w(next(ks), FEATURE_SIZE, c5, 3)
        s, b = _bn_fold(next(ks), FEATURE_SIZE)
        aspp[f'r{r}'] = dict(w=_pack_conv_weight(w, [(c5, c5p)], s),
                             b=_pack_bias(b, FEATURE_SIZE))
    w = _conv_w(next(ks), FEATURE_SIZE, c5, 1)
    s, b = _bn_fold(next(ks), FEATURE_SIZE)
    aspp['pool'] = dict(w=_pack_conv_weight(w, [(c5, c5p)], s),
                        b=_pack_bias(b, FEATURE_SIZE))
    # projection over the 5 concatenated (padded) branches
    w = _conv_w(next(ks), FEATURE_SIZE, 5 * FEATURE_SIZE, 1)
    s, b = _bn_fold(next(ks), FEATURE_SIZE)
    aspp['proj'] = dict(w=_pack_conv_weight(w, [(FEATURE_SIZE, fpad)] * 5, s),
                        b=_pack_bias(b, FEATURE_SIZE))
    p['aspp'] = aspp

    # --- Decoder ---
    c2, c2p = IN_CHANNELS[1], _pad128(IN_CHANNELS[1])
    lpad = _pad128(LOW_FEATURE)
    dec = {}
    w = _conv_w(next(ks), LOW_FEATURE, c2, 1)
    s, b = _bn_fold(next(ks), LOW_FEATURE)
    dec['low'] = dict(w=_pack_conv_weight(w, [(c2, c2p)], s),
                      b=_pack_bias(b, LOW_FEATURE))
    w = _conv_w(next(ks), FEATURE_SIZE, FEATURE_SIZE + LOW_FEATURE, 3)
    s, b = _bn_fold(next(ks), FEATURE_SIZE)
    dec['c1'] = dict(w=_pack_conv_weight(w, [(FEATURE_SIZE, fpad),
                                             (LOW_FEATURE, lpad)], s),
                     b=_pack_bias(b, FEATURE_SIZE))
    w = _conv_w(next(ks), FEATURE_SIZE, FEATURE_SIZE, 3)
    s, b = _bn_fold(next(ks), FEATURE_SIZE)
    dec['c2'] = dict(w=_pack_conv_weight(w, [(FEATURE_SIZE, fpad)], s),
                     b=_pack_bias(b, FEATURE_SIZE))
    w = _conv_w(next(ks), SEG_CLASSES, FEATURE_SIZE, 1)
    cls_b = 0.05 * random.normal(next(ks), (SEG_CLASSES,), jnp.float32)
    dec['cls'] = dict(w=_pack_conv_weight(w, [(FEATURE_SIZE, fpad)]),
                      b=_pack_bias(cls_b, SEG_CLASSES))
    p['decoder'] = dec
    return p


# ----------------------------------------------------------------------------
# Forward pass (mirrors Modified_DeepLabv3_Plus.forward, eval mode)
# ----------------------------------------------------------------------------
def backbone_forward(params, x):
    feats = []
    for st, stride in zip(params['backbone'], BACKBONE_STRIDES):
        x = conv2d(x, st, 3, stride=stride, padding=1, relu=True)
        feats.append(x)
    return tuple(feats)  # C1..C5 (padded-channel bf16)


def aspp_forward(ap, c5):
    B, H, W, _ = c5.shape
    M = B * H * W
    branches = [conv2d(c5, ap['b0'], 1, relu=True).reshape(M, -1)]
    for r in ASPP_RATES:
        branches.append(conv2d(c5, ap[f'r{r}'], 3, dilation=r, padding=r,
                               relu=True).reshape(M, -1))
    # image-pool branch: GAP (Pallas) -> 1x1 conv (tiny, plain JAX) -> upsample
    pooled = global_avg_pool(c5)                                   # [B, Cpad]
    pooled = linear_1x1(pooled, ap['pool'], relu=True)             # [B, Fpad]
    pooled = jnp.broadcast_to(pooled[:, None, :], (B, H * W, pooled.shape[-1]))
    branches.append(pooled.reshape(M, -1).astype(jnp.bfloat16))
    # concat + 1x1 projection fused: branches never concatenated in HBM
    out = fused_concat_matmul(branches, ap['proj']['w'], ap['proj']['b'],
                              relu=True)
    # TODO(synk): training-time Dropout in ASPP is a no-op in eval mode; skipped.
    return out.reshape(B, H, W, -1)


def decoder_forward(dp, x, c2):
    low = conv2d(c2, dp['low'], 1, relu=True)
    _, Hl, Wl, _ = low.shape
    # TODO(synk): reference decoder uses bilinear(align_corners) upsampling here.
    x = resize_nearest(x, Hl, Wl)
    cat = jnp.concatenate([x, low], axis=-1)      # both already lane-padded bf16
    y = conv2d(cat, dp['c1'], 3, padding=1, relu=True)
    d2 = conv2d(y, dp['c2'], 3, padding=1, relu=True)
    seg = conv2d(d2, dp['cls'], 1, relu=False, out_dtype=jnp.float32)
    return seg, d2


def modified_deeplabv3_plus_forward(params, inputs_nchw, with_cam=True,
                                    with_scm=False, with_segment=True,
                                    same=True):
    """inputs_nchw: [B, 3, H, W] (PyTorch convention). Returns output_dict."""
    x = jnp.transpose(inputs_nchw, (0, 2, 3, 1)).astype(jnp.bfloat16)  # -> NHWC
    H_in, W_in = x.shape[1], x.shape[2]

    C1, C2, C3, C4, C5 = backbone_forward(params, x)
    output_dict = {}

    # cls_logits = GAP(1x1conv(C5)) == 1x1conv(GAP(C5))   (linearity, bias=0)
    pooled_c5 = global_avg_pool(C5)                                   # Pallas GAP
    cls_logits = linear_1x1(pooled_c5, params['classifier'])[:, :CLS_CLASSES]
    output_dict['cls_logits'] = cls_logits

    if with_cam:
        features = conv2d(C5, params['classifier'], 1, out_dtype=jnp.float32)
        features = features[..., :CLS_CLASSES]
        output_dict['features'] = jnp.transpose(features, (0, 3, 1, 2))

    if with_scm:
        fd = {}
        for name, f, c in (('C1', C1, IN_CHANNELS[0]), ('C2', C2, IN_CHANNELS[1]),
                           ('C3', C3, IN_CHANNELS[2]), ('C4', C4, IN_CHANNELS[3]),
                           ('C5', C5, IN_CHANNELS[4])):
            fd[name] = jnp.transpose(f[..., :c].astype(jnp.float32), (0, 3, 1, 2))
        output_dict['f_dict'] = fd

    if with_segment:
        d1 = aspp_forward(params['aspp'], C5)
        seg, d2 = decoder_forward(params['decoder'], d1, C2)
        if with_scm:
            output_dict['f_dict']['D1'] = jnp.transpose(
                d1[..., :FEATURE_SIZE].astype(jnp.float32), (0, 3, 1, 2))
            output_dict['f_dict']['D2'] = jnp.transpose(
                d2[..., :FEATURE_SIZE].astype(jnp.float32), (0, 3, 1, 2))
        seg = seg[..., :SEG_CLASSES]
        if same:
            seg = resize_nearest(seg, H_in, W_in)      # nearest (module default)
        output_dict['seg_logits'] = jnp.transpose(seg, (0, 3, 1, 2))
    return output_dict


# ----------------------------------------------------------------------------
if __name__ == "__main__":
    key = jax.random.PRNGKey(0)
    k_param, k_x = random.split(key)
    params = init_params(k_param)

    # Small input consistent with the module: NCHW, 3-channel image, 32x32.
    x = random.normal(k_x, (2, 3, 32, 32), jnp.float32)

    fwd = jax.jit(functools.partial(modified_deeplabv3_plus_forward,
                                    with_cam=True, with_segment=True))
    out = fwd(params, x)
    jax.block_until_ready(out)

    assert out['cls_logits'].shape == (2, CLS_CLASSES)
    assert out['features'].shape == (2, CLS_CLASSES, 2, 2)
    assert out['seg_logits'].shape == (2, SEG_CLASSES, 32, 32)
    print("KERNEL_OK")
</pallas_src>

<mosaic_0001>
module attributes {stable_mosaic.version = 11 : i64} {
  func.func @_matmul_bias_kernel(%arg0: i32, %arg1: i32, %arg2: i32, %arg3: memref<256x128xbf16, #tpu.memory_space<vmem>>, %arg4: memref<128x128xbf16, #tpu.memory_space<vmem>>, %arg5: memref<1x128xf32, #tpu.memory_space<vmem>>, %arg6: memref<256x128xbf16, #tpu.memory_space<vmem>>, %arg7: memref<256x128xf32, #tpu.memory_space<vmem>>) attributes {dimension_semantics = [#tpu.dimension_semantics<parallel>, #tpu.dimension_semantics<parallel>, #tpu.dimension_semantics<arbitrary>], iteration_bounds = array<i64: 2, 1, 1>, scalar_prefetch = 0 : i64, scratch_operands = 1 : i64, tpu.core_type = #tpu.core_type<tc>, window_params = [{transform_indices = @transform_0, window_bounds = array<i64: 256, 128>}, {transform_indices = @transform_1, window_bounds = array<i64: 128, 128>}, {transform_indices = @transform_2, window_bounds = array<i64: 1, 128>}, {transform_indices = @transform_3, window_bounds = array<i64: 256, 128>}]} {
    %c0_i32 = arith.constant 0 : i32
    %0 = arith.cmpi eq, %arg2, %c0_i32 : i32
    %1 = arith.extui %0 : i1 to i32
    %c0_i32_0 = arith.constant 0 : i32
    %2 = arith.cmpi ne, %1, %c0_i32_0 : i32
    scf.if %2 {
      %cst_10 = arith.constant 0.000000e+00 : f32
      %12 = vector.broadcast %cst_10 : f32 to vector<256x128xf32>
      %c0_11 = arith.constant 0 : index
      %c0_12 = arith.constant 0 : index
      %13 = vector.load %arg7[%c0_11, %c0_12] : memref<256x128xf32, #tpu.memory_space<vmem>>, vector<256x128xf32>
      tpu.vector_store %arg7[%c0_11, %c0_12], %12 {strides = array<i32>} : memref<256x128xf32, #tpu.memory_space<vmem>>, vector<256x128xf32>,
    } else {
    }
    %c0 = arith.constant 0 : index
    %c0_1 = arith.constant 0 : index
    %3 = vector.load %arg7[%c0, %c0_1] : memref<256x128xf32, #tpu.memory_space<vmem>>, vector<256x128xf32>
    %c0_2 = arith.constant 0 : index
    %c0_3 = arith.constant 0 : index
    %4 = vector.load %arg3[%c0_2, %c0_3] : memref<256x128xbf16, #tpu.memory_space<vmem>>, vector<256x128xbf16>
    %c0_4 = arith.constant 0 : index
    %c0_5 = arith.constant 0 : index
    %5 = vector.load %arg4[%c0_4, %c0_5] : memref<128x128xbf16, #tpu.memory_space<vmem>>, vector<128x128xbf16>
    %cst = arith.constant dense<0.000000e+00> : vector<256x128xf32>
    %6 = tpu.matmul %4, %5, %cst {dimension_numbers = #tpu.dot_dimension_numbers<[1], [0], [0], [1], [0, 0, 1, 1], [], []>} : vector<256x128xbf16>, vector<128x128xbf16>, vector<256x128xf32> -> vector<256x128xf32>
    %7 = arith.addf %3, %6 : vector<256x128xf32>
    %c0_6 = arith.constant 0 : index
    %c0_7 = arith.constant 0 : index
    %8 = vector.load %arg7[%c0_6, %c0_7] : memref<256x128xf32, #tpu.memory_space<vmem>>, vector<256x128xf32>
    tpu.vector_store %arg7[%c0_6, %c0_7], %7 {strides = array<i32>} : memref<256x128xf32, #tpu.memory_space<vmem>>, vector<256x128xf32>,
    %c0_i32_8 = arith.constant 0 : i32
    %9 = arith.cmpi eq, %arg2, %c0_i32_8 : i32
    %10 = arith.extui %9 : i1 to i32
    %c0_i32_9 = arith.constant 0 : i32
    %11 = arith.cmpi ne, %10, %c0_i32_9 : i32
    scf.if %11 {
      %c0_10 = arith.constant 0 : index
      %c0_11 = arith.constant 0 : index
      %12 = vector.load %arg7[%c0_10, %c0_11] : memref<256x128xf32, #tpu.memory_space<vmem>>, vector<256x128xf32>
      %c0_12 = arith.constant 0 : index
      %c0_13 = arith.constant 0 : index
      %13 = vector.load %arg5[%c0_12, %c0_13] : memref<1x128xf32, #tpu.memory_space<vmem>>, vector<1x128xf32>
      %14 = vector.broadcast %13 : vector<1x128xf32> to vector<256x128xf32>
      %15 = arith.addf %12, %14 : vector<256x128xf32>
      %cst_14 = arith.constant 0.000000e+00 : f32
      %16 = vector.broadcast %cst_14 : f32 to vector<256x128xf32>
      %17 = arith.maximumf %15, %16 : vector<256x128xf32>
      %18 = arith.truncf %17 : vector<256x128xf32> to vector<256x128xbf16>
      %c0_15 = arith.constant 0 : index
      %c0_16 = arith.constant 0 : index
      %19 = vector.load %arg6[%c0_15, %c0_16] : memref<256x128xbf16, #tpu.memory_space<vmem>>, vector<256x128xbf16>
      tpu.vector_store %arg6[%c0_15, %c0_16], %18 {strides = array<i32>} : memref<256x128xbf16, #tpu.memory_space<vmem>>, vector<256x128xbf16>,
    } else {
    }
    return
  }
  func.func @transform_0(%arg0: i32, %arg1: i32, %arg2: i32) -> (i32, i32) {
    %c0_i32 = arith.constant 0 : i32
    return %arg0, %arg2 : i32, i32
  }
  func.func @transform_1(%arg0: i32, %arg1: i32, %arg2: i32) -> (i32, i32) {
    %c0_i32 = arith.constant 0 : i32
    return %arg2, %arg1 : i32, i32
  }
  func.func @transform_2(%arg0: i32, %arg1: i32, %arg2: i32) -> (i32, i32) {
    %c0_i32 = arith.constant 0 : i32
    %c0_i32_0 = arith.constant 0 : i32
    return %c0_i32, %arg1 : i32, i32
  }
  func.func @transform_3(%arg0: i32, %arg1: i32, %arg2: i32) -> (i32, i32) {
    %c0_i32 = arith.constant 0 : i32
    return %arg0, %arg1 : i32, i32
  }
}

module attributes {stable_mosaic.version = 11 : i64} {
  func.func @_matmul_bias_kernel(%arg0: i32, %arg1: i32, %arg2: i32, %arg3: memref<64x384xbf16, #tpu.memory_space<vmem>>, %arg4: memref<384x128xbf16, #tpu.memory_space<vmem>>, %arg5: memref<1x128xf32, #tpu.memory_space<vmem>>, %arg6: memref<64x128xbf16, #tpu.memory_space<vmem>>, %arg7: memref<64x128xf32, #tpu.memory_space<vmem>>) attributes {dimension_semantics = [#tpu.dimension_semantics<parallel>, #tpu.dimension_semantics<parallel>, #tpu.dimension_semantics<arbitrary>], iteration_bounds = array<i64: 2, 1, 3>, scalar_prefetch = 0 : i64, scratch_operands = 1 : i64, tpu.core_type = #tpu.core_type<tc>, window_params = [{transform_indices = @transform_0, window_bounds = array<i64: 64, 384>}, {transform_indices = @transform_1, window_bounds = array<i64: 384, 128>}, {transform_indices = @transform_2, window_bounds = array<i64: 1, 128>}, {transform_indices = @transform_3, window_bounds = array<i64: 64, 128>}]} {
    %c0_i32 = arith.constant 0 : i32
    %0 = arith.cmpi eq, %arg2, %c0_i32 : i32
    %1 = arith.extui %0 : i1 to i32
    %c0_i32_0 = arith.constant 0 : i32
    %2 = arith.cmpi ne, %1, %c0_i32_0 : i32
    scf.if %2 {
      %cst_9 = arith.constant 0.000000e+00 : f32
      %12 = vector.broadcast %cst_9 : f32 to vector<64x128xf32>
      %c0_10 = arith.constant 0 : index
      %c0_11 = arith.constant 0 : index
      %13 = vector.load %arg7[%c0_10, %c0_11] : memref<64x128xf32, #tpu.memory_space<vmem>>, vector<64x128xf32>
      tpu.vector_store %arg7[%c0_10, %c0_11], %12 {strides = array<i32>} : memref<64x128xf32, #tpu.memory_space<vmem>>, vector<64x128xf32>,
    } else {
    }
    %c0 = arith.constant 0 : index
    %c0_1 = arith.constant 0 : index
    %3 = vector.load %arg7[%c0, %c0_1] : memref<64x128xf32, #tpu.memory_space<vmem>>, vector<64x128xf32>
    %c0_2 = arith.constant 0 : index
    %c0_3 = arith.constant 0 : index
    %4 = vector.load %arg3[%c0_2, %c0_3] : memref<64x384xbf16, #tpu.memory_space<vmem>>, vector<64x384xbf16>
    %c0_4 = arith.constant 0 : index
    %c0_5 = arith.constant 0 : index
    %5 = vector.load %arg4[%c0_4, %c0_5] : memref<384x128xbf16, #tpu.memory_space<vmem>>, vector<384x128xbf16>
    %cst = arith.constant dense<0.000000e+00> : vector<64x128xf32>
    %6 = tpu.matmul %4, %5, %cst {dimension_numbers = #tpu.dot_dimension_numbers<[1], [0], [0], [1], [0, 0, 1, 1], [], []>} : vector<64x384xbf16>, vector<384x128xbf16>, vector<64x128xf32> -> vector<64x128xf32>
    %7 = arith.addf %3, %6 : vector<64x128xf32>
    %c0_6 = arith.constant 0 : index
    %c0_7 = arith.constant 0 : index
    %8 = vector.load %arg7[%c0_6, %c0_7] : memref<64x128xf32, #tpu.memory_space<vmem>>, vector<64x128xf32>
    tpu.vector_store %arg7[%c0_6, %c0_7], %7 {strides = array<i32>} : memref<64x128xf32, #tpu.memory_space<vmem>>, vector<64x128xf32>,
    %c2_i32 = arith.constant 2 : i32
    %9 = arith.cmpi eq, %arg2, %c2_i32 : i32
    %10 = arith.extui %9 : i1 to i32
    %c0_i32_8 = arith.constant 0 : i32
    %11 = arith.cmpi ne, %10, %c0_i32_8 : i32
    scf.if %11 {
      %c0_9 = arith.constant 0 : index
      %c0_10 = arith.constant 0 : index
      %12 = vector.load %arg7[%c0_9, %c0_10] : memref<64x128xf32, #tpu.memory_space<vmem>>, vector<64x128xf32>
      %c0_11 = arith.constant 0 : index
      %c0_12 = arith.constant 0 : index
      %13 = vector.load %arg5[%c0_11, %c0_12] : memref<1x128xf32, #tpu.memory_space<vmem>>, vector<1x128xf32>
      %14 = vector.broadcast %13 : vector<1x128xf32> to vector<64x128xf32>
      %15 = arith.addf %12, %14 : vector<64x128xf32>
      %cst_13 = arith.constant 0.000000e+00 : f32
      %16 = vector.broadcast %cst_13 : f32 to vector<64x128xf32>
      %17 = arith.maximumf %15, %16 : vector<64x128xf32>
      %18 = arith.truncf %17 : vector<64x128xf32> to vector<64x128xbf16>
      %c0_14 = arith.constant 0 : index
      %c0_15 = arith.constant 0 : index
      %19 = vector.load %arg6[%c0_14, %c0_15] : memref<64x128xbf16, #tpu.memory_space<vmem>>, vector<64x128xbf16>
      tpu.vector_store %arg6[%c0_14, %c0_15], %18 {strides = array<i32>} : memref<64x128xbf16, #tpu.memory_space<vmem>>, vector<64x128xbf16>,
    } else {
    }
    return
  }
  func.func @transform_0(%arg0: i32, %arg1: i32, %arg2: i32) -> (i32, i32) {
    %c0_i32 = arith.constant 0 : i32
    return %arg0, %arg2 : i32, i32
  }
  func.func @transform_1(%arg0: i32, %arg1: i32, %arg2: i32) -> (i32, i32) {
    %c0_i32 = arith.constant 0 : i32
    return %arg2, %arg1 : i32, i32
  }
  func.func @transform_2(%arg0: i32, %arg1: i32, %arg2: i32) -> (i32, i32) {
    %c0_i32 = arith.constant 0 : i32
    %c0_i32_0 = arith.constant 0 : i32
    return %c0_i32, %arg1 : i32, i32
  }
  func.func @transform_3(%arg0: i32, %arg1: i32, %arg2: i32) -> (i32, i32) {
    %c0_i32 = arith.constant 0 : i32
    return %arg0, %arg1 : i32, i32
  }
}

module attributes {stable_mosaic.version = 11 : i64} {
  func.func @_matmul_bias_kernel(%arg0: i32, %arg1: i32, %arg2: i32, %arg3: memref<32x384xbf16, #tpu.memory_space<vmem>>, %arg4: memref<384x128xbf16, #tpu.memory_space<vmem>>, %arg5: memref<1x128xf32, #tpu.memory_space<vmem>>, %arg6: memref<32x128xbf16, #tpu.memory_space<vmem>>, %arg7: memref<32x128xf32, #tpu.memory_space<vmem>>) attributes {dimension_semantics = [#tpu.dimension_semantics<parallel>, #tpu.dimension_semantics<parallel>, #tpu.dimension_semantics<arbitrary>], iteration_bounds = array<i64: 1, 1, 3>, scalar_prefetch = 0 : i64, scratch_operands = 1 : i64, tpu.core_type = #tpu.core_type<tc>, window_params = [{transform_indices = @transform_0, window_bounds = array<i64: 32, 384>}, {transform_indices = @transform_1, window_bounds = array<i64: 384, 128>}, {transform_indices = @transform_2, window_bounds = array<i64: 1, 128>}, {transform_indices = @transform_3, window_bounds = array<i64: 32, 128>}]} {
    %c0_i32 = arith.constant 0 : i32
    %0 = arith.cmpi eq, %arg2, %c0_i32 : i32
    %1 = arith.extui %0 : i1 to i32
    %c0_i32_0 = arith.constant 0 : i32
    %2 = arith.cmpi ne, %1, %c0_i32_0 : i32
    scf.if %2 {
      %cst_9 = arith.constant 0.000000e+00 : f32
      %12 = vector.broadcast %cst_9 : f32 to vector<32x128xf32>
      %c0_10 = arith.constant 0 : index
      %c0_11 = arith.constant 0 : index
      %13 = vector.load %arg7[%c0_10, %c0_11] : memref<32x128xf32, #tpu.memory_space<vmem>>, vector<32x128xf32>
      tpu.vector_store %arg7[%c0_10, %c0_11], %12 {strides = array<i32>} : memref<32x128xf32, #tpu.memory_space<vmem>>, vector<32x128xf32>,
    } else {
    }
    %c0 = arith.constant 0 : index
    %c0_1 = arith.constant 0 : index
    %3 = vector.load %arg7[%c0, %c0_1] : memref<32x128xf32, #tpu.memory_space<vmem>>, vector<32x128xf32>
    %c0_2 = arith.constant 0 : index
    %c0_3 = arith.constant 0 : index
    %4 = vector.load %arg3[%c0_2, %c0_3] : memref<32x384xbf16, #tpu.memory_space<vmem>>, vector<32x384xbf16>
    %c0_4 = arith.constant 0 : index
    %c0_5 = arith.constant 0 : index
    %5 = vector.load %arg4[%c0_4, %c0_5] : memref<384x128xbf16, #tpu.memory_space<vmem>>, vector<384x128xbf16>
    %cst = arith.constant dense<0.000000e+00> : vector<32x128xf32>
    %6 = tpu.matmul %4, %5, %cst {dimension_numbers = #tpu.dot_dimension_numbers<[1], [0], [0], [1], [0, 0, 1, 1], [], []>} : vector<32x384xbf16>, vector<384x128xbf16>, vector<32x128xf32> -> vector<32x128xf32>
    %7 = arith.addf %3, %6 : vector<32x128xf32>
    %c0_6 = arith.constant 0 : index
    %c0_7 = arith.constant 0 : index
    %8 = vector.load %arg7[%c0_6, %c0_7] : memref<32x128xf32, #tpu.memory_space<vmem>>, vector<32x128xf32>
    tpu.vector_store %arg7[%c0_6, %c0_7], %7 {strides = array<i32>} : memref<32x128xf32, #tpu.memory_space<vmem>>, vector<32x128xf32>,
    %c2_i32 = arith.constant 2 : i32
    %9 = arith.cmpi eq, %arg2, %c2_i32 : i32
    %10 = arith.extui %9 : i1 to i32
    %c0_i32_8 = arith.constant 0 : i32
    %11 = arith.cmpi ne, %10, %c0_i32_8 : i32
    scf.if %11 {
      %c0_9 = arith.constant 0 : index
      %c0_10 = arith.constant 0 : index
      %12 = vector.load %arg7[%c0_9, %c0_10] : memref<32x128xf32, #tpu.memory_space<vmem>>, vector<32x128xf32>
      %c0_11 = arith.constant 0 : index
      %c0_12 = arith.constant 0 : index
      %13 = vector.load %arg5[%c0_11, %c0_12] : memref<1x128xf32, #tpu.memory_space<vmem>>, vector<1x128xf32>
      %14 = vector.broadcast %13 : vector<1x128xf32> to vector<32x128xf32>
      %15 = arith.addf %12, %14 : vector<32x128xf32>
      %cst_13 = arith.constant 0.000000e+00 : f32
      %16 = vector.broadcast %cst_13 : f32 to vector<32x128xf32>
      %17 = arith.maximumf %15, %16 : vector<32x128xf32>
      %18 = arith.truncf %17 : vector<32x128xf32> to vector<32x128xbf16>
      %c0_14 = arith.constant 0 : index
      %c0_15 = arith.constant 0 : index
      %19 = vector.load %arg6[%c0_14, %c0_15] : memref<32x128xbf16, #tpu.memory_space<vmem>>, vector<32x128xbf16>
      tpu.vector_store %arg6[%c0_14, %c0_15], %18 {strides = array<i32>} : memref<32x128xbf16, #tpu.memory_space<vmem>>, vector<32x128xbf16>,
    } else {
    }
    return
  }
  func.func @transform_0(%arg0: i32, %arg1: i32, %arg2: i32) -> (i32, i32) {
    %c0_i32 = arith.constant 0 : i32
    return %arg0, %arg2 : i32, i32
  }
  func.func @transform_1(%arg0: i32, %arg1: i32, %arg2: i32) -> (i32, i32) {
    %c0_i32 = arith.constant 0 : i32
    return %arg2, %arg1 : i32, i32
  }
  func.func @transform_2(%arg0: i32, %arg1: i32, %arg2: i32) -> (i32, i32) {
    %c0_i32 = arith.constant 0 : i32
    %c0_i32_0 = arith.constant 0 : i32
    return %c0_i32, %arg1 : i32, i32
  }
  func.func @transform_3(%arg0: i32, %arg1: i32, %arg2: i32) -> (i32, i32) {
    %c0_i32 = arith.constant 0 : i32
    return %arg0, %arg1 : i32, i32
  }
}

module attributes {stable_mosaic.version = 11 : i64} {
  func.func @_matmul_bias_kernel(%arg0: i32, %arg1: i32, %arg2: i32, %arg3: memref<8x384xbf16, #tpu.memory_space<vmem>>, %arg4: memref<384x128xbf16, #tpu.memory_space<vmem>>, %arg5: memref<1x128xf32, #tpu.memory_space<vmem>>, %arg6: memref<8x128xbf16, #tpu.memory_space<vmem>>, %arg7: memref<8x128xf32, #tpu.memory_space<vmem>>) attributes {dimension_semantics = [#tpu.dimension_semantics<parallel>, #tpu.dimension_semantics<parallel>, #tpu.dimension_semantics<arbitrary>], iteration_bounds = array<i64: 1, 1, 3>, scalar_prefetch = 0 : i64, scratch_operands = 1 : i64, tpu.core_type = #tpu.core_type<tc>, window_params = [{transform_indices = @transform_0, window_bounds = array<i64: 8, 384>}, {transform_indices = @transform_1, window_bounds = array<i64: 384, 128>}, {transform_indices = @transform_2, window_bounds = array<i64: 1, 128>}, {transform_indices = @transform_3, window_bounds = array<i64: 8, 128>}]} {
    %c0_i32 = arith.constant 0 : i32
    %0 = arith.cmpi eq, %arg2, %c0_i32 : i32
    %1 = arith.extui %0 : i1 to i32
    %c0_i32_0 = arith.constant 0 : i32
    %2 = arith.cmpi ne, %1, %c0_i32_0 : i32
    scf.if %2 {
      %cst_9 = arith.constant 0.000000e+00 : f32
      %12 = vector.broadcast %cst_9 : f32 to vector<8x128xf32>
      %c0_10 = arith.constant 0 : index
      %c0_11 = arith.constant 0 : index
      %13 = vector.load %arg7[%c0_10, %c0_11] : memref<8x128xf32, #tpu.memory_space<vmem>>, vector<8x128xf32>
      tpu.vector_store %arg7[%c0_10, %c0_11], %12 {strides = array<i32>} : memref<8x128xf32, #tpu.memory_space<vmem>>, vector<8x128xf32>,
    } else {
    }
    %c0 = arith.constant 0 : index
    %c0_1 = arith.constant 0 : index
    %3 = vector.load %arg7[%c0, %c0_1] : memref<8x128xf32, #tpu.memory_space<vmem>>, vector<8x128xf32>
    %c0_2 = arith.constant 0 : index
    %c0_3 = arith.constant 0 : index
    %4 = vector.load %arg3[%c0_2, %c0_3] : memref<8x384xbf16, #tpu.memory_space<vmem>>, vector<8x384xbf16>
    %c0_4 = arith.constant 0 : index
    %c0_5 = arith.constant 0 : index
    %5 = vector.load %arg4[%c0_4, %c0_5] : memref<384x128xbf16, #tpu.memory_space<vmem>>, vector<384x128xbf16>
    %cst = arith.constant dense<0.000000e+00> : vector<8x128xf32>
    %6 = tpu.matmul %4, %5, %cst {dimension_numbers = #tpu.dot_dimension_numbers<[1], [0], [0], [1], [0, 0, 1, 1], [], []>} : vector<8x384xbf16>, vector<384x128xbf16>, vector<8x128xf32> -> vector<8x128xf32>
    %7 = arith.addf %3, %6 : vector<8x128xf32>
    %c0_6 = arith.constant 0 : index
    %c0_7 = arith.constant 0 : index
    %8 = vector.load %arg7[%c0_6, %c0_7] : memref<8x128xf32, #tpu.memory_space<vmem>>, vector<8x128xf32>
    tpu.vector_store %arg7[%c0_6, %c0_7], %7 {strides = array<i32>} : memref<8x128xf32, #tpu.memory_space<vmem>>, vector<8x128xf32>,
    %c2_i32 = arith.constant 2 : i32
    %9 = arith.cmpi eq, %arg2, %c2_i32 : i32
    %10 = arith.extui %9 : i1 to i32
    %c0_i32_8 = arith.constant 0 : i32
    %11 = arith.cmpi ne, %10, %c0_i32_8 : i32
    scf.if %11 {
      %c0_9 = arith.constant 0 : index
      %c0_10 = arith.constant 0 : index
      %12 = vector.load %arg7[%c0_9, %c0_10] : memref<8x128xf32, #tpu.memory_space<vmem>>, vector<8x128xf32>
      %c0_11 = arith.constant 0 : index
      %c0_12 = arith.constant 0 : index
      %13 = vector.load %arg5[%c0_11, %c0_12] : memref<1x128xf32, #tpu.memory_space<vmem>>, vector<1x128xf32>
      %14 = vector.broadcast %13 : vector<1x128xf32> to vector<8x128xf32>
      %15 = arith.addf %12, %14 : vector<8x128xf32>
      %cst_13 = arith.constant 0.000000e+00 : f32
      %16 = vector.broadcast %cst_13 : f32 to vector<8x128xf32>
      %17 = arith.maximumf %15, %16 : vector<8x128xf32>
      %18 = arith.truncf %17 : vector<8x128xf32> to vector<8x128xbf16>
      %c0_14 = arith.constant 0 : index
      %c0_15 = arith.constant 0 : index
      %19 = vector.load %arg6[%c0_14, %c0_15] : memref<8x128xbf16, #tpu.memory_space<vmem>>, vector<8x128xbf16>
      tpu.vector_store %arg6[%c0_14, %c0_15], %18 {strides = array<i32>} : memref<8x128xbf16, #tpu.memory_space<vmem>>, vector<8x128xbf16>,
    } else {
    }
    return
  }
  func.func @transform_0(%arg0: i32, %arg1: i32, %arg2: i32) -> (i32, i32) {
    %c0_i32 = arith.constant 0 : i32
    return %arg0, %arg2 : i32, i32
  }
  func.func @transform_1(%arg0: i32, %arg1: i32, %arg2: i32) -> (i32, i32) {
    %c0_i32 = arith.constant 0 : i32
    return %arg2, %arg1 : i32, i32
  }
  func.func @transform_2(%arg0: i32, %arg1: i32, %arg2: i32) -> (i32, i32) {
    %c0_i32 = arith.constant 0 : i32
    %c0_i32_0 = arith.constant 0 : i32
    return %c0_i32, %arg1 : i32, i32
  }
  func.func @transform_3(%arg0: i32, %arg1: i32, %arg2: i32) -> (i32, i32) {
    %c0_i32 = arith.constant 0 : i32
    return %arg0, %arg1 : i32, i32
  }
}

module attributes {stable_mosaic.version = 11 : i64} {
  func.func @_fused_concat_matmul_kernel(%arg0: i32, %arg1: i32, %arg2: memref<8x128xbf16, #tpu.memory_space<vmem>>, %arg3: memref<8x128xbf16, #tpu.memory_space<vmem>>, %arg4: memref<8x128xbf16, #tpu.memory_space<vmem>>, %arg5: memref<8x128xbf16, #tpu.memory_space<vmem>>, %arg6: memref<8x128xbf16, #tpu.memory_space<vmem>>, %arg7: memref<640x128xbf16, #tpu.memory_space<vmem>>, %arg8: memref<1x128xf32, #tpu.memory_space<vmem>>, %arg9: memref<8x128xbf16, #tpu.memory_space<vmem>>) attributes {dimension_semantics = [#tpu.dimension_semantics<parallel>, #tpu.dimension_semantics<parallel>], iteration_bounds = array<i64: 1, 1>, scalar_prefetch = 0 : i64, scratch_operands = 0 : i64, tpu.core_type = #tpu.core_type<tc>, window_params = [{transform_indices = @transform_0, window_bounds = array<i64: 8, 128>}, {transform_indices = @transform_1, window_bounds = array<i64: 8, 128>}, {transform_indices = @transform_2, window_bounds = array<i64: 8, 128>}, {transform_indices = @transform_3, window_bounds = array<i64: 8, 128>}, {transform_indices = @transform_4, window_bounds = array<i64: 8, 128>}, {transform_indices = @transform_5, window_bounds = array<i64: 640, 128>}, {transform_indices = @transform_6, window_bounds = array<i64: 1, 128>}, {transform_indices = @transform_7, window_bounds = array<i64: 8, 128>}]} {
    %c0 = arith.constant 0 : index
    %c0_0 = arith.constant 0 : index
    %0 = vector.load %arg8[%c0, %c0_0] : memref<1x128xf32, #tpu.memory_space<vmem>>, vector<1x128xf32>
    %1 = vector.shape_cast %0 : vector<1x128xf32> to vector<1x128xf32>
    %2 = vector.broadcast %1 : vector<1x128xf32> to vector<8x128xf32>
    %c0_1 = arith.constant 0 : index
    %c0_2 = arith.constant 0 : index
    %3 = vector.load %arg2[%c0_1, %c0_2] : memref<8x128xbf16, #tpu.memory_space<vmem>>, vector<8x128xbf16>
    %c0_3 = arith.constant 0 : index
    %c0_4 = arith.constant 0 : index
    %4 = vector.load %arg7[%c0_3, %c0_4] : memref<640x128xbf16, #tpu.memory_space<vmem>>, vector<128x128xbf16>
    %cst = arith.constant dense<0.000000e+00> : vector<8x128xf32>
    %5 = tpu.matmul %3, %4, %cst {dimension_numbers = #tpu.dot_dimension_numbers<[1], [0], [0], [1], [0, 0, 1, 1], [], []>} : vector<8x128xbf16>, vector<128x128xbf16>, vector<8x128xf32> -> vector<8x128xf32>
    %6 = arith.addf %2, %5 : vector<8x128xf32>
    %c0_5 = arith.constant 0 : index
    %c0_6 = arith.constant 0 : index
    %7 = vector.load %arg3[%c0_5, %c0_6] : memref<8x128xbf16, #tpu.memory_space<vmem>>, vector<8x128xbf16>
    %c128 = arith.constant 128 : index
    %c0_7 = arith.constant 0 : index
    %8 = vector.load %arg7[%c128, %c0_7] : memref<640x128xbf16, #tpu.memory_space<vmem>>, vector<128x128xbf16>
    %cst_8 = arith.constant dense<0.000000e+00> : vector<8x128xf32>
    %9 = tpu.matmul %7, %8, %cst_8 {dimension_numbers = #tpu.dot_dimension_numbers<[1], [0], [0], [1], [0, 0, 1, 1], [], []>} : vector<8x128xbf16>, vector<128x128xbf16>, vector<8x128xf32> -> vector<8x128xf32>
    %10 = arith.addf %6, %9 : vector<8x128xf32>
    %c0_9 = arith.constant 0 : index
    %c0_10 = arith.constant 0 : index
    %11 = vector.load %arg4[%c0_9, %c0_10] : memref<8x128xbf16, #tpu.memory_space<vmem>>, vector<8x128xbf16>
    %c256 = arith.constant 256 : index
    %c0_11 = arith.constant 0 : index
    %12 = vector.load %arg7[%c256, %c0_11] : memref<640x128xbf16, #tpu.memory_space<vmem>>, vector<128x128xbf16>
    %cst_12 = arith.constant dense<0.000000e+00> : vector<8x128xf32>
    %13 = tpu.matmul %11, %12, %cst_12 {dimension_numbers = #tpu.dot_dimension_numbers<[1], [0], [0], [1], [0, 0, 1, 1], [], []>} : vector<8x128xbf16>, vector<128x128xbf16>, vector<8x128xf32> -> vector<8x128xf32>
    %14 = arith.addf %10, %13 : vector<8x128xf32>
    %c0_13 = arith.constant 0 : index
    %c0_14 = arith.constant 0 : index
    %15 = vector.load %arg5[%c0_13, %c0_14] : memref<8x128xbf16, #tpu.memory_space<vmem>>, vector<8x128xbf16>
    %c384 = arith.constant 384 : index
    %c0_15 = arith.constant 0 : index
    %16 = vector.load %arg7[%c384, %c0_15] : memref<640x128xbf16, #tpu.memory_space<vmem>>, vector<128x128xbf16>
    %cst_16 = arith.constant dense<0.000000e+00> : vector<8x128xf32>
    %17 = tpu.matmul %15, %16, %cst_16 {dimension_numbers = #tpu.dot_dimension_numbers<[1], [0], [0], [1], [0, 0, 1, 1], [], []>} : vector<8x128xbf16>, vector<128x128xbf16>, vector<8x128xf32> -> vector<8x128xf32>
    %18 = arith.addf %14, %17 : vector<8x128xf32>
    %c0_17 = arith.constant 0 : index
    %c0_18 = arith.constant 0 : index
    %19 = vector.load %arg6[%c0_17, %c0_18] : memref<8x128xbf16, #tpu.memory_space<vmem>>, vector<8x128xbf16>
    %c512 = arith.constant 512 : index
    %c0_19 = arith.constant 0 : index
    %20 = vector.load %arg7[%c512, %c0_19] : memref<640x128xbf16, #tpu.memory_space<vmem>>, vector<128x128xbf16>
    %cst_20 = arith.constant dense<0.000000e+00> : vector<8x128xf32>
    %21 = tpu.matmul %19, %20, %cst_20 {dimension_numbers = #tpu.dot_dimension_numbers<[1], [0], [0], [1], [0, 0, 1, 1], [], []>} : vector<8x128xbf16>, vector<128x128xbf16>, vector<8x128xf32> -> vector<8x128xf32>
    %22 = arith.addf %18, %21 : vector<8x128xf32>
    %cst_21 = arith.constant 0.000000e+00 : f32
    %23 = vector.broadcast %cst_21 : f32 to vector<8x128xf32>
    %24 = arith.maximumf %22, %23 : vector<8x128xf32>
    %25 = arith.truncf %24 : vector<8x128xf32> to vector<8x128xbf16>
    %c0_22 = arith.constant 0 : index
    %c0_23 = arith.constant 0 : index
    %26 = vector.load %arg9[%c0_22, %c0_23] : memref<8x128xbf16, #tpu.memory_space<vmem>>, vector<8x128xbf16>
    tpu.vector_store %arg9[%c0_22, %c0_23], %25 {strides = array<i32>} : memref<8x128xbf16, #tpu.memory_space<vmem>>, vector<8x128xbf16>,
    return
  }
  func.func @transform_0(%arg0: i32, %arg1: i32) -> (i32, i32) {
    %c0_i32 = arith.constant 0 : i32
    %c0_i32_0 = arith.constant 0 : i32
    return %arg0, %c0_i32 : i32, i32
  }
  func.func @transform_1(%arg0: i32, %arg1: i32) -> (i32, i32) {
    %c0_i32 = arith.constant 0 : i32
    %c0_i32_0 = arith.constant 0 : i32
    return %arg0, %c0_i32 : i32, i32
  }
  func.func @transform_2(%arg0: i32, %arg1: i32) -> (i32, i32) {
    %c0_i32 = arith.constant 0 : i32
    %c0_i32_0 = arith.constant 0 : i32
    return %arg0, %c0_i32 : i32, i32
  }
  func.func @transform_3(%arg0: i32, %arg1: i32) -> (i32, i32) {
    %c0_i32 = arith.constant 0 : i32
    %c0_i32_0 = arith.constant 0 : i32
    return %arg0, %c0_i32 : i32, i32
  }
  func.func @transform_4(%arg0: i32, %arg1: i32) -> (i32, i32) {
    %c0_i32 = arith.constant 0 : i32
    %c0_i32_0 = arith.constant 0 : i32
    return %arg0, %c0_i32 : i32, i32
  }
  func.func @transform_5(%arg0: i32, %arg1: i32) -> (i32, i32) {
    %c0_i32 = arith.constant 0 : i32
    %c0_i32_0 = arith.constant 0 : i32
    return %c0_i32, %arg1 : i32, i32
  }
  func.func @transform_6(%arg0: i32, %arg1: i32) -> (i32, i32) {
    %c0_i32 = arith.constant 0 : i32
    %c0_i32_0 = arith.constant 0 : i32
    return %c0_i32, %arg1 : i32, i32
  }
  func.func @transform_7(%arg0: i32, %arg1: i32) -> (i32, i32) {
    %c0_i32 = arith.constant 0 : i32
    return %arg0, %arg1 : i32, i32
  }
}

module attributes {stable_mosaic.version = 11 : i64} {
  func.func @_gap_kernel(%arg0: i32, %arg1: i32, %arg2: memref<2x4x128xbf16, #tpu.memory_space<vmem>>, %arg3: memref<2x128xf32, #tpu.memory_space<vmem>>, %arg4: memref<2x128xf32, #tpu.memory_space<vmem>>) attributes {dimension_semantics = [#tpu.dimension_semantics<parallel>, #tpu.dimension_semantics<arbitrary>], iteration_bounds = array<i64: 1, 1>, scalar_prefetch = 0 : i64, scratch_operands = 1 : i64, tpu.core_type = #tpu.core_type<tc>, window_params = [{transform_indices = @transform_0, window_bounds = array<i64: 2, 4, 128>}, {transform_indices = @transform_1, window_bounds = array<i64: 2, 128>}]} {
    %c0_i32 = arith.constant 0 : i32
    %0 = arith.cmpi eq, %arg1, %c0_i32 : i32
    %1 = arith.extui %0 : i1 to i32
    %c0_i32_0 = arith.constant 0 : i32
    %2 = arith.cmpi ne, %1, %c0_i32_0 : i32
    scf.if %2 {
      %cst_9 = arith.constant 0.000000e+00 : f32
      %12 = vector.broadcast %cst_9 : f32 to vector<2x128xf32>
      %c0_10 = arith.constant 0 : index
      %c0_11 = arith.constant 0 : index
      %13 = vector.load %arg4[%c0_10, %c0_11] : memref<2x128xf32, #tpu.memory_space<vmem>>, vector<2x128xf32>
      tpu.vector_store %arg4[%c0_10, %c0_11], %12 {strides = array<i32>} : memref<2x128xf32, #tpu.memory_space<vmem>>, vector<2x128xf32>,
    } else {
    }
    %c0 = arith.constant 0 : index
    %c0_1 = arith.constant 0 : index
    %3 = vector.load %arg4[%c0, %c0_1] : memref<2x128xf32, #tpu.memory_space<vmem>>, vector<2x128xf32>
    %c0_2 = arith.constant 0 : index
    %c0_3 = arith.constant 0 : index
    %c0_4 = arith.constant 0 : index
    %4 = vector.load %arg2[%c0_2, %c0_3, %c0_4] : memref<2x4x128xbf16, #tpu.memory_space<vmem>>, vector<2x4x128xbf16>
    %5 = arith.extf %4 : vector<2x4x128xbf16> to vector<2x4x128xf32>
    %cst = arith.constant dense<0.000000e+00> : vector<2x128xf32>
    %6 = vector.multi_reduction <add>, %5, %cst [1] : vector<2x4x128xf32> to vector<2x128xf32>
    %7 = arith.addf %3, %6 : vector<2x128xf32>
    %c0_5 = arith.constant 0 : index
    %c0_6 = arith.constant 0 : index
    %8 = vector.load %arg4[%c0_5, %c0_6] : memref<2x128xf32, #tpu.memory_space<vmem>>, vector<2x128xf32>
    tpu.vector_store %arg4[%c0_5, %c0_6], %7 {strides = array<i32>} : memref<2x128xf32, #tpu.memory_space<vmem>>, vector<2x128xf32>,
    %c0_i32_7 = arith.constant 0 : i32
    %9 = arith.cmpi eq, %arg1, %c0_i32_7 : i32
    %10 = arith.extui %9 : i1 to i32
    %c0_i32_8 = arith.constant 0 : i32
    %11 = arith.cmpi ne, %10, %c0_i32_8 : i32
    scf.if %11 {
      %c0_9 = arith.constant 0 : index
      %c0_10 = arith.constant 0 : index
      %12 = vector.load %arg4[%c0_9, %c0_10] : memref<2x128xf32, #tpu.memory_space<vmem>>, vector<2x128xf32>
      %cst_11 = arith.constant 2.500000e-01 : f32
      %13 = vector.broadcast %cst_11 : f32 to vector<2x128xf32>
      %14 = arith.mulf %12, %13 : vector<2x128xf32>
      %c0_12 = arith.constant 0 : index
      %c0_13 = arith.constant 0 : index
      %15 = vector.load %arg3[%c0_12, %c0_13] : memref<2x128xf32, #tpu.memory_space<vmem>>, vector<2x128xf32>
      tpu.vector_store %arg3[%c0_12, %c0_13], %14 {strides = array<i32>} : memref<2x128xf32, #tpu.memory_space<vmem>>, vector<2x128xf32>,
    } else {
    }
    return
  }
  func.func @transform_0(%arg0: i32, %arg1: i32) -> (i32, i32, i32) {
    %c0_i32 = arith.constant 0 : i32
    %c0_i32_0 = arith.constant 0 : i32
    return %c0_i32, %arg1, %arg0 : i32, i32, i32
  }
  func.func @transform_1(%arg0: i32, %arg1: i32) -> (i32, i32) {
    %c0_i32 = arith.constant 0 : i32
    %c0_i32_0 = arith.constant 0 : i32
    return %c0_i32, %arg0 : i32, i32
  }
}

module attributes {stable_mosaic.version = 11 : i64} {
  func.func @_matmul_bias_kernel(%arg0: i32, %arg1: i32, %arg2: i32, %arg3: memref<8x128xbf16, #tpu.memory_space<vmem>>, %arg4: memref<128x128xbf16, #tpu.memory_space<vmem>>, %arg5: memref<1x128xf32, #tpu.memory_space<vmem>>, %arg6: memref<8x128xbf16, #tpu.memory_space<vmem>>, %arg7: memref<8x128xf32, #tpu.memory_space<vmem>>) attributes {dimension_semantics = [#tpu.dimension_semantics<parallel>, #tpu.dimension_semantics<parallel>, #tpu.dimension_semantics<arbitrary>], iteration_bounds = array<i64: 1, 1, 1>, scalar_prefetch = 0 : i64, scratch_operands = 1 : i64, tpu.core_type = #tpu.core_type<tc>, window_params = [{transform_indices = @transform_0, window_bounds = array<i64: 8, 128>}, {transform_indices = @transform_1, window_bounds = array<i64: 128, 128>}, {transform_indices = @transform_2, window_bounds = array<i64: 1, 128>}, {transform_indices = @transform_3, window_bounds = array<i64: 8, 128>}]} {
    %c0_i32 = arith.constant 0 : i32
    %0 = arith.cmpi eq, %arg2, %c0_i32 : i32
    %1 = arith.extui %0 : i1 to i32
    %c0_i32_0 = arith.constant 0 : i32
    %2 = arith.cmpi ne, %1, %c0_i32_0 : i32
    scf.if %2 {
      %cst_10 = arith.constant 0.000000e+00 : f32
      %12 = vector.broadcast %cst_10 : f32 to vector<8x128xf32>
      %c0_11 = arith.constant 0 : index
      %c0_12 = arith.constant 0 : index
      %13 = vector.load %arg7[%c0_11, %c0_12] : memref<8x128xf32, #tpu.memory_space<vmem>>, vector<8x128xf32>
      tpu.vector_store %arg7[%c0_11, %c0_12], %12 {strides = array<i32>} : memref<8x128xf32, #tpu.memory_space<vmem>>, vector<8x128xf32>,
    } else {
    }
    %c0 = arith.constant 0 : index
    %c0_1 = arith.constant 0 : index
    %3 = vector.load %arg7[%c0, %c0_1] : memref<8x128xf32, #tpu.memory_space<vmem>>, vector<8x128xf32>
    %c0_2 = arith.constant 0 : index
    %c0_3 = arith.constant 0 : index
    %4 = vector.load %arg3[%c0_2, %c0_3] : memref<8x128xbf16, #tpu.memory_space<vmem>>, vector<8x128xbf16>
    %c0_4 = arith.constant 0 : index
    %c0_5 = arith.constant 0 : index
    %5 = vector.load %arg4[%c0_4, %c0_5] : memref<128x128xbf16, #tpu.memory_space<vmem>>, vector<128x128xbf16>
    %cst = arith.constant dense<0.000000e+00> : vector<8x128xf32>
    %6 = tpu.matmul %4, %5, %cst {dimension_numbers = #tpu.dot_dimension_numbers<[1], [0], [0], [1], [0, 0, 1, 1], [], []>} : vector<8x128xbf16>, vector<128x128xbf16>, vector<8x128xf32> -> vector<8x128xf32>
    %7 = arith.addf %3, %6 : vector<8x128xf32>
    %c0_6 = arith.constant 0 : index
    %c0_7 = arith.constant 0 : index
    %8 = vector.load %arg7[%c0_6, %c0_7] : memref<8x128xf32, #tpu.memory_space<vmem>>, vector<8x128xf32>
    tpu.vector_store %arg7[%c0_6, %c0_7], %7 {strides = array<i32>} : memref<8x128xf32, #tpu.memory_space<vmem>>, vector<8x128xf32>,
    %c0_i32_8 = arith.constant 0 : i32
    %9 = arith.cmpi eq, %arg2, %c0_i32_8 : i32
    %10 = arith.extui %9 : i1 to i32
    %c0_i32_9 = arith.constant 0 : i32
    %11 = arith.cmpi ne, %10, %c0_i32_9 : i32
    scf.if %11 {
      %c0_10 = arith.constant 0 : index
      %c0_11 = arith.constant 0 : index
      %12 = vector.load %arg7[%c0_10, %c0_11] : memref<8x128xf32, #tpu.memory_space<vmem>>, vector<8x128xf32>
      %c0_12 = arith.constant 0 : index
      %c0_13 = arith.constant 0 : index
      %13 = vector.load %arg5[%c0_12, %c0_13] : memref<1x128xf32, #tpu.memory_space<vmem>>, vector<1x128xf32>
      %14 = vector.broadcast %13 : vector<1x128xf32> to vector<8x128xf32>
      %15 = arith.addf %12, %14 : vector<8x128xf32>
      %cst_14 = arith.constant 0.000000e+00 : f32
      %16 = vector.broadcast %cst_14 : f32 to vector<8x128xf32>
      %17 = arith.maximumf %15, %16 : vector<8x128xf32>
      %18 = arith.truncf %17 : vector<8x128xf32> to vector<8x128xbf16>
      %c0_15 = arith.constant 0 : index
      %c0_16 = arith.constant 0 : index
      %19 = vector.load %arg6[%c0_15, %c0_16] : memref<8x128xbf16, #tpu.memory_space<vmem>>, vector<8x128xbf16>
      tpu.vector_store %arg6[%c0_15, %c0_16], %18 {strides = array<i32>} : memref<8x128xbf16, #tpu.memory_space<vmem>>, vector<8x128xbf16>,
    } else {
    }
    return
  }
  func.func @transform_0(%arg0: i32, %arg1: i32, %arg2: i32) -> (i32, i32) {
    %c0_i32 = arith.constant 0 : i32
    return %arg0, %arg2 : i32, i32
  }
  func.func @transform_1(%arg0: i32, %arg1: i32, %arg2: i32) -> (i32, i32) {
    %c0_i32 = arith.constant 0 : i32
    return %arg2, %arg1 : i32, i32
  }
  func.func @transform_2(%arg0: i32, %arg1: i32, %arg2: i32) -> (i32, i32) {
    %c0_i32 = arith.constant 0 : i32
    %c0_i32_0 = arith.constant 0 : i32
    return %c0_i32, %arg1 : i32, i32
  }
  func.func @transform_3(%arg0: i32, %arg1: i32, %arg2: i32) -> (i32, i32) {
    %c0_i32 = arith.constant 0 : i32
    return %arg0, %arg1 : i32, i32
  }
}

module attributes {stable_mosaic.version = 11 : i64} {
  func.func @_matmul_bias_kernel(%arg0: i32, %arg1: i32, %arg2: i32, %arg3: memref<64x128xbf16, #tpu.memory_space<vmem>>, %arg4: memref<128x128xbf16, #tpu.memory_space<vmem>>, %arg5: memref<1x128xf32, #tpu.memory_space<vmem>>, %arg6: memref<64x128xbf16, #tpu.memory_space<vmem>>, %arg7: memref<64x128xf32, #tpu.memory_space<vmem>>) attributes {dimension_semantics = [#tpu.dimension_semantics<parallel>, #tpu.dimension_semantics<parallel>, #tpu.dimension_semantics<arbitrary>], iteration_bounds = array<i64: 2, 1, 1>, scalar_prefetch = 0 : i64, scratch_operands = 1 : i64, tpu.core_type = #tpu.core_type<tc>, window_params = [{transform_indices = @transform_0, window_bounds = array<i64: 64, 128>}, {transform_indices = @transform_1, window_bounds = array<i64: 128, 128>}, {transform_indices = @transform_2, window_bounds = array<i64: 1, 128>}, {transform_indices = @transform_3, window_bounds = array<i64: 64, 128>}]} {
    %c0_i32 = arith.constant 0 : i32
    %0 = arith.cmpi eq, %arg2, %c0_i32 : i32
    %1 = arith.extui %0 : i1 to i32
    %c0_i32_0 = arith.constant 0 : i32
    %2 = arith.cmpi ne, %1, %c0_i32_0 : i32
    scf.if %2 {
      %cst_10 = arith.constant 0.000000e+00 : f32
      %12 = vector.broadcast %cst_10 : f32 to vector<64x128xf32>
      %c0_11 = arith.constant 0 : index
      %c0_12 = arith.constant 0 : index
      %13 = vector.load %arg7[%c0_11, %c0_12] : memref<64x128xf32, #tpu.memory_space<vmem>>, vector<64x128xf32>
      tpu.vector_store %arg7[%c0_11, %c0_12], %12 {strides = array<i32>} : memref<64x128xf32, #tpu.memory_space<vmem>>, vector<64x128xf32>,
    } else {
    }
    %c0 = arith.constant 0 : index
    %c0_1 = arith.constant 0 : index
    %3 = vector.load %arg7[%c0, %c0_1] : memref<64x128xf32, #tpu.memory_space<vmem>>, vector<64x128xf32>
    %c0_2 = arith.constant 0 : index
    %c0_3 = arith.constant 0 : index
    %4 = vector.load %arg3[%c0_2, %c0_3] : memref<64x128xbf16, #tpu.memory_space<vmem>>, vector<64x128xbf16>
    %c0_4 = arith.constant 0 : index
    %c0_5 = arith.constant 0 : index
    %5 = vector.load %arg4[%c0_4, %c0_5] : memref<128x128xbf16, #tpu.memory_space<vmem>>, vector<128x128xbf16>
    %cst = arith.constant dense<0.000000e+00> : vector<64x128xf32>
    %6 = tpu.matmul %4, %5, %cst {dimension_numbers = #tpu.dot_dimension_numbers<[1], [0], [0], [1], [0, 0, 1, 1], [], []>} : vector<64x128xbf16>, vector<128x128xbf16>, vector<64x128xf32> -> vector<64x128xf32>
    %7 = arith.addf %3, %6 : vector<64x128xf32>
    %c0_6 = arith.constant 0 : index
    %c0_7 = arith.constant 0 : index
    %8 = vector.load %arg7[%c0_6, %c0_7] : memref<64x128xf32, #tpu.memory_space<vmem>>, vector<64x128xf32>
    tpu.vector_store %arg7[%c0_6, %c0_7], %7 {strides = array<i32>} : memref<64x128xf32, #tpu.memory_space<vmem>>, vector<64x128xf32>,
    %c0_i32_8 = arith.constant 0 : i32
    %9 = arith.cmpi eq, %arg2, %c0_i32_8 : i32
    %10 = arith.extui %9 : i1 to i32
    %c0_i32_9 = arith.constant 0 : i32
    %11 = arith.cmpi ne, %10, %c0_i32_9 : i32
    scf.if %11 {
      %c0_10 = arith.constant 0 : index
      %c0_11 = arith.constant 0 : index
      %12 = vector.load %arg7[%c0_10, %c0_11] : memref<64x128xf32, #tpu.memory_space<vmem>>, vector<64x128xf32>
      %c0_12 = arith.constant 0 : index
      %c0_13 = arith.constant 0 : index
      %13 = vector.load %arg5[%c0_12, %c0_13] : memref<1x128xf32, #tpu.memory_space<vmem>>, vector<1x128xf32>
      %14 = vector.broadcast %13 : vector<1x128xf32> to vector<64x128xf32>
      %15 = arith.addf %12, %14 : vector<64x128xf32>
      %cst_14 = arith.constant 0.000000e+00 : f32
      %16 = vector.broadcast %cst_14 : f32 to vector<64x128xf32>
      %17 = arith.maximumf %15, %16 : vector<64x128xf32>
      %18 = arith.truncf %17 : vector<64x128xf32> to vector<64x128xbf16>
      %c0_15 = arith.constant 0 : index
      %c0_16 = arith.constant 0 : index
      %19 = vector.load %arg6[%c0_15, %c0_16] : memref<64x128xbf16, #tpu.memory_space<vmem>>, vector<64x128xbf16>
      tpu.vector_store %arg6[%c0_15, %c0_16], %18 {strides = array<i32>} : memref<64x128xbf16, #tpu.memory_space<vmem>>, vector<64x128xbf16>,
    } else {
    }
    return
  }
  func.func @transform_0(%arg0: i32, %arg1: i32, %arg2: i32) -> (i32, i32) {
    %c0_i32 = arith.constant 0 : i32
    return %arg0, %arg2 : i32, i32
  }
  func.func @transform_1(%arg0: i32, %arg1: i32, %arg2: i32) -> (i32, i32) {
    %c0_i32 = arith.constant 0 : i32
    return %arg2, %arg1 : i32, i32
  }
  func.func @transform_2(%arg0: i32, %arg1: i32, %arg2: i32) -> (i32, i32) {
    %c0_i32 = arith.constant 0 : i32
    %c0_i32_0 = arith.constant 0 : i32
    return %c0_i32, %arg1 : i32, i32
  }
  func.func @transform_3(%arg0: i32, %arg1: i32, %arg2: i32) -> (i32, i32) {
    %c0_i32 = arith.constant 0 : i32
    return %arg0, %arg1 : i32, i32
  }
}

module attributes {stable_mosaic.version = 11 : i64} {
  func.func @_matmul_bias_kernel(%arg0: i32, %arg1: i32, %arg2: i32, %arg3: memref<64x384xbf16, #tpu.memory_space<vmem>>, %arg4: memref<384x128xbf16, #tpu.memory_space<vmem>>, %arg5: memref<1x128xf32, #tpu.memory_space<vmem>>, %arg6: memref<64x128xbf16, #tpu.memory_space<vmem>>, %arg7: memref<64x128xf32, #tpu.memory_space<vmem>>) attributes {dimension_semantics = [#tpu.dimension_semantics<parallel>, #tpu.dimension_semantics<parallel>, #tpu.dimension_semantics<arbitrary>], iteration_bounds = array<i64: 2, 1, 6>, scalar_prefetch = 0 : i64, scratch_operands = 1 : i64, tpu.core_type = #tpu.core_type<tc>, window_params = [{transform_indices = @transform_0, window_bounds = array<i64: 64, 384>}, {transform_indices = @transform_1, window_bounds = array<i64: 384, 128>}, {transform_indices = @transform_2, window_bounds = array<i64: 1, 128>}, {transform_indices = @transform_3, window_bounds = array<i64: 64, 128>}]} {
    %c0_i32 = arith.constant 0 : i32
    %0 = arith.cmpi eq, %arg2, %c0_i32 : i32
    %1 = arith.extui %0 : i1 to i32
    %c0_i32_0 = arith.constant 0 : i32
    %2 = arith.cmpi ne, %1, %c0_i32_0 : i32
    scf.if %2 {
      %cst_9 = arith.constant 0.000000e+00 : f32
      %12 = vector.broadcast %cst_9 : f32 to vector<64x128xf32>
      %c0_10 = arith.constant 0 : index
      %c0_11 = arith.constant 0 : index
      %13 = vector.load %arg7[%c0_10, %c0_11] : memref<64x128xf32, #tpu.memory_space<vmem>>, vector<64x128xf32>
      tpu.vector_store %arg7[%c0_10, %c0_11], %12 {strides = array<i32>} : memref<64x128xf32, #tpu.memory_space<vmem>>, vector<64x128xf32>,
    } else {
    }
    %c0 = arith.constant 0 : index
    %c0_1 = arith.constant 0 : index
    %3 = vector.load %arg7[%c0, %c0_1] : memref<64x128xf32, #tpu.memory_space<vmem>>, vector<64x128xf32>
    %c0_2 = arith.constant 0 : index
    %c0_3 = arith.constant 0 : index
    %4 = vector.load %arg3[%c0_2, %c0_3] : memref<64x384xbf16, #tpu.memory_space<vmem>>, vector<64x384xbf16>
    %c0_4 = arith.constant 0 : index
    %c0_5 = arith.constant 0 : index
    %5 = vector.load %arg4[%c0_4, %c0_5] : memref<384x128xbf16, #tpu.memory_space<vmem>>, vector<384x128xbf16>
    %cst = arith.constant dense<0.000000e+00> : vector<64x128xf32>
    %6 = tpu.matmul %4, %5, %cst {dimension_numbers = #tpu.dot_dimension_numbers<[1], [0], [0], [1], [0, 0, 1, 1], [], []>} : vector<64x384xbf16>, vector<384x128xbf16>, vector<64x128xf32> -> vector<64x128xf32>
    %7 = arith.addf %3, %6 : vector<64x128xf32>
    %c0_6 = arith.constant 0 : index
    %c0_7 = arith.constant 0 : index
    %8 = vector.load %arg7[%c0_6, %c0_7] : memref<64x128xf32, #tpu.memory_space<vmem>>, vector<64x128xf32>
    tpu.vector_store %arg7[%c0_6, %c0_7], %7 {strides = array<i32>} : memref<64x128xf32, #tpu.memory_space<vmem>>, vector<64x128xf32>,
    %c5_i32 = arith.constant 5 : i32
    %9 = arith.cmpi eq, %arg2, %c5_i32 : i32
    %10 = arith.extui %9 : i1 to i32
    %c0_i32_8 = arith.constant 0 : i32
    %11 = arith.cmpi ne, %10, %c0_i32_8 : i32
    scf.if %11 {
      %c0_9 = arith.constant 0 : index
      %c0_10 = arith.constant 0 : index
      %12 = vector.load %arg7[%c0_9, %c0_10] : memref<64x128xf32, #tpu.memory_space<vmem>>, vector<64x128xf32>
      %c0_11 = arith.constant 0 : index
      %c0_12 = arith.constant 0 : index
      %13 = vector.load %arg5[%c0_11, %c0_12] : memref<1x128xf32, #tpu.memory_space<vmem>>, vector<1x128xf32>
      %14 = vector.broadcast %13 : vector<1x128xf32> to vector<64x128xf32>
      %15 = arith.addf %12, %14 : vector<64x128xf32>
      %cst_13 = arith.constant 0.000000e+00 : f32
      %16 = vector.broadcast %cst_13 : f32 to vector<64x128xf32>
      %17 = arith.maximumf %15, %16 : vector<64x128xf32>
      %18 = arith.truncf %17 : vector<64x128xf32> to vector<64x128xbf16>
      %c0_14 = arith.constant 0 : index
      %c0_15 = arith.constant 0 : index
      %19 = vector.load %arg6[%c0_14, %c0_15] : memref<64x128xbf16, #tpu.memory_space<vmem>>, vector<64x128xbf16>
      tpu.vector_store %arg6[%c0_14, %c0_15], %18 {strides = array<i32>} : memref<64x128xbf16, #tpu.memory_space<vmem>>, vector<64x128xbf16>,
    } else {
    }
    return
  }
  func.func @transform_0(%arg0: i32, %arg1: i32, %arg2: i32) -> (i32, i32) {
    %c0_i32 = arith.constant 0 : i32
    return %arg0, %arg2 : i32, i32
  }
  func.func @transform_1(%arg0: i32, %arg1: i32, %arg2: i32) -> (i32, i32) {
    %c0_i32 = arith.constant 0 : i32
    return %arg2, %arg1 : i32, i32
  }
  func.func @transform_2(%arg0: i32, %arg1: i32, %arg2: i32) -> (i32, i32) {
    %c0_i32 = arith.constant 0 : i32
    %c0_i32_0 = arith.constant 0 : i32
    return %c0_i32, %arg1 : i32, i32
  }
  func.func @transform_3(%arg0: i32, %arg1: i32, %arg2: i32) -> (i32, i32) {
    %c0_i32 = arith.constant 0 : i32
    return %arg0, %arg1 : i32, i32
  }
}

module attributes {stable_mosaic.version = 11 : i64} {
  func.func @_matmul_bias_kernel(%arg0: i32, %arg1: i32, %arg2: i32, %arg3: memref<64x128xbf16, #tpu.memory_space<vmem>>, %arg4: memref<128x128xbf16, #tpu.memory_space<vmem>>, %arg5: memref<1x128xf32, #tpu.memory_space<vmem>>, %arg6: memref<64x128xf32, #tpu.memory_space<vmem>>, %arg7: memref<64x128xf32, #tpu.memory_space<vmem>>) attributes {dimension_semantics = [#tpu.dimension_semantics<parallel>, #tpu.dimension_semantics<parallel>, #tpu.dimension_semantics<arbitrary>], iteration_bounds = array<i64: 2, 1, 1>, scalar_prefetch = 0 : i64, scratch_operands = 1 : i64, tpu.core_type = #tpu.core_type<tc>, window_params = [{transform_indices = @transform_0, window_bounds = array<i64: 64, 128>}, {transform_indices = @transform_1, window_bounds = array<i64: 128, 128>}, {transform_indices = @transform_2, window_bounds = array<i64: 1, 128>}, {transform_indices = @transform_3, window_bounds = array<i64: 64, 128>}]} {
    %c0_i32 = arith.constant 0 : i32
    %0 = arith.cmpi eq, %arg2, %c0_i32 : i32
    %1 = arith.extui %0 : i1 to i32
    %c0_i32_0 = arith.constant 0 : i32
    %2 = arith.cmpi ne, %1, %c0_i32_0 : i32
    scf.if %2 {
      %cst_10 = arith.constant 0.000000e+00 : f32
      %12 = vector.broadcast %cst_10 : f32 to vector<64x128xf32>
      %c0_11 = arith.constant 0 : index
      %c0_12 = arith.constant 0 : index
      %13 = vector.load %arg7[%c0_11, %c0_12] : memref<64x128xf32, #tpu.memory_space<vmem>>, vector<64x128xf32>
      tpu.vector_store %arg7[%c0_11, %c0_12], %12 {strides = array<i32>} : memref<64x128xf32, #tpu.memory_space<vmem>>, vector<64x128xf32>,
    } else {
    }
    %c0 = arith.constant 0 : index
    %c0_1 = arith.constant 0 : index
    %3 = vector.load %arg7[%c0, %c0_1] : memref<64x128xf32, #tpu.memory_space<vmem>>, vector<64x128xf32>
    %c0_2 = arith.constant 0 : index
    %c0_3 = arith.constant 0 : index
    %4 = vector.load %arg3[%c0_2, %c0_3] : memref<64x128xbf16, #tpu.memory_space<vmem>>, vector<64x128xbf16>
    %c0_4 = arith.constant 0 : index
    %c0_5 = arith.constant 0 : index
    %5 = vector.load %arg4[%c0_4, %c0_5] : memref<128x128xbf16, #tpu.memory_space<vmem>>, vector<128x128xbf16>
    %cst = arith.constant dense<0.000000e+00> : vector<64x128xf32>
    %6 = tpu.matmul %4, %5, %cst {dimension_numbers = #tpu.dot_dimension_numbers<[1], [0], [0], [1], [0, 0, 1, 1], [], []>} : vector<64x128xbf16>, vector<128x128xbf16>, vector<64x128xf32> -> vector<64x128xf32>
    %7 = arith.addf %3, %6 : vector<64x128xf32>
    %c0_6 = arith.constant 0 : index
    %c0_7 = arith.constant 0 : index
    %8 = vector.load %arg7[%c0_6, %c0_7] : memref<64x128xf32, #tpu.memory_space<vmem>>, vector<64x128xf32>
    tpu.vector_store %arg7[%c0_6, %c0_7], %7 {strides = array<i32>} : memref<64x128xf32, #tpu.memory_space<vmem>>, vector<64x128xf32>,
    %c0_i32_8 = arith.constant 0 : i32
    %9 = arith.cmpi eq, %arg2, %c0_i32_8 : i32
    %10 = arith.extui %9 : i1 to i32
    %c0_i32_9 = arith.constant 0 : i32
    %11 = arith.cmpi ne, %10, %c0_i32_9 : i32
    scf.if %11 {
      %c0_10 = arith.constant 0 : index
      %c0_11 = arith.constant 0 : index
      %12 = vector.load %arg7[%c0_10, %c0_11] : memref<64x128xf32, #tpu.memory_space<vmem>>, vector<64x128xf32>
      %c0_12 = arith.constant 0 : index
      %c0_13 = arith.constant 0 : index
      %13 = vector.load %arg5[%c0_12, %c0_13] : memref<1x128xf32, #tpu.memory_space<vmem>>, vector<1x128xf32>
      %14 = vector.broadcast %13 : vector<1x128xf32> to vector<64x128xf32>
      %15 = arith.addf %12, %14 : vector<64x128xf32>
      %c0_14 = arith.constant 0 : index
      %c0_15 = arith.constant 0 : index
      %16 = vector.load %arg6[%c0_14, %c0_15] : memref<64x128xf32, #tpu.memory_space<vmem>>, vector<64x128xf32>
      tpu.vector_store %arg6[%c0_14, %c0_15], %15 {strides = array<i32>} : memref<64x128xf32, #tpu.memory_space<vmem>>, vector<64x128xf32>,
    } else {
    }
    return
  }
  func.func @transform_0(%arg0: i32, %arg1: i32, %arg2: i32) -> (i32, i32) {
    %c0_i32 = arith.constant 0 : i32
    return %arg0, %arg2 : i32, i32
  }
  func.func @transform_1(%arg0: i32, %arg1: i32, %arg2: i32) -> (i32, i32) {
    %c0_i32 = arith.constant 0 : i32
    return %arg2, %arg1 : i32, i32
  }
  func.func @transform_2(%arg0: i32, %arg1: i32, %arg2: i32) -> (i32, i32) {
    %c0_i32 = arith.constant 0 : i32
    %c0_i32_0 = arith.constant 0 : i32
    return %c0_i32, %arg1 : i32, i32
  }
  func.func @transform_3(%arg0: i32, %arg1: i32, %arg2: i32) -> (i32, i32) {
    %c0_i32 = arith.constant 0 : i32
    return %arg0, %arg1 : i32, i32
  }
}

module attributes {stable_mosaic.version = 11 : i64} {
  func.func @_matmul_bias_kernel(%arg0: i32, %arg1: i32, %arg2: i32, %arg3: memref<8x128xbf16, #tpu.memory_space<vmem>>, %arg4: memref<128x128xbf16, #tpu.memory_space<vmem>>, %arg5: memref<1x128xf32, #tpu.memory_space<vmem>>, %arg6: memref<8x128xf32, #tpu.memory_space<vmem>>, %arg7: memref<8x128xf32, #tpu.memory_space<vmem>>) attributes {dimension_semantics = [#tpu.dimension_semantics<parallel>, #tpu.dimension_semantics<parallel>, #tpu.dimension_semantics<arbitrary>], iteration_bounds = array<i64: 1, 1, 1>, scalar_prefetch = 0 : i64, scratch_operands = 1 : i64, tpu.core_type = #tpu.core_type<tc>, window_params = [{transform_indices = @transform_0, window_bounds = array<i64: 8, 128>}, {transform_indices = @transform_1, window_bounds = array<i64: 128, 128>}, {transform_indices = @transform_2, window_bounds = array<i64: 1, 128>}, {transform_indices = @transform_3, window_bounds = array<i64: 8, 128>}]} {
    %c0_i32 = arith.constant 0 : i32
    %0 = arith.cmpi eq, %arg2, %c0_i32 : i32
    %1 = arith.extui %0 : i1 to i32
    %c0_i32_0 = arith.constant 0 : i32
    %2 = arith.cmpi ne, %1, %c0_i32_0 : i32
    scf.if %2 {
      %cst_10 = arith.constant 0.000000e+00 : f32
      %12 = vector.broadcast %cst_10 : f32 to vector<8x128xf32>
      %c0_11 = arith.constant 0 : index
      %c0_12 = arith.constant 0 : index
      %13 = vector.load %arg7[%c0_11, %c0_12] : memref<8x128xf32, #tpu.memory_space<vmem>>, vector<8x128xf32>
      tpu.vector_store %arg7[%c0_11, %c0_12], %12 {strides = array<i32>} : memref<8x128xf32, #tpu.memory_space<vmem>>, vector<8x128xf32>,
    } else {
    }
    %c0 = arith.constant 0 : index
    %c0_1 = arith.constant 0 : index
    %3 = vector.load %arg7[%c0, %c0_1] : memref<8x128xf32, #tpu.memory_space<vmem>>, vector<8x128xf32>
    %c0_2 = arith.constant 0 : index
    %c0_3 = arith.constant 0 : index
    %4 = vector.load %arg3[%c0_2, %c0_3] : memref<8x128xbf16, #tpu.memory_space<vmem>>, vector<8x128xbf16>
    %c0_4 = arith.constant 0 : index
    %c0_5 = arith.constant 0 : index
    %5 = vector.load %arg4[%c0_4, %c0_5] : memref<128x128xbf16, #tpu.memory_space<vmem>>, vector<128x128xbf16>
    %cst = arith.constant dense<0.000000e+00> : vector<8x128xf32>
    %6 = tpu.matmul %4, %5, %cst {dimension_numbers = #tpu.dot_dimension_numbers<[1], [0], [0], [1], [0, 0, 1, 1], [], []>} : vector<8x128xbf16>, vector<128x128xbf16>, vector<8x128xf32> -> vector<8x128xf32>
    %7 = arith.addf %3, %6 : vector<8x128xf32>
    %c0_6 = arith.constant 0 : index
    %c0_7 = arith.constant 0 : index
    %8 = vector.load %arg7[%c0_6, %c0_7] : memref<8x128xf32, #tpu.memory_space<vmem>>, vector<8x128xf32>
    tpu.vector_store %arg7[%c0_6, %c0_7], %7 {strides = array<i32>} : memref<8x128xf32, #tpu.memory_space<vmem>>, vector<8x128xf32>,
    %c0_i32_8 = arith.constant 0 : i32
    %9 = arith.cmpi eq, %arg2, %c0_i32_8 : i32
    %10 = arith.extui %9 : i1 to i32
    %c0_i32_9 = arith.constant 0 : i32
    %11 = arith.cmpi ne, %10, %c0_i32_9 : i32
    scf.if %11 {
      %c0_10 = arith.constant 0 : index
      %c0_11 = arith.constant 0 : index
      %12 = vector.load %arg7[%c0_10, %c0_11] : memref<8x128xf32, #tpu.memory_space<vmem>>, vector<8x128xf32>
      %c0_12 = arith.constant 0 : index
      %c0_13 = arith.constant 0 : index
      %13 = vector.load %arg5[%c0_12, %c0_13] : memref<1x128xf32, #tpu.memory_space<vmem>>, vector<1x128xf32>
      %14 = vector.broadcast %13 : vector<1x128xf32> to vector<8x128xf32>
      %15 = arith.addf %12, %14 : vector<8x128xf32>
      %c0_14 = arith.constant 0 : index
      %c0_15 = arith.constant 0 : index
      %16 = vector.load %arg6[%c0_14, %c0_15] : memref<8x128xf32, #tpu.memory_space<vmem>>, vector<8x128xf32>
      tpu.vector_store %arg6[%c0_14, %c0_15], %15 {strides = array<i32>} : memref<8x128xf32, #tpu.memory_space<vmem>>, vector<8x128xf32>,
    } else {
    }
    return
  }
  func.func @transform_0(%arg0: i32, %arg1: i32, %arg2: i32) -> (i32, i32) {
    %c0_i32 = arith.constant 0 : i32
    return %arg0, %arg2 : i32, i32
  }
  func.func @transform_1(%arg0: i32, %arg1: i32, %arg2: i32) -> (i32, i32) {
    %c0_i32 = arith.constant 0 : i32
    return %arg2, %arg1 : i32, i32
  }
  func.func @transform_2(%arg0: i32, %arg1: i32, %arg2: i32) -> (i32, i32) {
    %c0_i32 = arith.constant 0 : i32
    %c0_i32_0 = arith.constant 0 : i32
    return %c0_i32, %arg1 : i32, i32
  }
  func.func @transform_3(%arg0: i32, %arg1: i32, %arg2: i32) -> (i32, i32) {
    %c0_i32 = arith.constant 0 : i32
    return %arg0, %arg1 : i32, i32
  }
}

</mosaic_0001>

<bundles_post_ra>
// kernel: modified_deeplabv3_plus_forward.17
= control target key start
LH: loop header
LB: loop body
LE: loop exit
PB: predicated region body
PF: predicated region fallthrough
CT: control target
= control target key end

     0   :  { %s1271_s12 = smov 0   ;;  %s1273_s13 = smov 0   ;;  %s1411_s0 = inlined_call_operand.vmem [shape: bf16[512,128], index: 0, kind: input, shape index: {}]   ;;  %s1412_s1 = inlined_call_operand.vmem [shape: bf16[128,128], index: 1, kind: input, shape index: {}]   ;;  %s1413_s2 = inlined_call_operand.vmem [shape: f32[1,128], index: 2, kind: input, shape index: {}]   ;;  %s1414_s3 = inlined_call_operand.vmem [shape: bf16[512,128], index: 3, kind: output, shape index: {}]  }
   0x1   :  { %s1275_s14 = smov 0  }
   0x2 LB: > { %s32_s15 = sadd.s32 1, %s1245_s13  ;;  %p956_p0 = scmp.ge.s32.totalorder %s1249_s14, 1  ;;  %s1249_s14 = sphi %s1275_s14, %s13_s14   ;;  %s1245_s13 = sphi %s1273_s13, %s1416_s13   ;;  %s1241_s12 = sphi %s1271_s12, %s1415_s12  }
   0x3   : > { %p34_p1 = scmp.ge.s32.totalorder %s32_s15, 2  ;;  %p188_p2 = scmp.lt.s32.totalorder %s1249_s14, 3 }
   0x5   : > { %s1418_s15 = smov (%p34_p1, %s32_s15), 0  ;;  %p189_p3 = pnand %p956_p0, %p188_p2 }
   0x6   : > { %s957_s24 = sshll.u32 (!%p189_p3), %s1241_s12, 5 }
   0x7   : > { %192 = sbr.rel (%p189_p3) target bundleno = 241 (0xf1), region = 32  ;;  %p230_p4 = scmp.lt.s32.totalorder (!%p189_p3), %s957_s24, 63 }
   0xc   : > { %v1082_v0 = vld [vmem:[%s1412_s1 + $0x38] sm:$0xff]  ;;  %v1081_v1 = vld [vmem:[%s1412_s1 + $0x30] sm:$0xff]  ;;  %v1080_v2 = vld [vmem:[%s1412_s1 + $0x28] sm:$0xff]  ;;  %s1420_s24 = smov (!%p230_p4, %s957_s24), 63 }
   0xd   : > { %519 = vmatpush.bf16.msra.mxu0 %v1082_v0  ;;  %1178 = vmatpush.bf16.msra.mxu1 %v1082_v0  ;;  %v1079_v3 = vld [vmem:[%s1412_s1 + $0x20] sm:$0xff]  ;;  %v1078_v4 = vld [vmem:[%s1412_s1 + $0x18] sm:$0xff]  ;;  %v1077_v5 = vld [vmem:[%s1412_s1 + $0x10] sm:$0xff]  ;;  %s958_s4 = sshll.u32 %s1420_s24, 2 }
   0xe   : > { %1179 = vmatpush.bf16.msra.mxu2 %v1082_v0  ;;  %1180 = vmatpush.bf16.msra.mxu3 %v1082_v0  ;;  %v1076_v6 = vld [vmem:[%s1412_s1 + $0x8] sm:$0xff]  ;;  %v1075_v7 = vld [vmem:[%s1412_s1] sm:$0xff]  ;;  %s1324_s9 = scalar_lea.vmem %s1411_s0, %s958_s4  ;;  %s1356_s17 = scalar_lea.vmem %s1414_s3, %s958_s4 }
   0xf   : > { %v1059_v8 = vld [vmem:[%s1324_s9] sm:$0xff]  ;;  %v1060_v12 = vld [vmem:[%s1324_s9 + $0x8] sm:$0xff]  ;;  %v1061_v16 = vld [vmem:[%s1324_s9 + $0x10] sm:$0xff] }
  0x10   : > { %v1063_v9 = vld [vmem:[%s1324_s9 + $0x20] sm:$0xff]  ;;  %v1064_v13 = vld [vmem:[%s1324_s9 + $0x28] sm:$0xff]  ;;  %v1065_v17 = vld [vmem:[%s1324_s9 + $0x30] sm:$0xff] }
  0x11   : > { %520 = vmatpush.bf16.msra.mxu0 %v1081_v1  ;;  %1181 = vmatpush.bf16.msra.mxu1 %v1081_v1  ;;  %v1067_v10 = vld [vmem:[%s1324_s9 + $0x40] sm:$0xff]  ;;  %v1068_v14 = vld [vmem:[%s1324_s9 + $0x48] sm:$0xff]  ;;  %v1069_v18 = vld [vmem:[%s1324_s9 + $0x50] sm:$0xff] }
  0x12   : > { %1182 = vmatpush.bf16.msra.mxu2 %v1081_v1  ;;  %1183 = vmatpush.bf16.msra.mxu3 %v1081_v1  ;;  %v1071_v11 = vld [vmem:[%s1324_s9 + $0x60] sm:$0xff]  ;;  %v1072_v15 = vld [vmem:[%s1324_s9 + $0x68] sm:$0xff]  ;;  %v1073_v19 = vld [vmem:[%s1324_s9 + $0x70] sm:$0xff] }
  0x13   : > { %v1062_v20 = vld [vmem:[%s1324_s9 + $0x18] sm:$0xff]  ;;  %v1345_v26 = vld [vmem:[%s1413_s2] ss:$0 sm:$0xff] }
  0x14   : > { %v1066_v21 = vld [vmem:[%s1324_s9 + $0x38] sm:$0xff] }
  0x15   : > { %521 = vmatpush.bf16.msra.mxu0 %v1080_v2  ;;  %1184 = vmatpush.bf16.msra.mxu1 %v1080_v2  ;;  %v1070_v22 = vld [vmem:[%s1324_s9 + $0x58] sm:$0xff] }
  0x16   : > { %1185 = vmatpush.bf16.msra.mxu2 %v1080_v2  ;;  %1186 = vmatpush.bf16.msra.mxu3 %v1080_v2  ;;  %v1074_v23 = vld [vmem:[%s1324_s9 + $0x78] sm:$0xff] }
  0x19   : > { %522 = vmatpush.bf16.msra.mxu0 %v1079_v3  ;;  %1187 = vmatpush.bf16.msra.mxu1 %v1079_v3 }
  0x1a   : > { %1188 = vmatpush.bf16.msra.mxu2 %v1079_v3  ;;  %1189 = vmatpush.bf16.msra.mxu3 %v1079_v3 }
  0x1d   : > { %523 = vmatpush.bf16.msra.mxu0 %v1078_v4  ;;  %1190 = vmatpush.bf16.msra.mxu1 %v1078_v4 }
  0x1e   : > { %1191 = vmatpush.bf16.msra.mxu2 %v1078_v4  ;;  %1192 = vmatpush.bf16.msra.mxu3 %v1078_v4 }
  0x21   : > { %524 = vmatpush.bf16.msra.mxu0 %v1077_v5  ;;  %1193 = vmatpush.bf16.msra.mxu1 %v1077_v5 }
  0x22   : > { %1194 = vmatpush.bf16.msra.mxu2 %v1077_v5  ;;  %1195 = vmatpush.bf16.msra.mxu3 %v1077_v5 }
  0x25   : > { %525 = vmatpush.bf16.msra.mxu0 %v1076_v6  ;;  %1196 = vmatpush.bf16.msra.mxu1 %v1076_v6 }
  0x26   : > { %1197 = vmatpush.bf16.msra.mxu2 %v1076_v6  ;;  %1198 = vmatpush.bf16.msra.mxu3 %v1076_v6 }
  0x29   : > { %526 = vmatpush.bf16.msra.mxu0 %v1075_v7  ;;  %1199 = vmatpush.bf16.msra.mxu1 %v1075_v7 }
  0x2a   : > { %1200 = vmatpush.bf16.msra.mxu2 %v1075_v7  ;;  %1201 = vmatpush.bf16.msra.mxu3 %v1075_v7 }
  0x2c   : > { %527 = vmatmul.bf16.vlgmr.msra.gmra.mxu0 %v1059_v8  ;;  %547 = vmatmul.bf16.vlgmr.msra.gmra.mxu1 %v1063_v9 }
  0x2d   : > { %567 = vmatmul.bf16.vlgmr.msra.gmra.mxu2 %v1067_v10  ;;  %587 = vmatmul.bf16.vlgmr.msra.gmra.mxu3 %v1071_v11 }
  0x3c   : > { %532 = vmatmul.bf16.gmra.mxu0 %v1060_v12  ;;  %552 = vmatmul.bf16.gmra.mxu1 %v1064_v13 }
  0x3d   : > { %572 = vmatmul.bf16.gmra.mxu2 %v1068_v14  ;;  %592 = vmatmul.bf16.gmra.mxu3 %v1072_v15 }
  0x4c   : > { %537 = vmatmul.bf16.gmra.mxu0 %v1061_v16  ;;  %557 = vmatmul.bf16.gmra.mxu1 %v1065_v17 }
  0x4d   : > { %577 = vmatmul.bf16.gmra.mxu2 %v1069_v18  ;;  %597 = vmatmul.bf16.gmra.mxu3 %v1073_v19 }
  0x5c   : > { %542 = vmatmul.bf16.gmra.mxu0 %v1062_v20  ;;  %562 = vmatmul.bf16.gmra.mxu1 %v1066_v21 }
  0x5d   : > { %582 = vmatmul.bf16.gmra.mxu2 %v1070_v22  ;;  %602 = vmatmul.bf16.gmra.mxu3 %v1074_v23 }
  0xa9   : > { %v528_v24 = vpop.f32.mrf.mxu0  ;;  %v548_v25 = vpop.f32.mrf.mxu1 }
  0xaa   : > { %v711_v27 = vadd.f32 %v1345_v26, %v528_v24  ;;  %v719_v28 = vadd.f32 %v1345_v26, %v548_v25 }
  0xac   : > { %v743_v35 = vmax.f32 %v711_v27, 0.0  ;;  %v751_v36 = vmax.f32 %v719_v28, 0.0 }
  0xb0   : > { %v568_v29 = vpop.f32.mrf.mxu2  ;;  %v588_v30 = vpop.f32.mrf.mxu3 }
  0xb1   : > { %v530_v31 = vpop.f32.mrf.mxu0  ;;  %v550_v32 = vpop.f32.mrf.mxu1  ;;  %v727_v41 = vadd.f32 %v1345_v26, %v568_v29  ;;  %v735_v42 = vadd.f32 %v1345_v26, %v588_v30 }
  0xb2   : > { %v712_v33 = vadd.f32 %v1345_v26, %v530_v31  ;;  %v720_v34 = vadd.f32 %v1345_v26, %v550_v32 }
  0xb3   : > { %v759_v49 = vmax.f32 %v727_v41, 0.0  ;;  %v767_v50 = vmax.f32 %v735_v42, 0.0 }
  0xb4   : > { %v744_v37 = vmax.f32 %v712_v33, 0.0  ;;  %v752_v38 = vmax.f32 %v720_v34, 0.0 }
  0xb6   : > { %v1086_v39 = vpack.c.bf16 %v744_v37, %v743_v35  ;;  %v1106_v40 = vpack.c.bf16 %v752_v38, %v751_v36 }
  0xb8   : > { %1087 = vst [vmem:[%s1356_s17] sm:$0xff] %v1086_v39   ;;  %v570_v43 = vpop.f32.mrf.mxu2  ;;  %v590_v44 = vpop.f32.mrf.mxu3 }
  0xb9   : > { %1166 = vst [vmem:[%s1356_s17 + $0x20] sm:$0xff] %v1106_v40   ;;  %v728_v45 = vadd.f32 %v1345_v26, %v570_v43  ;;  %v736_v46 = vadd.f32 %v1345_v26, %v590_v44  ;;  %v533_v47 = vpop.f32.mrf.mxu0  ;;  %v553_v48 = vpop.f32.mrf.mxu1 }
  0xba   : > { %v713_v55 = vadd.f32 %v1345_v26, %v533_v47  ;;  %v721_v56 = vadd.f32 %v1345_v26, %v553_v48 }
  0xbb   : > { %v760_v51 = vmax.f32 %v728_v45, 0.0  ;;  %v768_v52 = vmax.f32 %v736_v46, 0.0 }
  0xbc   : > { %v745_v63 = vmax.f32 %v713_v55, 0.0  ;;  %v753_v0 = vmax.f32 %v721_v56, 0.0 }
  0xbd   : > { %v1126_v53 = vpack.c.bf16 %v760_v51, %v759_v49  ;;  %v1146_v54 = vpack.c.bf16 %v768_v52, %v767_v50 }
  0xbf   : > { %1170 = vst [vmem:[%s1356_s17 + $0x40] sm:$0xff] %v1126_v53  }
  0xc0   : > { %1174 = vst [vmem:[%s1356_s17 + $0x60] sm:$0xff] %v1146_v54   ;;  %v573_v57 = vpop.f32.mrf.mxu2  ;;  %v593_v58 = vpop.f32.mrf.mxu3 }
  0xc1   : > { %v535_v59 = vpop.f32.mrf.mxu0  ;;  %v555_v60 = vpop.f32.mrf.mxu1  ;;  %v729_v5 = vadd.f32 %v1345_v26, %v573_v57  ;;  %v737_v6 = vadd.f32 %v1345_v26, %v593_v58 }
  0xc2   : > { %v714_v61 = vadd.f32 %v1345_v26, %v535_v59  ;;  %v722_v62 = vadd.f32 %v1345_v26, %v555_v60 }
  0xc3   : > { %v761_v13 = vmax.f32 %v729_v5, 0.0  ;;  %v769_v14 = vmax.f32 %v737_v6, 0.0 }
  0xc4   : > { %v746_v1 = vmax.f32 %v714_v61, 0.0  ;;  %v754_v2 = vmax.f32 %v722_v62, 0.0 }
  0xc6   : > { %v1091_v3 = vpack.c.bf16 %v746_v1, %v745_v63  ;;  %v1111_v4 = vpack.c.bf16 %v754_v2, %v753_v0 }
  0xc8   : > { %1163 = vst [vmem:[%s1356_s17 + $0x8] sm:$0xff] %v1091_v3   ;;  %v575_v7 = vpop.f32.mrf.mxu2  ;;  %v595_v8 = vpop.f32.mrf.mxu3 }
  0xc9   : > { %1167 = vst [vmem:[%s1356_s17 + $0x28] sm:$0xff] %v1111_v4   ;;  %v730_v9 = vadd.f32 %v1345_v26, %v575_v7  ;;  %v738_v10 = vadd.f32 %v1345_v26, %v595_v8  ;;  %v538_v11 = vpop.f32.mrf.mxu0  ;;  %v558_v12 = vpop.f32.mrf.mxu1 }
  0xca   : > { %v715_v19 = vadd.f32 %v1345_v26, %v538_v11  ;;  %v723_v20 = vadd.f32 %v1345_v26, %v558_v12 }
  0xcb   : > { %v762_v15 = vmax.f32 %v730_v9, 0.0  ;;  %v770_v16 = vmax.f32 %v738_v10, 0.0 }
  0xcc   : > { %v747_v28 = vmax.f32 %v715_v19, 0.0  ;;  %v755_v29 = vmax.f32 %v723_v20, 0.0 }
  0xcd   : > { %v1131_v17 = vpack.c.bf16 %v762_v15, %v761_v13  ;;  %v1151_v18 = vpack.c.bf16 %v770_v16, %v769_v14 }
  0xcf   : > { %1171 = vst [vmem:[%s1356_s17 + $0x48] sm:$0xff] %v1131_v17  }
  0xd0   : > { %1175 = vst [vmem:[%s1356_s17 + $0x68] sm:$0xff] %v1151_v18   ;;  %v578_v21 = vpop.f32.mrf.mxu2  ;;  %v598_v22 = vpop.f32.mrf.mxu3 }
  0xd1   : > { %v540_v23 = vpop.f32.mrf.mxu0  ;;  %v560_v24 = vpop.f32.mrf.mxu1  ;;  %v731_v34 = vadd.f32 %v1345_v26, %v578_v21  ;;  %v739_v35 = vadd.f32 %v1345_v26, %v598_v22 }
  0xd2   : > { %v716_v25 = vadd.f32 %v1345_v26, %v540_v23  ;;  %v724_v27 = vadd.f32 %v1345_v26, %v560_v24 }
  0xd3   : > { %v763_v42 = vmax.f32 %v731_v34, 0.0  ;;  %v771_v43 = vmax.f32 %v739_v35, 0.0 }
  0xd4   : > { %v748_v30 = vmax.f32 %v716_v25, 0.0  ;;  %v756_v31 = vmax.f32 %v724_v27, 0.0 }
  0xd6   : > { %v1096_v32 = vpack.c.bf16 %v748_v30, %v747_v28  ;;  %v1116_v33 = vpack.c.bf16 %v756_v31, %v755_v29 }
  0xd8   : > { %1164 = vst [vmem:[%s1356_s17 + $0x10] sm:$0xff] %v1096_v32   ;;  %v580_v36 = vpop.f32.mrf.mxu2  ;;  %v600_v37 = vpop.f32.mrf.mxu3 }
  0xd9   : > { %1168 = vst [vmem:[%s1356_s17 + $0x30] sm:$0xff] %v1116_v33   ;;  %v732_v38 = vadd.f32 %v1345_v26, %v580_v36  ;;  %v740_v39 = vadd.f32 %v1345_v26, %v600_v37  ;;  %v543_v40 = vpop.f32.mrf.mxu0  ;;  %v563_v41 = vpop.f32.mrf.mxu1 }
  0xda   : > { %v717_v48 = vadd.f32 %v1345_v26, %v543_v40  ;;  %v725_v49 = vadd.f32 %v1345_v26, %v563_v41 }
  0xdb   : > { %v764_v44 = vmax.f32 %v732_v38, 0.0  ;;  %v772_v45 = vmax.f32 %v740_v39, 0.0 }
  0xdc   : > { %v749_v56 = vmax.f32 %v717_v48, 0.0  ;;  %v757_v57 = vmax.f32 %v725_v49, 0.0 }
  0xdd   : > { %v1136_v46 = vpack.c.bf16 %v764_v44, %v763_v42  ;;  %v1156_v47 = vpack.c.bf16 %v772_v45, %v771_v43 }
  0xdf   : > { %1172 = vst [vmem:[%s1356_s17 + $0x50] sm:$0xff] %v1136_v46  }
  0xe0   : > { %1176 = vst [vmem:[%s1356_s17 + $0x70] sm:$0xff] %v1156_v47   ;;  %v583_v50 = vpop.f32.mrf.mxu2  ;;  %v603_v51 = vpop.f32.mrf.mxu3 }
  0xe1   : > { %v545_v52 = vpop.f32.mrf.mxu0  ;;  %v565_v53 = vpop.f32.mrf.mxu1  ;;  %v733_v62 = vadd.f32 %v1345_v26, %v583_v50  ;;  %v741_v63 = vadd.f32 %v1345_v26, %v603_v51 }
  0xe2   : > { %v718_v54 = vadd.f32 %v1345_v26, %v545_v52  ;;  %v726_v55 = vadd.f32 %v1345_v26, %v565_v53 }
  0xe3   : > { %v765_v4 = vmax.f32 %v733_v62, 0.0  ;;  %v773_v5 = vmax.f32 %v741_v63, 0.0 }
  0xe4   : > { %v750_v58 = vmax.f32 %v718_v54, 0.0  ;;  %v758_v59 = vmax.f32 %v726_v55, 0.0 }
  0xe6   : > { %v1101_v60 = vpack.c.bf16 %v750_v58, %v749_v56  ;;  %v1121_v61 = vpack.c.bf16 %v758_v59, %v757_v57 }
  0xe8   : > { %1165 = vst [vmem:[%s1356_s17 + $0x18] sm:$0xff] %v1101_v60   ;;  %v585_v0 = vpop.f32.mrf.mxu2  ;;  %v605_v1 = vpop.f32.mrf.mxu3 }
  0xe9   : > { %1169 = vst [vmem:[%s1356_s17 + $0x38] sm:$0xff] %v1121_v61   ;;  %v734_v2 = vadd.f32 %v1345_v26, %v585_v0  ;;  %v742_v3 = vadd.f32 %v1345_v26, %v605_v1 }
  0xeb   : > { %v766_v6 = vmax.f32 %v734_v2, 0.0  ;;  %v774_v7 = vmax.f32 %v742_v3, 0.0 }
  0xed   : > { %v1141_v8 = vpack.c.bf16 %v766_v6, %v765_v4  ;;  %v1161_v9 = vpack.c.bf16 %v774_v7, %v773_v5 }
  0xef   : > { %1173 = vst [vmem:[%s1356_s17 + $0x58] sm:$0xff] %v1141_v8  }
  0xf0   : > { %1177 = vst [vmem:[%s1356_s17 + $0x78] sm:$0xff] %v1161_v9  }
  0xf1 PF: > { %s13_s14 = sadd.s32 1, %s1249_s14   ;;  %s1415_s12 = smov %s1245_s13 }
  0xf2   : > { %p10_p5 = scmp.ge.s32.totalorder %s13_s14, 4   ;;  %s1416_s13 = smov %s1418_s15 }
  0xf4   :  { %12 = sbr.rel (!%p10_p5) target bundleno = 2 (0x2), region = 76 }

// kernel: modified_deeplabv3_plus_forward.18
= control target key start
LH: loop header
LB: loop body
LE: loop exit
PB: predicated region body
PF: predicated region fallthrough
CT: control target
= control target key end

     0   :  { %s1258_s12 = smov 0   ;;  %s1260_s13 = smov 0   ;;  %s1431_s0 = inlined_call_operand.vmem [shape: bf16[128,1152], index: 0, kind: input, shape index: {}]   ;;  %s1432_s1 = inlined_call_operand.vmem [shape: bf16[1152,128], index: 1, kind: input, shape index: {}]   ;;  %s1433_s2 = inlined_call_operand.vmem [shape: f32[1,128], index: 2, kind: input, shape index: {}]   ;;  %s1434_s3 = inlined_call_operand.vmem [shape: bf16[128,128], index: 3, kind: output, shape index: {}]  }
   0x1   :  { %s1262_s14 = smov 0   ;;  %s1264_s15 = smov 0  }
   0x2   :  { %s1266_s16 = smov 0   ;;  %s1268_s17 = smov 0  }
   0x3   :  { %s1270_s18 = smov 0  }
   0x4 LB: > { %s25_s19 = sadd.s32 1, %s1227_s16  ;;  %s32_s20 = sadd.s32 1, %s1231_s17  ;;  %s1235_s18 = sphi %s1270_s18, %s13_s18   ;;  %s1231_s17 = sphi %s1268_s17, %s1440_s17   ;;  %s1227_s16 = sphi %s1266_s16, %s1439_s16   ;;  %s1223_s15 = sphi %s1264_s15, %s1438_s15   ;;  %s1219_s14 = sphi %s1262_s14, %s1437_s14   ;;  %s1215_s13 = sphi %s1260_s13, %s1436_s13   ;;  %s1211_s12 = sphi %s1258_s12, %s1435_s12  }
   0x5   : > { %p26_p0 = scmp.ge.s32.totalorder %s25_s19, 3  ;;  %p48_p1 = scmp.ne.s32.totalorder %s1215_s13, %s1211_s12 }
   0x6   : > { %p49_p2 = scmp.eq.s32.totalorder %s1235_s18, 0  ;;  %s41_s24 = sadd.s32 1, %s1215_s13 }
   0x7   : > { %s1442_s19 = smov (%p26_p0, %s25_s19), 0  ;;  %s1444_s20 = smov (!%p26_p0, %s32_s20), %s1231_s17 }
   0x8   : > { %p50_p3 = por %p49_p2, %p48_p1  ;;  %p34_p4 = scmp.ge.s32.totalorder %s1444_s20, 2 }
   0x9   : > { %s37_s21 = ssub.s32 %s1227_s16, %s1442_s19  ;;  %p881_p6 = scmp.ge.s32.totalorder %s1235_s18, 6 }
   0xa   : > { %s1446_s20 = smov (%p34_p4, %s1444_s20), 0 }
   0xb   : > { %s36_s22 = ssub.s32 %s1231_s17, %s1446_s20  ;;  %162 = sbr.rel (%p881_p6) target bundleno = 41 (0x29), region = 20 }
   0xc   : > { %s38_s23 = sor.u32 %s37_s21, %s36_s22 }
   0xd   : > { %p39_p5 = scmp.eq.s32.totalorder %s38_s23, 0 }
   0xf   : > { %s1309_s25 = scalar_select %p39_p5, %s1215_s13, %s41_s24  }
  0x10   : > { %165 = sbr.rel (!%p50_p3) target bundleno = 41 (0x29), region = 24  ;;  %s167_s26 = sand.u32 (%p50_p3), 1, %s1215_s13  }
  0x11   : > { %s171_s27 = smul.u32 (%p50_p3), 3, %s1227_s16 }
  0x12   : > { %s1120_s28 = smul.u32 (%p50_p3), 96, %s167_s26 }
  0x13   : > { %s1121_s29 = smul.u32 (%p50_p3), 72, %s1231_s17 }
  0x14   : > { %s169_s8 = scalar_lea.vmem (%p50_p3), [#allocation3], %s1120_s28 }
  0x15   : > { %s173_s30 = sadd.s32 %s1121_s29, %s171_s27 }
  0x16   : > { %s884_s4 = sshll.u32 %s173_s30, 2 }
  0x17   : > { %s1318_s7 = scalar_lea.vmem %s1431_s0, %s884_s4 }
  0x18   : > { %v190_v0 = vld [vmem:[%s1318_s7] sm:$0xff]  ;;  %v194_v2 = vld [vmem:[%s1318_s7 + $0x48] sm:$0xff]  ;;  %v198_v4 = vld [vmem:[%s1318_s7 + $0x90] sm:$0xff] }
  0x19   : > { %v192_v1 = vld [vmem:[%s1318_s7 + $0x24] sm:$0xff]  ;;  %191 = vst [vmem:[%s169_s8] sm:$0xff] %v190_v0  ;;  %v196_v3 = vld [vmem:[%s1318_s7 + $0x6c] sm:$0xff]  ;;  %v200_v5 = vld [vmem:[%s1318_s7 + $0xb4] sm:$0xff] }
  0x1a   : > { %193 = vst [vmem:[%s169_s8 + $0xc] sm:$0xff] %v192_v1  ;;  %v202_v6 = vld [vmem:[%s1318_s7 + $0xd8] sm:$0xff]  ;;  %v885_v8 = vld [vmem:[%s1318_s7 + $0x8] sm:$0xf]  ;;  %v887_v9 = vld [vmem:[%s1318_s7 + $0x2c] sm:$0xf] }
  0x1b   : > { %195 = vst [vmem:[%s169_s8 + $0x18] sm:$0xff] %v194_v2  ;;  %v204_v7 = vld [vmem:[%s1318_s7 + $0xfc] sm:$0xff]  ;;  %v889_v10 = vld [vmem:[%s1318_s7 + $0x50] sm:$0xf]  ;;  %v891_v11 = vld [vmem:[%s1318_s7 + $0x74] sm:$0xf] }
  0x1c   : > { %197 = vst [vmem:[%s169_s8 + $0x24] sm:$0xff] %v196_v3  ;;  %v893_v12 = vld [vmem:[%s1318_s7 + $0x98] sm:$0xf]  ;;  %v895_v13 = vld [vmem:[%s1318_s7 + $0xbc] sm:$0xf] }
  0x1d   : > { %199 = vst [vmem:[%s169_s8 + $0x30] sm:$0xff] %v198_v4  ;;  %v897_v14 = vld [vmem:[%s1318_s7 + $0xe0] sm:$0xf]  ;;  %v899_v15 = vld [vmem:[%s1318_s7 + $0x104] sm:$0xf] }
  0x1e   : > { %201 = vst [vmem:[%s169_s8 + $0x3c] sm:$0xff] %v200_v5 }
  0x1f   : > { %203 = vst [vmem:[%s169_s8 + $0x48] sm:$0xff] %v202_v6 }
  0x20   : > { %205 = vst [vmem:[%s169_s8 + $0x54] sm:$0xff] %v204_v7 }
  0x21   : > { %886 = vst [vmem:[%s169_s8 + $0x8] sm:$0xf] %v885_v8 }
  0x22   : > { %888 = vst [vmem:[%s169_s8 + $0x14] sm:$0xf] %v887_v9 }
  0x23   : > { %890 = vst [vmem:[%s169_s8 + $0x20] sm:$0xf] %v889_v10 }
  0x24   : > { %892 = vst [vmem:[%s169_s8 + $0x2c] sm:$0xf] %v891_v11 }
  0x25   : > { %894 = vst [vmem:[%s169_s8 + $0x38] sm:$0xf] %v893_v12 }
  0x26   : > { %896 = vst [vmem:[%s169_s8 + $0x44] sm:$0xf] %v895_v13 }
  0x27   : > { %898 = vst [vmem:[%s169_s8 + $0x50] sm:$0xf] %v897_v14 }
  0x28   : > { %900 = vst [vmem:[%s169_s8 + $0x5c] sm:$0xf] %v899_v15 }
  0x29 PF: > { %p901_p7 = scmp.ge.s32.totalorder %s1235_s18, 1  ;;  %p246_p8 = scmp.lt.s32.totalorder %s1235_s18, 7 }
  0x2b   : > { %p247_p9 = pnand %p901_p7, %p246_p8 }
  0x2c   : > { %s253_s9 = sand.u32 (!%p247_p9), 1, %s1211_s12   ;;  %s292_s10 = smul.u32 (!%p247_p9), 48, %s1219_s14 }
  0x2d   : > { %250 = sbr.rel (%p247_p9) target bundleno = 308 (0x134), region = 54  ;;  %s903_s21 = sshll.u32 (!%p247_p9), %s1223_s15, 3 }
  0x2e   : > { %s1122_s11 = smul.u32 (!%p247_p9), 96, %s253_s9  ;;  %p293_p10 = scmp.lt.s32.totalorder (!%p247_p9), %s292_s10, 143 }
  0x2f   : > { %p305_p11 = scmp.lt.s32.totalorder (!%p247_p9), %s903_s21, 15  ;;  %p905_p12 = scmp.ne.s32.totalorder (!%p247_p9), %s1219_s14, 0 }
  0x30   : > { %s1351_s12 = scalar_lea.vmem (!%p247_p9), [#allocation3], %s1122_s11 }
  0x32   : > { %s1448_s10 = smov (!%p293_p10, %s292_s10), 143  ;;  %s1450_s21 = smov (!%p305_p11, %s903_s21), 15 }
  0x33   : > { %s902_s22 = sshll.u32 %s1448_s10, 2  ;;  %s904_s27 = sshll.u32 %s1450_s21, 2 }
  0x34   : > { %s1344_s26 = scalar_lea.vmem %s1432_s1, %s902_s22  ;;  %s1349_s30 = scalar_lea.vmem %s1434_s3, %s904_s27 }
  0x35   : > { %316 = sbr.rel (%p905_p12) target bundleno = 67 (0x43), region = 62 }
  0x3a   : > { %v1237_v16 = vmov 0.0  }
  0x3b   : > { %317 = vst [vmem:[#allocation2 + $0x30] sm:$0xff] %v1237_v16 }
  0x3c   : > { %318 = vst [vmem:[#allocation2] sm:$0xff] %v1237_v16 }
  0x3d   : > { %319 = vst [vmem:[#allocation2 + $0x18] sm:$0xff] %v1237_v16 }
  0x3e   : > { %320 = vst [vmem:[#allocation2 + $0x10] sm:$0xff] %v1237_v16 }
  0x3f   : > { %321 = vst [vmem:[#allocation2 + $0x8] sm:$0xff] %v1237_v16 }
  0x40   : > { %322 = vst [vmem:[#allocation2 + $0x20] sm:$0xff] %v1237_v16 }
  0x41   : > { %323 = vst [vmem:[#allocation2 + $0x28] sm:$0xff] %v1237_v16 }
  0x42   : > { %324 = vst [vmem:[#allocation2 + $0x38] sm:$0xff] %v1237_v16 }
  0x43 PF: > { %v1072_v17 = vld [vmem:[%s1344_s26 + $0x38] sm:$0xff]  ;;  %v1071_v20 = vld [vmem:[%s1344_s26 + $0x30] sm:$0xff]  ;;  %v1070_v23 = vld [vmem:[%s1344_s26 + $0x28] sm:$0xff]  ;;  %p1050_p13 = scmp.ne.s32.totalorder %s1219_s14, 2 }
  0x44   : > { %v1080_v18 = vld [vmem:[%s1344_s26 + $0x78] sm:$0xff]  ;;  %605 = vmatpush.bf16.msra.mxu0 %v1072_v17  ;;  %v1079_v21 = vld [vmem:[%s1344_s26 + $0x70] sm:$0xff]  ;;  %1112 = vmatpush.bf16.msra.mxu3 %v1072_v17  ;;  %v1078_v24 = vld [vmem:[%s1344_s26 + $0x68] sm:$0xff] }
  0x45   : > { %v1088_v19 = vld [vmem:[%s1344_s26 + $0xb8] sm:$0xff]  ;;  %634 = vmatpush.bf16.msra.mxu1 %v1080_v18  ;;  %v1087_v22 = vld [vmem:[%s1344_s26 + $0xb0] sm:$0xff]  ;;  %v1086_v25 = vld [vmem:[%s1344_s26 + $0xa8] sm:$0xff] }
  0x46   : > { %663 = vmatpush.bf16.msra.mxu2 %v1088_v19  ;;  %v1069_v26 = vld [vmem:[%s1344_s26 + $0x20] sm:$0xff]  ;;  %v1068_v29 = vld [vmem:[%s1344_s26 + $0x18] sm:$0xff]  ;;  %v1067_v32 = vld [vmem:[%s1344_s26 + $0x10] sm:$0xff] }
  0x47   : > { %v1077_v27 = vld [vmem:[%s1344_s26 + $0x60] sm:$0xff]  ;;  %v1076_v30 = vld [vmem:[%s1344_s26 + $0x58] sm:$0xff]  ;;  %v1075_v33 = vld [vmem:[%s1344_s26 + $0x50] sm:$0xff] }
  0x48   : > { %606 = vmatpush.bf16.msra.mxu0 %v1071_v20  ;;  %1113 = vmatpush.bf16.msra.mxu3 %v1071_v20  ;;  %v1085_v28 = vld [vmem:[%s1344_s26 + $0xa0] sm:$0xff]  ;;  %v1084_v31 = vld [vmem:[%s1344_s26 + $0x98] sm:$0xff]  ;;  %v1083_v34 = vld [vmem:[%s1344_s26 + $0x90] sm:$0xff] }
  0x49   : > { %635 = vmatpush.bf16.msra.mxu1 %v1079_v21  ;;  %v1066_v35 = vld [vmem:[%s1344_s26 + $0x8] sm:$0xff]  ;;  %v1065_v38 = vld [vmem:[%s1344_s26] sm:$0xff]  ;;  %v910_v44 = vld [vmem:[%s1351_s12 + $0xc] sm:$0xf0] }
  0x4a   : > { %664 = vmatpush.bf16.msra.mxu2 %v1087_v22  ;;  %v1074_v36 = vld [vmem:[%s1344_s26 + $0x48] sm:$0xff]  ;;  %v1073_v39 = vld [vmem:[%s1344_s26 + $0x40] sm:$0xff]  ;;  %v1055_v46 = vld [vmem:[%s1351_s12 + $0x10] sm:$0xf0] }
  0x4b   : > { %v1082_v37 = vld [vmem:[%s1344_s26 + $0x88] sm:$0xff]  ;;  %v1081_v40 = vld [vmem:[%s1344_s26 + $0x80] sm:$0xff]  ;;  %v920_v47 = vld [vmem:[%s1351_s12 + $0x18] sm:$0xf] }
  0x4c   : > { %607 = vmatpush.bf16.msra.mxu0 %v1070_v23  ;;  %1114 = vmatpush.bf16.msra.mxu3 %v1070_v23  ;;  %v908_v41 = vld [vmem:[%s1351_s12] sm:$0xf]  ;;  %v1054_v42 = vld [vmem:[%s1351_s12 + $0x8] sm:$0xf0]  ;;  %v1053_v43 = vld [vmem:[%s1351_s12 + $0x4] sm:$0xf] }
  0x4d   : > { %636 = vmatpush.bf16.msra.mxu1 %v1078_v24  ;;  %v916_v45 = vld [vmem:[%s1351_s12 + $0x8] sm:$0xf]  ;;  %v1057_v48 = vld [vmem:[%s1351_s12 + $0x20] sm:$0xf0]  ;;  %v909_v49 = vor.u32 %v1054_v42, %v908_v41  ;;  %v913_v50 = vor.u32 %v1053_v43, %v910_v44  ;;  %v1056_v53 = vld [vmem:[%s1351_s12 + $0x1c] sm:$0xf] }
  0x4e   : > { %665 = vmatpush.bf16.msra.mxu2 %v1086_v25  ;;  %v917_v51 = vor.u32 %v1055_v46, %v916_v45  ;;  %v921_v52 = vor.u32 %v1057_v48, %v920_v47  ;;  %v922_v54 = vld [vmem:[%s1351_s12 + $0x24] sm:$0xf0]  ;;  %v928_v55 = vld [vmem:[%s1351_s12 + $0x20] sm:$0xf]  ;;  %v1058_v56 = vld [vmem:[%s1351_s12 + $0x28] sm:$0xf0] }
  0x4f   : > { %v932_v57 = vld [vmem:[%s1351_s12 + $0x30] sm:$0xf]  ;;  %v1060_v58 = vld [vmem:[%s1351_s12 + $0x38] sm:$0xf0]  ;;  %v925_v59 = vor.u32 %v1056_v53, %v922_v54  ;;  %v929_v60 = vor.u32 %v1058_v56, %v928_v55  ;;  %v1059_v62 = vld [vmem:[%s1351_s12 + $0x34] sm:$0xf] }
  0x50   : > { %608 = vmatpush.bf16.msra.mxu0 %v1069_v26  ;;  %1115 = vmatpush.bf16.msra.mxu3 %v1069_v26  ;;  %v933_v61 = vor.u32 %v1060_v58, %v932_v57  ;;  %v934_v63 = vld [vmem:[%s1351_s12 + $0x3c] sm:$0xf0]  ;;  %v940_v0 = vld [vmem:[%s1351_s12 + $0x38] sm:$0xf]  ;;  %v1061_v1 = vld [vmem:[%s1351_s12 + $0x40] sm:$0xf0] }
  0x51   : > { %637 = vmatpush.bf16.msra.mxu1 %v1077_v27  ;;  %v944_v2 = vld [vmem:[%s1351_s12 + $0x48] sm:$0xf]  ;;  %v1063_v3 = vld [vmem:[%s1351_s12 + $0x50] sm:$0xf0]  ;;  %v937_v4 = vor.u32 %v1059_v62, %v934_v63  ;;  %v941_v5 = vor.u32 %v1061_v1, %v940_v0  ;;  %v1062_v7 = vld [vmem:[%s1351_s12 + $0x4c] sm:$0xf] }
  0x52   : > { %666 = vmatpush.bf16.msra.mxu2 %v1085_v28  ;;  %v945_v6 = vor.u32 %v1063_v3, %v944_v2  ;;  %v946_v8 = vld [vmem:[%s1351_s12 + $0x54] sm:$0xf0]  ;;  %v952_v9 = vld [vmem:[%s1351_s12 + $0x50] sm:$0xf]  ;;  %v1064_v10 = vld [vmem:[%s1351_s12 + $0x58] sm:$0xf0] }
  0x53   : > { %v949_v11 = vor.u32 %v1062_v7, %v946_v8  ;;  %v953_v12 = vor.u32 %v1064_v10, %v952_v9  ;;  %v325_v16 = vld [vmem:[#allocation2 + $0x30] sm:$0xff]  ;;  %v326_v24 = vld [vmem:[#allocation2] sm:$0xff]  ;;  %v329_v44 = vld [vmem:[#allocation2 + $0x8] sm:$0xff] }
  0x54   : > { %609 = vmatpush.bf16.msra.mxu0 %v1068_v29  ;;  %1116 = vmatpush.bf16.msra.mxu3 %v1068_v29  ;;  %v331_v58 = vld [vmem:[#allocation2 + $0x28] sm:$0xff]  ;;  %v332_v1 = vld [vmem:[#allocation2 + $0x38] sm:$0xff] }
  0x55   : > { %638 = vmatpush.bf16.msra.mxu1 %v1076_v30 }
  0x56   : > { %667 = vmatpush.bf16.msra.mxu2 %v1084_v31  ;;  %v327_v31 = vld [vmem:[#allocation2 + $0x18] sm:$0xff] }
  0x58   : > { %610 = vmatpush.bf16.msra.mxu0 %v1067_v32  ;;  %1117 = vmatpush.bf16.msra.mxu3 %v1067_v32 }
  0x59   : > { %639 = vmatpush.bf16.msra.mxu1 %v1075_v33 }
  0x5a   : > { %668 = vmatpush.bf16.msra.mxu2 %v1083_v34 }
  0x5c   : > { %611 = vmatpush.bf16.msra.mxu0 %v1066_v35  ;;  %1118 = vmatpush.bf16.msra.mxu3 %v1066_v35 }
  0x5d   : > { %640 = vmatpush.bf16.msra.mxu1 %v1074_v36 }
  0x5e   : > { %669 = vmatpush.bf16.msra.mxu2 %v1082_v37 }
  0x60   : > { %612 = vmatpush.bf16.msra.mxu0 %v1065_v38  ;;  %1119 = vmatpush.bf16.msra.mxu3 %v1065_v38  ;;  %v328_v38 = vld [vmem:[#allocation2 + $0x10] sm:$0xff] }
  0x61   : > { %641 = vmatpush.bf16.msra.mxu1 %v1073_v39 }
  0x62   : > { %670 = vmatpush.bf16.msra.mxu2 %v1081_v40 }
  0x63   : > { %613 = vmatmul.bf16.vlgmr.msra.gmra.mxu0 %v909_v49  ;;  %618 = vmatmul.bf16.vlgmr.msra.gmra.mxu3 %v921_v52 }
  0x64   : > { %642 = vmatmul.bf16.vlgmr.msra.gmra.mxu1 %v913_v50 }
  0x65   : > { %671 = vmatmul.bf16.vlgmr.msra.gmra.mxu2 %v917_v51  ;;  %v330_v51 = vld [vmem:[#allocation2 + $0x20] sm:$0xff] }
  0x73   : > { %623 = vmatmul.bf16.gmra.mxu3 %v933_v61 }
  0x74   : > { %647 = vmatmul.bf16.gmra.mxu1 %v925_v59 }
  0x75   : > { %676 = vmatmul.bf16.gmra.mxu2 %v929_v60 }
  0x83   : > { %628 = vmatmul.bf16.gmra.mxu3 %v945_v6 }
  0x84   : > { %652 = vmatmul.bf16.gmra.mxu1 %v937_v4 }
  0x85   : > { %681 = vmatmul.bf16.gmra.mxu2 %v941_v5 }
  0x94   : > { %657 = vmatmul.bf16.gmra.mxu1 %v949_v11 }
  0x95   : > { %686 = vmatmul.bf16.gmra.mxu2 %v953_v12 }
  0xe0   : > { %v614_v14 = vpop.f32.mrf.mxu0 }
  0xe1   : > { %v643_v13 = vpop.f32.mrf.mxu1 }
  0xe2   : > { %v644_v15 = vadd.f32 %v643_v13, %v614_v14 }
  0xe6   : > { %v619_v22 = vpop.f32.mrf.mxu3 }
  0xe8   : > { %v672_v17 = vpop.f32.mrf.mxu2  ;;  %v616_v21 = vpop.f32.mrf.mxu0 }
  0xe9   : > { %v673_v18 = vadd.f32 %v672_v17, %v644_v15  ;;  %v645_v19 = vpop.f32.mrf.mxu1 }
  0xea   : > { %v646_v23 = vadd.f32 %v645_v19, %v616_v21 }
  0xeb   : > { %v692_v20 = vadd.f32 %v673_v18, %v325_v16 }
  0xed   : > { %700 = vst [vmem:[#allocation2 + $0x30] sm:$0xff] %v692_v20 }
  0xee   : > { %v621_v30 = vpop.f32.mrf.mxu3 }
  0xf0   : > { %v674_v25 = vpop.f32.mrf.mxu2 }
  0xf1   : > { %v675_v26 = vadd.f32 %v674_v25, %v646_v23  ;;  %v648_v27 = vpop.f32.mrf.mxu1 }
  0xf2   : > { %v649_v29 = vadd.f32 %v648_v27, %v619_v22 }
  0xf3   : > { %v693_v28 = vadd.f32 %v675_v26, %v326_v24 }
  0xf5   : > { %701 = vst [vmem:[#allocation2] sm:$0xff] %v693_v28 }
  0xf6   : > { %v624_v37 = vpop.f32.mrf.mxu3 }
  0xf8   : > { %v677_v32 = vpop.f32.mrf.mxu2 }
  0xf9   : > { %v678_v33 = vadd.f32 %v677_v32, %v649_v29  ;;  %v650_v34 = vpop.f32.mrf.mxu1 }
  0xfa   : > { %v651_v36 = vadd.f32 %v650_v34, %v621_v30 }
  0xfb   : > { %v694_v35 = vadd.f32 %v678_v33, %v327_v31 }
  0xfd   : > { %702 = vst [vmem:[#allocation2 + $0x18] sm:$0xff] %v694_v35 }
  0xfe   : > { %v626_v48 = vpop.f32.mrf.mxu3 }
 0x100   : > { %v679_v39 = vpop.f32.mrf.mxu2 }
 0x101   : > { %v680_v40 = vadd.f32 %v679_v39, %v651_v36  ;;  %v653_v41 = vpop.f32.mrf.mxu1 }
 0x102   : > { %v654_v43 = vadd.f32 %v653_v41, %v624_v37 }
 0x103   : > { %v695_v42 = vadd.f32 %v680_v40, %v328_v38 }
 0x105   : > { %703 = vst [vmem:[#allocation2 + $0x10] sm:$0xff] %v695_v42 }
 0x106   : > { %v629_v56 = vpop.f32.mrf.mxu3 }
 0x108   : > { %v682_v45 = vpop.f32.mrf.mxu2 }
 0x109   : > { %v683_v46 = vadd.f32 %v682_v45, %v654_v43  ;;  %v655_v47 = vpop.f32.mrf.mxu1 }
 0x10a   : > { %v656_v50 = vadd.f32 %v655_v47, %v626_v48 }
 0x10b   : > { %v696_v49 = vadd.f32 %v683_v46, %v329_v44 }
 0x10d   : > { %704 = vst [vmem:[#allocation2 + $0x8] sm:$0xff] %v696_v49 }
 0x10e   : > { %v631_v63 = vpop.f32.mrf.mxu3 }
 0x110   : > { %v684_v52 = vpop.f32.mrf.mxu2 }
 0x111   : > { %v685_v53 = vadd.f32 %v684_v52, %v656_v50  ;;  %v658_v54 = vpop.f32.mrf.mxu1 }
 0x112   : > { %v659_v57 = vadd.f32 %v658_v54, %v629_v56 }
 0x113   : > { %v697_v55 = vadd.f32 %v685_v53, %v330_v51 }
 0x115   : > { %705 = vst [vmem:[#allocation2 + $0x20] sm:$0xff] %v697_v55 }
 0x118   : > { %v687_v59 = vpop.f32.mrf.mxu2 }
 0x119   : > { %v688_v60 = vadd.f32 %v687_v59, %v659_v57  ;;  %v660_v62 = vpop.f32.mrf.mxu1 }
 0x11a   : > { %v661_v0 = vadd.f32 %v660_v62, %v631_v63 }
 0x11b   : > { %v698_v61 = vadd.f32 %v688_v60, %v331_v58 }
 0x11d   : > { %706 = vst [vmem:[#allocation2 + $0x28] sm:$0xff] %v698_v61 }
 0x120   : > { %v689_v2 = vpop.f32.mrf.mxu2 }
 0x121   : > { %v690_v3 = vadd.f32 %v689_v2, %v661_v0  ;;  %711 = sbr.rel (%p1050_p13) target bundleno = 308 (0x134), region = 66 }
 0x123   : > { %v699_v4 = vadd.f32 %v690_v3, %v332_v1 }
 0x125   : > { %707 = vst [vmem:[#allocation2 + $0x38] sm:$0xff] %v699_v4 }
 0x126   : > { %v712_v5 = vld [vmem:[#allocation2 + $0x30] sm:$0xff]  ;;  %v713_v6 = vld [vmem:[#allocation2] sm:$0xff]  ;;  %v714_v8 = vld [vmem:[#allocation2 + $0x18] sm:$0xff] }
 0x127   : > { %v1180_v7 = vld [vmem:[%s1433_s2] ss:$0 sm:$0xff]  ;;  %v715_v9 = vld [vmem:[#allocation2 + $0x10] sm:$0xff]  ;;  %v716_v10 = vld [vmem:[#allocation2 + $0x8] sm:$0xff] }
 0x128   : > { %v717_v11 = vld [vmem:[#allocation2 + $0x20] sm:$0xff]  ;;  %v718_v12 = vld [vmem:[#allocation2 + $0x28] sm:$0xff]  ;;  %v724_v13 = vadd.f32 %v1180_v7, %v712_v5  ;;  %v725_v14 = vadd.f32 %v1180_v7, %v713_v6  ;;  %v726_v15 = vadd.f32 %v1180_v7, %v714_v8  ;;  %v727_v16 = vadd.f32 %v1180_v7, %v715_v9 }
 0x129   : > { %v728_v18 = vadd.f32 %v1180_v7, %v716_v10  ;;  %v729_v19 = vadd.f32 %v1180_v7, %v717_v11  ;;  %v730_v20 = vadd.f32 %v1180_v7, %v718_v12 }
 0x12a   : > { %v732_v22 = vmax.f32 %v724_v13, 0.0  ;;  %v733_v23 = vmax.f32 %v725_v14, 0.0  ;;  %v734_v24 = vmax.f32 %v726_v15, 0.0  ;;  %v735_v25 = vmax.f32 %v727_v16, 0.0 }
 0x12b   : > { %v736_v26 = vmax.f32 %v728_v18, 0.0  ;;  %v737_v27 = vmax.f32 %v729_v19, 0.0  ;;  %v738_v28 = vmax.f32 %v730_v20, 0.0 }
 0x12c   : > { %v719_v17 = vld [vmem:[#allocation2 + $0x38] sm:$0xff]  ;;  %v1092_v30 = vpack.c.bf16 %v733_v23, %v732_v22  ;;  %v1097_v31 = vpack.c.bf16 %v735_v25, %v734_v24 }
 0x12d   : > { %v731_v21 = vadd.f32 %v1180_v7, %v719_v17  ;;  %v1102_v32 = vpack.c.bf16 %v737_v27, %v736_v26 }
 0x12e   : > { %1093 = vst [vmem:[%s1349_s30] sm:$0xff] %v1092_v30  }
 0x12f   : > { %v739_v29 = vmax.f32 %v731_v21, 0.0  ;;  %1109 = vst [vmem:[%s1349_s30 + $0x8] sm:$0xff] %v1097_v31  }
 0x130   : > { %1110 = vst [vmem:[%s1349_s30 + $0x10] sm:$0xff] %v1102_v32  }
 0x131   : > { %v1107_v33 = vpack.c.bf16 %v739_v29, %v738_v28 }
 0x133   : > { %1111 = vst [vmem:[%s1349_s30 + $0x18] sm:$0xff] %v1107_v33  }
 0x134 PF: > { %s13_s18 = sadd.s32 1, %s1235_s18   ;;  %s1435_s12 = smov %s1215_s13 }
 0x135   : > { %p10_p0 = scmp.ge.s32.totalorder %s13_s18, 8   ;;  %s1436_s13 = smov %s1309_s25 }
 0x136   : > { %s1437_s14 = smov %s1227_s16  ;;  %s1438_s15 = smov %s1231_s17 }
 0x137   : > { %s1439_s16 = smov %s1442_s19  ;;  %s1440_s17 = smov %s1446_s20 }
 0x138   :  { %12 = sbr.rel (!%p10_p0) target bundleno = 4 (0x4), region = 113 }

// kernel: modified_deeplabv3_plus_forward.19
= control target key start
LH: loop header
LB: loop body
LE: loop exit
PB: predicated region body
PF: predicated region fallthrough
CT: control target
= control target key end

     0   :  { %s1045_s12 = smov 0   ;;  %s1047_s13 = smov 0   ;;  %s1161_s0 = inlined_call_operand.vmem [shape: bf16[32,1152], index: 0, kind: input, shape index: {}]   ;;  %s1162_s1 = inlined_call_operand.vmem [shape: bf16[1152,128], index: 1, kind: input, shape index: {}]   ;;  %s1163_s2 = inlined_call_operand.vmem [shape: f32[1,128], index: 2, kind: input, shape index: {}]   ;;  %s1164_s3 = inlined_call_operand.vmem [shape: bf16[32,128], index: 3, kind: output, shape index: {}]  }
   0x1   :  { %s1049_s14 = smov 0   ;;  %s1051_s15 = smov 0  }
   0x2   :  { %s1053_s16 = smov 0  }
   0x3 LB: > { %s25_s17 = sadd.s32 1, %s1018_s15  ;;  %p48_p1 = scmp.ne.s32.totalorder %s1010_s13, %s1006_s12  ;;  %s1022_s16 = sphi %s1053_s16, %s13_s16   ;;  %s1018_s15 = sphi %s1051_s15, %s1168_s15   ;;  %s1014_s14 = sphi %s1049_s14, %s1167_s14   ;;  %s1010_s13 = sphi %s1047_s13, %s1166_s13   ;;  %s1006_s12 = sphi %s1045_s12, %s1165_s12  }
   0x4   : > { %p26_p0 = scmp.ge.s32.totalorder %s25_s17, 3  ;;  %p49_p2 = scmp.eq.s32.totalorder %s1022_s16, 0 }
   0x5   : > { %s41_s19 = sadd.s32 1, %s1010_s13  ;;  %p752_p5 = scmp.ge.s32.totalorder %s1022_s16, 3 }
   0x6   : > { %s1170_s17 = smov (%p26_p0, %s25_s17), 0  ;;  %p50_p3 = por %p49_p2, %p48_p1 }
   0x7   : > { %s37_s18 = ssub.s32 %s1018_s15, %s1170_s17  ;;  %162 = sbr.rel (%p752_p5) target bundleno = 25 (0x19), region = 20 }
   0x8   : > { %p39_p4 = scmp.eq.s32.totalorder %s37_s18, 0 }
   0xa   : > { %s1080_s20 = scalar_select %p39_p4, %s1010_s13, %s41_s19  }
   0xc   : > { %165 = sbr.rel (!%p50_p3) target bundleno = 25 (0x19), region = 24  ;;  %s167_s21 = sand.u32 (%p50_p3), 1, %s1010_s13  }
   0xd   : > { %s890_s22 = smul.u32 (%p50_p3), 12, %s1018_s15 }
   0xe   : > { %s940_s23 = smul.u32 (%p50_p3), 48, %s167_s21 }
   0xf   : > { %s175_s26 = scalar_lea.vmem (%p50_p3), %s1161_s0, %s890_s22 }
  0x10   : > { %v190_v0 = vld [vmem:[%s175_s26] sm:$0xff] (%p50_p3)  ;;  %v194_v2 = vld [vmem:[%s175_s26 + $0x48] sm:$0xff] (%p50_p3)  ;;  %s169_s27 = scalar_lea.vmem (%p50_p3), [#allocation3], %s940_s23  ;;  %v758_v6 = vld [vmem:[%s175_s26 + $0x50] sm:$0xf] (%p50_p3) }
  0x11   : > { %v192_v1 = vld [vmem:[%s175_s26 + $0x24] sm:$0xff]  ;;  %191 = vst [vmem:[%s169_s27] sm:$0xff] %v190_v0  ;;  %v196_v3 = vld [vmem:[%s175_s26 + $0x6c] sm:$0xff]  ;;  %v760_v7 = vld [vmem:[%s175_s26 + $0x74] sm:$0xf] }
  0x12   : > { %193 = vst [vmem:[%s169_s27 + $0xc] sm:$0xff] %v192_v1  ;;  %v754_v4 = vld [vmem:[%s175_s26 + $0x8] sm:$0xf]  ;;  %v756_v5 = vld [vmem:[%s175_s26 + $0x2c] sm:$0xf] }
  0x13   : > { %195 = vst [vmem:[%s169_s27 + $0x18] sm:$0xff] %v194_v2 }
  0x14   : > { %197 = vst [vmem:[%s169_s27 + $0x24] sm:$0xff] %v196_v3 }
  0x15   : > { %755 = vst [vmem:[%s169_s27 + $0x8] sm:$0xf] %v754_v4 }
  0x16   : > { %757 = vst [vmem:[%s169_s27 + $0x14] sm:$0xf] %v756_v5 }
  0x17   : > { %759 = vst [vmem:[%s169_s27 + $0x20] sm:$0xf] %v758_v6 }
  0x18   : > { %761 = vst [vmem:[%s169_s27 + $0x2c] sm:$0xf] %v760_v7 }
  0x19 PF: > { %p762_p6 = scmp.ge.s32.totalorder %s1022_s16, 1  ;;  %p230_p7 = scmp.lt.s32.totalorder %s1022_s16, 4 }
  0x1b   : > { %p231_p8 = pnand %p762_p6, %p230_p7 }
  0x1c   : > { %s237_s28 = sand.u32 (!%p231_p8), 1, %s1006_s12   ;;  %s276_s29 = smul.u32 (!%p231_p8), 48, %s1014_s14 }
  0x1d   : > { %234 = sbr.rel (%p231_p8) target bundleno = 253 (0xfd), region = 54  ;;  %p764_p10 = scmp.ne.s32.totalorder (!%p231_p8), %s1014_s14, 0 }
  0x1e   : > { %s941_s30 = smul.u32 (!%p231_p8), 48, %s237_s28  ;;  %p277_p9 = scmp.lt.s32.totalorder (!%p231_p8), %s276_s29, 143 }
  0x20   : > { %s1097_s8 = scalar_lea.vmem (!%p231_p8), [#allocation3], %s941_s30 }
  0x22   : > { %s1172_s29 = smov (!%p277_p9, %s276_s29), 143  ;;  %300 = sbr.rel (%p764_p10) target bundleno = 44 (0x2c), region = 62 }
  0x23   : > { %s763_s4 = sshll.u32 %s1172_s29, 2 }
  0x24   : > { %s1095_s7 = scalar_lea.vmem %s1162_s1, %s763_s4 }
  0x27   : > { %v1024_v8 = vmov 0.0  }
  0x28   : > { %301 = vst [vmem:[#allocation2 + $0x10] sm:$0xff] %v1024_v8 }
  0x29   : > { %302 = vst [vmem:[#allocation2] sm:$0xff] %v1024_v8 }
  0x2a   : > { %303 = vst [vmem:[#allocation2 + $0x18] sm:$0xff] %v1024_v8 }
  0x2b   : > { %304 = vst [vmem:[#allocation2 + $0x8] sm:$0xff] %v1024_v8 }
  0x2c PF: > { %v904_v9 = vld [vmem:[%s1095_s7 + $0x38] sm:$0xff]  ;;  %v903_v12 = vld [vmem:[%s1095_s7 + $0x30] sm:$0xff]  ;;  %v902_v15 = vld [vmem:[%s1095_s7 + $0x28] sm:$0xff]  ;;  %p885_p11 = scmp.ne.s32.totalorder %s1014_s14, 2 }
  0x2d   : > { %v912_v10 = vld [vmem:[%s1095_s7 + $0x78] sm:$0xff]  ;;  %541 = vmatpush.bf16.msra.mxu0 %v904_v9  ;;  %v911_v13 = vld [vmem:[%s1095_s7 + $0x70] sm:$0xff]  ;;  %932 = vmatpush.bf16.msra.mxu3 %v904_v9  ;;  %v910_v16 = vld [vmem:[%s1095_s7 + $0x68] sm:$0xff] }
  0x2e   : > { %v920_v11 = vld [vmem:[%s1095_s7 + $0xb8] sm:$0xff]  ;;  %560 = vmatpush.bf16.msra.mxu1 %v912_v10  ;;  %v919_v14 = vld [vmem:[%s1095_s7 + $0xb0] sm:$0xff]  ;;  %v918_v17 = vld [vmem:[%s1095_s7 + $0xa8] sm:$0xff] }
  0x2f   : > { %579 = vmatpush.bf16.msra.mxu2 %v920_v11  ;;  %v901_v18 = vld [vmem:[%s1095_s7 + $0x20] sm:$0xff]  ;;  %v900_v21 = vld [vmem:[%s1095_s7 + $0x18] sm:$0xff]  ;;  %v899_v24 = vld [vmem:[%s1095_s7 + $0x10] sm:$0xff] }
  0x30   : > { %v909_v19 = vld [vmem:[%s1095_s7 + $0x60] sm:$0xff]  ;;  %v908_v22 = vld [vmem:[%s1095_s7 + $0x58] sm:$0xff]  ;;  %v907_v25 = vld [vmem:[%s1095_s7 + $0x50] sm:$0xff] }
  0x31   : > { %542 = vmatpush.bf16.msra.mxu0 %v903_v12  ;;  %933 = vmatpush.bf16.msra.mxu3 %v903_v12  ;;  %v917_v20 = vld [vmem:[%s1095_s7 + $0xa0] sm:$0xff]  ;;  %v916_v23 = vld [vmem:[%s1095_s7 + $0x98] sm:$0xff]  ;;  %v915_v26 = vld [vmem:[%s1095_s7 + $0x90] sm:$0xff] }
  0x32   : > { %561 = vmatpush.bf16.msra.mxu1 %v911_v13  ;;  %v898_v27 = vld [vmem:[%s1095_s7 + $0x8] sm:$0xff]  ;;  %v897_v30 = vld [vmem:[%s1095_s7] sm:$0xff]  ;;  %v305_v54 = vld [vmem:[#allocation2 + $0x10] sm:$0xff] }
  0x33   : > { %580 = vmatpush.bf16.msra.mxu2 %v919_v14  ;;  %v906_v28 = vld [vmem:[%s1095_s7 + $0x48] sm:$0xff]  ;;  %v905_v31 = vld [vmem:[%s1095_s7 + $0x40] sm:$0xff]  ;;  %v307_v4 = vld [vmem:[#allocation2 + $0x18] sm:$0xff] }
  0x34   : > { %v914_v29 = vld [vmem:[%s1095_s7 + $0x88] sm:$0xff]  ;;  %v913_v32 = vld [vmem:[%s1095_s7 + $0x80] sm:$0xff] }
  0x35   : > { %543 = vmatpush.bf16.msra.mxu0 %v902_v15  ;;  %934 = vmatpush.bf16.msra.mxu3 %v902_v15  ;;  %v767_v33 = vld [vmem:[%s1097_s8] sm:$0xf]  ;;  %v892_v34 = vld [vmem:[%s1097_s8 + $0x8] sm:$0xf0]  ;;  %v891_v35 = vld [vmem:[%s1097_s8 + $0x4] sm:$0xf] }
  0x36   : > { %562 = vmatpush.bf16.msra.mxu1 %v910_v16  ;;  %v769_v36 = vld [vmem:[%s1097_s8 + $0xc] sm:$0xf0]  ;;  %v775_v37 = vld [vmem:[%s1097_s8 + $0x8] sm:$0xf]  ;;  %v893_v38 = vld [vmem:[%s1097_s8 + $0x10] sm:$0xf0]  ;;  %v768_v41 = vor.u32 %v892_v34, %v767_v33 }
  0x37   : > { %581 = vmatpush.bf16.msra.mxu2 %v918_v17  ;;  %v779_v39 = vld [vmem:[%s1097_s8 + $0x18] sm:$0xf]  ;;  %v895_v40 = vld [vmem:[%s1097_s8 + $0x20] sm:$0xf0]  ;;  %v772_v42 = vor.u32 %v891_v35, %v769_v36  ;;  %v776_v43 = vor.u32 %v893_v38, %v775_v37  ;;  %v894_v45 = vld [vmem:[%s1097_s8 + $0x1c] sm:$0xf] }
  0x38   : > { %v780_v44 = vor.u32 %v895_v40, %v779_v39  ;;  %v781_v46 = vld [vmem:[%s1097_s8 + $0x24] sm:$0xf0]  ;;  %v787_v47 = vld [vmem:[%s1097_s8 + $0x20] sm:$0xf]  ;;  %v896_v48 = vld [vmem:[%s1097_s8 + $0x28] sm:$0xf0] }
  0x39   : > { %544 = vmatpush.bf16.msra.mxu0 %v901_v18  ;;  %935 = vmatpush.bf16.msra.mxu3 %v901_v18  ;;  %v784_v49 = vor.u32 %v894_v45, %v781_v46  ;;  %v788_v50 = vor.u32 %v896_v48, %v787_v47  ;;  %v306_v61 = vld [vmem:[#allocation2] sm:$0xff]  ;;  %v308_v11 = vld [vmem:[#allocation2 + $0x8] sm:$0xff] }
  0x3a   : > { %563 = vmatpush.bf16.msra.mxu1 %v909_v19 }
  0x3b   : > { %582 = vmatpush.bf16.msra.mxu2 %v917_v20 }
  0x3d   : > { %545 = vmatpush.bf16.msra.mxu0 %v900_v21  ;;  %936 = vmatpush.bf16.msra.mxu3 %v900_v21 }
  0x3e   : > { %564 = vmatpush.bf16.msra.mxu1 %v908_v22 }
  0x3f   : > { %583 = vmatpush.bf16.msra.mxu2 %v916_v23 }
  0x41   : > { %546 = vmatpush.bf16.msra.mxu0 %v899_v24  ;;  %937 = vmatpush.bf16.msra.mxu3 %v899_v24 }
  0x42   : > { %565 = vmatpush.bf16.msra.mxu1 %v907_v25 }
  0x43   : > { %584 = vmatpush.bf16.msra.mxu2 %v915_v26 }
  0x45   : > { %547 = vmatpush.bf16.msra.mxu0 %v898_v27  ;;  %938 = vmatpush.bf16.msra.mxu3 %v898_v27 }
  0x46   : > { %566 = vmatpush.bf16.msra.mxu1 %v906_v28 }
  0x47   : > { %585 = vmatpush.bf16.msra.mxu2 %v914_v29 }
  0x49   : > { %548 = vmatpush.bf16.msra.mxu0 %v897_v30  ;;  %939 = vmatpush.bf16.msra.mxu3 %v897_v30 }
  0x4a   : > { %567 = vmatpush.bf16.msra.mxu1 %v905_v31 }
  0x4b   : > { %586 = vmatpush.bf16.msra.mxu2 %v913_v32 }
  0x4c   : > { %549 = vmatmul.bf16.vlgmr.msra.gmra.mxu0 %v768_v41  ;;  %554 = vmatmul.bf16.vlgmr.msra.gmra.mxu3 %v780_v44 }
  0x4d   : > { %568 = vmatmul.bf16.vlgmr.msra.gmra.mxu1 %v772_v42 }
  0x4e   : > { %587 = vmatmul.bf16.vlgmr.msra.gmra.mxu2 %v776_v43 }
  0x5d   : > { %573 = vmatmul.bf16.gmra.mxu1 %v784_v49 }
  0x5e   : > { %592 = vmatmul.bf16.gmra.mxu2 %v788_v50 }
  0xc9   : > { %v550_v52 = vpop.f32.mrf.mxu0 }
  0xca   : > { %v569_v51 = vpop.f32.mrf.mxu1 }
  0xcb   : > { %v570_v53 = vadd.f32 %v569_v51, %v550_v52 }
  0xcf   : > { %v555_v2 = vpop.f32.mrf.mxu3 }
  0xd1   : > { %v588_v55 = vpop.f32.mrf.mxu2  ;;  %v552_v59 = vpop.f32.mrf.mxu0 }
  0xd2   : > { %v589_v56 = vadd.f32 %v588_v55, %v570_v53  ;;  %v571_v57 = vpop.f32.mrf.mxu1 }
  0xd3   : > { %v572_v60 = vadd.f32 %v571_v57, %v552_v59 }
  0xd4   : > { %v598_v58 = vadd.f32 %v589_v56, %v305_v54 }
  0xd6   : > { %602 = vst [vmem:[#allocation2 + $0x10] sm:$0xff] %v598_v58 }
  0xd7   : > { %v557_v9 = vpop.f32.mrf.mxu3 }
  0xd9   : > { %v590_v62 = vpop.f32.mrf.mxu2 }
  0xda   : > { %v591_v63 = vadd.f32 %v590_v62, %v572_v60  ;;  %v574_v0 = vpop.f32.mrf.mxu1 }
  0xdb   : > { %v575_v3 = vadd.f32 %v574_v0, %v555_v2 }
  0xdc   : > { %v599_v1 = vadd.f32 %v591_v63, %v306_v61 }
  0xde   : > { %603 = vst [vmem:[#allocation2] sm:$0xff] %v599_v1 }
  0xe1   : > { %v593_v5 = vpop.f32.mrf.mxu2 }
  0xe2   : > { %v594_v6 = vadd.f32 %v593_v5, %v575_v3  ;;  %v576_v8 = vpop.f32.mrf.mxu1 }
  0xe3   : > { %v577_v10 = vadd.f32 %v576_v8, %v557_v9 }
  0xe4   : > { %v600_v7 = vadd.f32 %v594_v6, %v307_v4 }
  0xe6   : > { %604 = vst [vmem:[#allocation2 + $0x18] sm:$0xff] %v600_v7 }
  0xe9   : > { %v595_v12 = vpop.f32.mrf.mxu2 }
  0xea   : > { %v596_v13 = vadd.f32 %v595_v12, %v577_v10  ;;  %609 = sbr.rel (%p885_p11) target bundleno = 253 (0xfd), region = 66 }
  0xec   : > { %v601_v14 = vadd.f32 %v596_v13, %v308_v11 }
  0xee   : > { %605 = vst [vmem:[#allocation2 + $0x8] sm:$0xff] %v601_v14 }
  0xef   : > { %v610_v15 = vld [vmem:[#allocation2 + $0x10] sm:$0xff]  ;;  %v611_v16 = vld [vmem:[#allocation2] sm:$0xff]  ;;  %v612_v18 = vld [vmem:[#allocation2 + $0x18] sm:$0xff] }
  0xf0   : > { %v983_v17 = vld [vmem:[%s1163_s2] ss:$0 sm:$0xff] }
  0xf1   : > { %v618_v20 = vadd.f32 %v983_v17, %v610_v15  ;;  %v619_v21 = vadd.f32 %v983_v17, %v611_v16  ;;  %v620_v22 = vadd.f32 %v983_v17, %v612_v18 }
  0xf3   : > { %v622_v24 = vmax.f32 %v618_v20, 0.0  ;;  %v623_v25 = vmax.f32 %v619_v21, 0.0  ;;  %v624_v26 = vmax.f32 %v620_v22, 0.0 }
  0xf5   : > { %v613_v19 = vld [vmem:[#allocation2 + $0x8] sm:$0xff]  ;;  %v924_v28 = vpack.c.bf16 %v623_v25, %v622_v24 }
  0xf6   : > { %v621_v23 = vadd.f32 %v983_v17, %v613_v19 }
  0xf7   : > { %925 = vst [vmem:[%s1164_s3] sm:$0xff] %v924_v28  }
  0xf8   : > { %v625_v27 = vmax.f32 %v621_v23, 0.0 }
  0xfa   : > { %v929_v29 = vpack.c.bf16 %v625_v27, %v624_v26 }
  0xfc   : > { %931 = vst [vmem:[%s1164_s3 + $0x8] sm:$0xff] %v929_v29  }
  0xfd PF: > { %s13_s16 = sadd.s32 1, %s1022_s16   ;;  %s1165_s12 = smov %s1010_s13 }
  0xfe   : > { %p10_p12 = scmp.ge.s32.totalorder %s13_s16, 5   ;;  %s1166_s13 = smov %s1080_s20 }
  0xff   : > { %s1167_s14 = smov %s1018_s15  ;;  %s1168_s15 = smov %s1170_s17 }
 0x100   :  { %12 = sbr.rel (!%p10_p12) target bundleno = 3 (0x3), region = 113 }

// kernel: modified_deeplabv3_plus_forward.20
= control target key start
LH: loop header
LB: loop body
LE: loop exit
PB: predicated region body
PF: predicated region fallthrough
CT: control target
= control target key end

     0   :  { %s832_s12 = smov 0   ;;  %s834_s13 = smov 0   ;;  %s907_s0 = inlined_call_operand.vmem [shape: bf16[8,1152], index: 0, kind: input, shape index: {}]   ;;  %s908_s1 = inlined_call_operand.vmem [shape: bf16[1152,128], index: 1, kind: input, shape index: {}]   ;;  %s909_s2 = inlined_call_operand.vmem [shape: f32[1,128], index: 2, kind: input, shape index: {}]   ;;  %s910_s3 = inlined_call_operand.vmem [shape: bf16[8,128], index: 3, kind: output, shape index: {}]  }
   0x1   :  { %s836_s14 = smov 0  }
   0x2 LB: > { %s25_s15 = sadd.s32 1, %s805_s13  ;;  %p633_p0 = scmp.ge.s32.totalorder %s809_s14, 1  ;;  %s809_s14 = sphi %s836_s14, %s13_s14   ;;  %s805_s13 = sphi %s834_s13, %s912_s13   ;;  %s801_s12 = sphi %s832_s12, %s911_s12  }
   0x3   : > { %p26_p1 = scmp.ge.s32.totalorder %s25_s15, 3  ;;  %p189_p2 = scmp.lt.s32.totalorder %s809_s14, 4 }
   0x5   : > { %s914_s15 = smov (%p26_p1, %s25_s15), 0  ;;  %p190_p3 = pnand %p633_p0, %p189_p2 }
   0x6   : > { %s230_s16 = smul.u32 (!%p190_p3), 3, %s801_s12  ;;  %p636_p6 = scmp.ne.s32.totalorder (!%p190_p3), %s801_s12, 0 }
   0x7   : > { %193 = sbr.rel (%p190_p3) target bundleno = 207 (0xcf), region = 32 }
   0x8   : > { %s240_s17 = smul.u32 (!%p190_p3), 48, %s801_s12  ;;  %p233_p4 = scmp.lt.s32.totalorder (!%p190_p3), %s230_s16, 8 }
   0xa   : > { %p241_p5 = scmp.lt.s32.totalorder (!%p190_p3), %s240_s17, 143 }
   0xc   : > { %s916_s16 = smov (!%p233_p4, %s230_s16), 8  ;;  %s918_s17 = smov (!%p241_p5, %s240_s17), 143 }
   0xd   : > { %s634_s18 = sshll.u32 %s916_s16, 2  ;;  %s635_s22 = sshll.u32 %s918_s17, 2 }
   0xe   : > { %s857_s21 = scalar_lea.vmem %s907_s0, %s634_s18  ;;  %s862_s25 = scalar_lea.vmem %s908_s1, %s635_s22 }
   0xf   : > { %262 = sbr.rel (%p636_p6) target bundleno = 22 (0x16), region = 36 }
  0x14   : > { %v811_v0 = vmov 0.0  }
  0x15   : > { %263 = vst [vmem:[#allocation2] sm:$0xff] %v811_v0 }
  0x16 PF: > { %v744_v1 = vld [vmem:[%s862_s25 + $0x38] sm:$0xff]  ;;  %v743_v4 = vld [vmem:[%s862_s25 + $0x30] sm:$0xff]  ;;  %v742_v7 = vld [vmem:[%s862_s25 + $0x28] sm:$0xff]  ;;  %p733_p7 = scmp.ne.s32.totalorder %s801_s12, 2 }
  0x17   : > { %v752_v2 = vld [vmem:[%s862_s25 + $0x78] sm:$0xff]  ;;  %470 = vmatpush.bf16.msra.mxu0 %v744_v1  ;;  %v751_v5 = vld [vmem:[%s862_s25 + $0x70] sm:$0xff]  ;;  %v750_v8 = vld [vmem:[%s862_s25 + $0x68] sm:$0xff] }
  0x18   : > { %v760_v3 = vld [vmem:[%s862_s25 + $0xb8] sm:$0xff]  ;;  %483 = vmatpush.bf16.msra.mxu1 %v752_v2  ;;  %v759_v6 = vld [vmem:[%s862_s25 + $0xb0] sm:$0xff]  ;;  %v758_v9 = vld [vmem:[%s862_s25 + $0xa8] sm:$0xff] }
  0x19   : > { %496 = vmatpush.bf16.msra.mxu2 %v760_v3  ;;  %v741_v10 = vld [vmem:[%s862_s25 + $0x20] sm:$0xff]  ;;  %v740_v13 = vld [vmem:[%s862_s25 + $0x18] sm:$0xff]  ;;  %v739_v16 = vld [vmem:[%s862_s25 + $0x10] sm:$0xff] }
  0x1a   : > { %v749_v11 = vld [vmem:[%s862_s25 + $0x60] sm:$0xff]  ;;  %v748_v14 = vld [vmem:[%s862_s25 + $0x58] sm:$0xff]  ;;  %v747_v17 = vld [vmem:[%s862_s25 + $0x50] sm:$0xff] }
  0x1b   : > { %471 = vmatpush.bf16.msra.mxu0 %v743_v4  ;;  %v757_v12 = vld [vmem:[%s862_s25 + $0xa0] sm:$0xff]  ;;  %v756_v15 = vld [vmem:[%s862_s25 + $0x98] sm:$0xff]  ;;  %v755_v18 = vld [vmem:[%s862_s25 + $0x90] sm:$0xff] }
  0x1c   : > { %484 = vmatpush.bf16.msra.mxu1 %v751_v5  ;;  %v738_v19 = vld [vmem:[%s862_s25 + $0x8] sm:$0xff]  ;;  %v265_v21 = vld [vmem:[%s857_s21] sm:$0xff] }
  0x1d   : > { %497 = vmatpush.bf16.msra.mxu2 %v759_v6  ;;  %v746_v20 = vld [vmem:[%s862_s25 + $0x48] sm:$0xff]  ;;  %v317_v24 = vunpack.c.l.b16 %v265_v21  ;;  %v318_v25 = vunpack.c.h.b16 %v265_v21  ;;  %v737_v26 = vld [vmem:[%s862_s25] sm:$0xff] }
  0x1e   : > { %v754_v22 = vld [vmem:[%s862_s25 + $0x88] sm:$0xff]  ;;  %v745_v27 = vld [vmem:[%s862_s25 + $0x40] sm:$0xff] }
  0x1f   : > { %472 = vmatpush.bf16.msra.mxu0 %v742_v7  ;;  %v266_v23 = vld [vmem:[%s857_s21 + $0x8] sm:$0xf]  ;;  %v753_v29 = vld [vmem:[%s862_s25 + $0x80] sm:$0xff]  ;;  %v320_v30 = vpack.c.b16 %v317_v24, %v317_v24  ;;  %v321_v31 = vpack.c.b16 %v318_v25, %v318_v25 }
  0x20   : > { %485 = vmatpush.bf16.msra.mxu1 %v750_v8  ;;  %v319_v28 = vunpack.c.l.b16 %v266_v23  ;;  %v264_v36 = vld [vmem:[#allocation2] sm:$0xff] }
  0x21   : > { %498 = vmatpush.bf16.msra.mxu2 %v758_v9 }
  0x22   : > { %v322_v32 = vpack.c.b16 %v319_v28, %v319_v28 }
  0x23   : > { %473 = vmatpush.bf16.msra.mxu0 %v741_v10 }
  0x24   : > { %486 = vmatpush.bf16.msra.mxu1 %v749_v11 }
  0x25   : > { %499 = vmatpush.bf16.msra.mxu2 %v757_v12 }
  0x27   : > { %474 = vmatpush.bf16.msra.mxu0 %v740_v13 }
  0x28   : > { %487 = vmatpush.bf16.msra.mxu1 %v748_v14 }
  0x29   : > { %500 = vmatpush.bf16.msra.mxu2 %v756_v15 }
  0x2b   : > { %475 = vmatpush.bf16.msra.mxu0 %v739_v16 }
  0x2c   : > { %488 = vmatpush.bf16.msra.mxu1 %v747_v17 }
  0x2d   : > { %501 = vmatpush.bf16.msra.mxu2 %v755_v18 }
  0x2f   : > { %476 = vmatpush.bf16.msra.mxu0 %v738_v19 }
  0x30   : > { %489 = vmatpush.bf16.msra.mxu1 %v746_v20 }
  0x31   : > { %502 = vmatpush.bf16.msra.mxu2 %v754_v22 }
  0x33   : > { %477 = vmatpush.bf16.msra.mxu0 %v737_v26 }
  0x34   : > { %490 = vmatpush.bf16.msra.mxu1 %v745_v27 }
  0x35   : > { %503 = vmatpush.bf16.msra.mxu2 %v753_v29 }
  0x36   : > { %478 = vmatmul.bf16.vlgmr.msra.gmra.mxu0 %v320_v30 }
  0x37   : > { %491 = vmatmul.bf16.vlgmr.msra.gmra.mxu1 %v321_v31 }
  0x38   : > { %504 = vmatmul.bf16.vlgmr.msra.gmra.mxu2 %v322_v32 }
  0xb3   : > { %v479_v33 = vpop.f32.mrf.mxu0 }
  0xb4   : > { %v492_v34 = vpop.f32.mrf.mxu1 }
  0xb5   : > { %v493_v35 = vadd.f32 %v492_v34, %v479_v33 }
  0xbb   : > { %v505_v37 = vpop.f32.mrf.mxu2  ;;  %v481_v39 = vpop.f32.mrf.mxu0 }
  0xbc   : > { %v506_v38 = vadd.f32 %v505_v37, %v493_v35  ;;  %v494_v40 = vpop.f32.mrf.mxu1 }
  0xbe   : > { %v509_v41 = vadd.f32 %v506_v38, %v264_v36 }
  0xbf   : > { %514 = sbr.rel (%p733_p7) target bundleno = 207 (0xcf), region = 40 }
  0xc0   : > { %510 = vst [vmem:[#allocation2] sm:$0xff] %v509_v41 }
  0xc3   : > { %v507_v42 = vpop.f32.mrf.mxu2 }
  0xc4   : > { %v786_v44 = vld [vmem:[%s909_s2] ss:$0 sm:$0xff] }
  0xc7   : > { %v515_v43 = vld [vmem:[#allocation2] sm:$0xff] }
  0xc8   : > { %v520_v45 = vadd.f32 %v786_v44, %v515_v43 }
  0xca   : > { %v521_v46 = vmax.f32 %v520_v45, 0.0 }
  0xcc   : > { %v522_v47 = vpack.c.bf16 %v521_v46, %v521_v46 }
  0xce   : > { %523 = vst [vmem:[%s910_s3] sm:$0xf] %v522_v47 }
  0xcf PF: > { %s13_s14 = sadd.s32 1, %s809_s14   ;;  %s911_s12 = smov %s805_s13 }
  0xd0   : > { %p10_p8 = scmp.ge.s32.totalorder %s13_s14, 5   ;;  %s912_s13 = smov %s914_s15 }
  0xd2   :  { %12 = sbr.rel (!%p10_p8) target bundleno = 2 (0x2), region = 76 }

// kernel: modified_deeplabv3_plus_forward.22
= control target key start
LH: loop header
LB: loop body
LE: loop exit
PB: predicated region body
PF: predicated region fallthrough
CT: control target
= control target key end

     0   :  { %vm18_vm0 = vcmask 1043456   ;;  %v51_v0 = vmov 0.0   ;;  %vm35_vm1 = vcmask 1041409   ;;  %s71_s0 = inlined_call_operand.vmem [shape: bf16[2,4,128], index: 0, kind: input, shape index: {}]   ;;  %s72_s1 = inlined_call_operand.vmem [shape: f32[2,128], index: 1, kind: output, shape index: {}]  }
   0x1   :  { %12 = vst [vmem:[#allocation2] sm:$0x3] %v51_v0  ;;  %v14_v1 = vld [vmem:[%s71_s0] sm:$0x3]  ;;  %v15_v2 = vld [vmem:[%s71_s0 + $0x2] sm:$0x3] }
   0x2   :  { %v16_v3 = vunpack.c.l.bf16 %v14_v1  ;;  %v17_v4 = vunpack.c.l.bf16 %v15_v2 }
   0x4   :  { %v19_v5 = vsel %vm18_vm0, %v16_v3, 0.0  ;;  %v26_v6 = vsel %vm18_vm0, %v17_v4, 0.0 }
   0x5   :  { %v20_v7 = vrot.slane %v19_v5, 4  ;;  %v27_v8 = vrot.slane %v26_v6, 4 }
   0x7   :  { %v21_v9 = vadd.f32 %v20_v7, %v19_v5  ;;  %v28_v10 = vadd.f32 %v27_v8, %v26_v6 }
   0x8   :  { %v13_v17 = vld [vmem:[#allocation2] sm:$0x3] }
   0x9   :  { %v22_v11 = vrot.slane %v21_v9, 2  ;;  %v29_v12 = vrot.slane %v28_v10, 2 }
   0xb   :  { %v23_v13 = vadd.f32 %v22_v11, %v21_v9  ;;  %v30_v14 = vadd.f32 %v29_v12, %v28_v10 }
   0xd   :  { %v24_v15 = vrot.slane %v23_v13, 1  ;;  %v31_v16 = vrot.slane %v30_v14, 1 }
   0xf   :  { %v25_v18 = vadd.f32 %v24_v15, %v23_v13  ;;  %v32_v19 = vadd.f32 %v31_v16, %v30_v14 }
  0x11   :  { %v36_v20 = vsel %vm35_vm1, %v32_v19, %v25_v18 }
  0x12   :  { %v38_v21 = vadd.f32 %v36_v20, %v13_v17 }
  0x14   :  { %39 = vst [vmem:[#allocation2] sm:$0x3] %v38_v21 }
  0x1b   :  { %v43_v22 = vld [vmem:[#allocation2] sm:$0x3] }
  0x1c   :  { %v44_v23 = vmul.f32 0.25, %v43_v22 }
  0x1e   :  { %45 = vst [vmem:[%s72_s1] sm:$0x3] %v44_v23 }

// kernel: modified_deeplabv3_plus_forward.24
= control target key start
LH: loop header
LB: loop body
LE: loop exit
PB: predicated region body
PF: predicated region fallthrough
CT: control target
= control target key end

     0   :  { %s210_s1 = inlined_call_operand.vmem [shape: bf16[128,128], index: 1, kind: input, shape index: {}]   ;;  %s211_s2 = inlined_call_operand.vmem [shape: f32[1,128], index: 2, kind: input, shape index: {}]   ;;  %s212_s0 = inlined_call_operand.vmem [shape: bf16[8,128], index: 0, kind: input, shape index: {}]   ;;  %s213_s3 = inlined_call_operand.vmem [shape: bf16[8,128], index: 3, kind: output, shape index: {}]  }
   0x1   :  { %v155_v0 = vld [vmem:[%s210_s1 + $0x38] sm:$0xff]  ;;  %v154_v1 = vld [vmem:[%s210_s1 + $0x30] sm:$0xff]  ;;  %v153_v2 = vld [vmem:[%s210_s1 + $0x28] sm:$0xff] }
   0x2   :  { %85 = vmatpush.bf16.msra.mxu0 %v155_v0  ;;  %v152_v3 = vld [vmem:[%s210_s1 + $0x20] sm:$0xff]  ;;  %v151_v4 = vld [vmem:[%s210_s1 + $0x18] sm:$0xff]  ;;  %v150_v5 = vld [vmem:[%s210_s1 + $0x10] sm:$0xff] }
   0x3   :  { %v149_v6 = vld [vmem:[%s210_s1 + $0x8] sm:$0xff]  ;;  %v148_v7 = vld [vmem:[%s210_s1] sm:$0xff] }
   0x4   :  { %v20_v8 = vld [vmem:[%s212_s0] sm:$0xf] }
   0x5   :  { %v156_v9 = vld [vmem:[%s211_s2] ss:$0 sm:$0xff] }
   0x6   :  { %86 = vmatpush.bf16.msra.mxu0 %v154_v1 }
   0xa   :  { %87 = vmatpush.bf16.msra.mxu0 %v153_v2 }
   0xe   :  { %88 = vmatpush.bf16.msra.mxu0 %v152_v3 }
  0x12   :  { %89 = vmatpush.bf16.msra.mxu0 %v151_v4 }
  0x16   :  { %90 = vmatpush.bf16.msra.mxu0 %v150_v5 }
  0x1a   :  { %91 = vmatpush.bf16.msra.mxu0 %v149_v6 }
  0x1e   :  { %92 = vmatpush.bf16.msra.mxu0 %v148_v7 }
  0x21   :  { %93 = vmatmul.bf16.vlgmr.msra.gmra.mxu0 %v20_v8 }
  0x9e   :  { %v94_v10 = vpop.f32.mrf.mxu0 }
  0x9f   :  { %v108_v11 = vadd.f32 %v156_v9, %v94_v10 }
  0xa1   :  { %v109_v12 = vmax.f32 %v108_v11, 0.0 }
  0xa3   :  { %v110_v13 = vpack.c.bf16 %v109_v12, %v109_v12 }
  0xa5   :  { %111 = vst [vmem:[%s213_s3] sm:$0xf] %v110_v13 }
  0xa6   :  { %v96_v14 = vpop.f32.mrf.mxu0 }

// kernel: modified_deeplabv3_plus_forward.28
= control target key start
LH: loop header
LB: loop body
LE: loop exit
PB: predicated region body
PF: predicated region fallthrough
CT: control target
= control target key end

     0   :  { %s814_s5 = inlined_call_operand.vmem [shape: bf16[640,128], index: 5, kind: input, shape index: {}]   ;;  %s815_s6 = inlined_call_operand.vmem [shape: f32[1,128], index: 6, kind: input, shape index: {}]   ;;  %s816_s0 = inlined_call_operand.vmem [shape: bf16[8,128], index: 0, kind: input, shape index: {}]   ;;  %s817_s2 = inlined_call_operand.vmem [shape: bf16[8,128], index: 2, kind: input, shape index: {}]   ;;  %s818_s3 = inlined_call_operand.vmem [shape: bf16[8,128], index: 3, kind: input, shape index: {}]   ;;  %s819_s1 = inlined_call_operand.vmem [shape: bf16[8,128], index: 1, kind: input, shape index: {}]   ;;  %s820_s4 = inlined_call_operand.vmem [shape: bf16[8,128], index: 4, kind: input, shape index: {}]   ;;  %s821_s7 = inlined_call_operand.vmem [shape: bf16[8,128], index: 7, kind: output, shape index: {}]  }
   0x1   :  { %v599_v0 = vld [vmem:[%s814_s5 + $0x38] sm:$0xff]  ;;  %v598_v3 = vld [vmem:[%s814_s5 + $0x30] sm:$0xff]  ;;  %v597_v8 = vld [vmem:[%s814_s5 + $0x28] sm:$0xff] }
   0x2   :  { %v615_v1 = vld [vmem:[%s814_s5 + $0xb8] sm:$0xff]  ;;  %95 = vmatpush.bf16.msra.mxu0 %v599_v0  ;;  %v614_v5 = vld [vmem:[%s814_s5 + $0xb0] sm:$0xff]  ;;  %v613_v9 = vld [vmem:[%s814_s5 + $0xa8] sm:$0xff] }
   0x3   :  { %v623_v2 = vld [vmem:[%s814_s5 + $0xf8] sm:$0xff]  ;;  %253 = vmatpush.bf16.msra.mxu2 %v615_v1  ;;  %v622_v6 = vld [vmem:[%s814_s5 + $0xf0] sm:$0xff]  ;;  %v621_v10 = vld [vmem:[%s814_s5 + $0xe8] sm:$0xff] }
   0x4   :  { %v607_v4 = vld [vmem:[%s814_s5 + $0x78] sm:$0xff]  ;;  %332 = vmatpush.bf16.msra.mxu3 %v623_v2  ;;  %v606_v7 = vld [vmem:[%s814_s5 + $0x70] sm:$0xff]  ;;  %v605_v11 = vld [vmem:[%s814_s5 + $0x68] sm:$0xff] }
   0x5   :  { %174 = vmatpush.bf16.msra.mxu1 %v607_v4  ;;  %v596_v12 = vld [vmem:[%s814_s5 + $0x20] sm:$0xff]  ;;  %v595_v16 = vld [vmem:[%s814_s5 + $0x18] sm:$0xff]  ;;  %v594_v20 = vld [vmem:[%s814_s5 + $0x10] sm:$0xff] }
   0x6   :  { %96 = vmatpush.bf16.msra.mxu0 %v598_v3  ;;  %v612_v13 = vld [vmem:[%s814_s5 + $0xa0] sm:$0xff]  ;;  %v611_v17 = vld [vmem:[%s814_s5 + $0x98] sm:$0xff]  ;;  %v610_v21 = vld [vmem:[%s814_s5 + $0x90] sm:$0xff] }
   0x7   :  { %254 = vmatpush.bf16.msra.mxu2 %v614_v5  ;;  %v620_v14 = vld [vmem:[%s814_s5 + $0xe0] sm:$0xff]  ;;  %v619_v18 = vld [vmem:[%s814_s5 + $0xd8] sm:$0xff]  ;;  %v618_v22 = vld [vmem:[%s814_s5 + $0xd0] sm:$0xff] }
   0x8   :  { %333 = vmatpush.bf16.msra.mxu3 %v622_v6  ;;  %v604_v15 = vld [vmem:[%s814_s5 + $0x60] sm:$0xff]  ;;  %v603_v19 = vld [vmem:[%s814_s5 + $0x58] sm:$0xff]  ;;  %v602_v23 = vld [vmem:[%s814_s5 + $0x50] sm:$0xff] }
   0x9   :  { %175 = vmatpush.bf16.msra.mxu1 %v606_v7  ;;  %v593_v24 = vld [vmem:[%s814_s5 + $0x8] sm:$0xff]  ;;  %v592_v28 = vld [vmem:[%s814_s5] sm:$0xff]  ;;  %v631_v29 = vld [vmem:[%s814_s5 + $0x138] sm:$0xff] }
   0xa   :  { %97 = vmatpush.bf16.msra.mxu0 %v597_v8  ;;  %v609_v25 = vld [vmem:[%s814_s5 + $0x88] sm:$0xff]  ;;  %v608_v30 = vld [vmem:[%s814_s5 + $0x80] sm:$0xff]  ;;  %v630_v34 = vld [vmem:[%s814_s5 + $0x130] sm:$0xff] }
   0xb   :  { %255 = vmatpush.bf16.msra.mxu2 %v613_v9  ;;  %v617_v26 = vld [vmem:[%s814_s5 + $0xc8] sm:$0xff]  ;;  %v616_v31 = vld [vmem:[%s814_s5 + $0xc0] sm:$0xff]  ;;  %v627_v40 = vld [vmem:[%s814_s5 + $0x118] sm:$0xff] }
   0xc   :  { %334 = vmatpush.bf16.msra.mxu3 %v621_v10  ;;  %v601_v27 = vld [vmem:[%s814_s5 + $0x48] sm:$0xff]  ;;  %v600_v32 = vld [vmem:[%s814_s5 + $0x40] sm:$0xff]  ;;  %v626_v41 = vld [vmem:[%s814_s5 + $0x110] sm:$0xff] }
   0xd   :  { %176 = vmatpush.bf16.msra.mxu1 %v605_v11  ;;  %v30_v33 = vld [vmem:[%s816_s0] sm:$0xf]  ;;  %v629_v38 = vld [vmem:[%s814_s5 + $0x128] sm:$0xff] }
   0xe   :  { %98 = vmatpush.bf16.msra.mxu0 %v596_v12  ;;  %v188_v35 = vld [vmem:[%s817_s2] sm:$0xf]  ;;  %v625_v42 = vld [vmem:[%s814_s5 + $0x108] sm:$0xff] }
   0xf   :  { %256 = vmatpush.bf16.msra.mxu2 %v612_v13  ;;  %v267_v36 = vld [vmem:[%s818_s3] sm:$0xf] }
  0x10   :  { %335 = vmatpush.bf16.msra.mxu3 %v620_v14  ;;  %v109_v37 = vld [vmem:[%s819_s1] sm:$0xf] }
  0x11   :  { %177 = vmatpush.bf16.msra.mxu1 %v604_v15  ;;  %v628_v39 = vld [vmem:[%s814_s5 + $0x120] sm:$0xff] }
  0x12   :  { %99 = vmatpush.bf16.msra.mxu0 %v595_v16  ;;  %v624_v43 = vld [vmem:[%s814_s5 + $0x100] sm:$0xff] }
  0x13   :  { %257 = vmatpush.bf16.msra.mxu2 %v611_v17  ;;  %v346_v44 = vld [vmem:[%s820_s4] sm:$0xf] }
  0x14   :  { %336 = vmatpush.bf16.msra.mxu3 %v619_v18  ;;  %v632_v51 = vld [vmem:[%s815_s6] ss:$0 sm:$0xff] }
  0x15   :  { %178 = vmatpush.bf16.msra.mxu1 %v603_v19 }
  0x16   :  { %100 = vmatpush.bf16.msra.mxu0 %v594_v20 }
  0x17   :  { %258 = vmatpush.bf16.msra.mxu2 %v610_v21 }
  0x18   :  { %337 = vmatpush.bf16.msra.mxu3 %v618_v22 }
  0x19   :  { %179 = vmatpush.bf16.msra.mxu1 %v602_v23 }
  0x1a   :  { %101 = vmatpush.bf16.msra.mxu0 %v593_v24 }
  0x1b   :  { %259 = vmatpush.bf16.msra.mxu2 %v609_v25 }
  0x1c   :  { %338 = vmatpush.bf16.msra.mxu3 %v617_v26 }
  0x1d   :  { %180 = vmatpush.bf16.msra.mxu1 %v601_v27 }
  0x1e   :  { %102 = vmatpush.bf16.msra.mxu0 %v592_v28 }
  0x1f   :  { %260 = vmatpush.bf16.msra.mxu2 %v608_v30 }
  0x20   :  { %339 = vmatpush.bf16.msra.mxu3 %v616_v31 }
  0x21   :  { %181 = vmatpush.bf16.msra.mxu1 %v600_v32  ;;  %103 = vmatmul.bf16.vlgmr.msra.gmra.mxu0 %v30_v33 }
  0x22   :  { %411 = vmatpush.bf16.msrb.mxu0 %v631_v29  ;;  %261 = vmatmul.bf16.vlgmr.msra.gmra.mxu2 %v188_v35 }
  0x23   :  { %340 = vmatmul.bf16.vlgmr.msra.gmra.mxu3 %v267_v36 }
  0x24   :  { %182 = vmatmul.bf16.vlgmr.msra.gmra.mxu1 %v109_v37 }
  0x26   :  { %412 = vmatpush.bf16.msrb.mxu0 %v630_v34 }
  0x2a   :  { %413 = vmatpush.bf16.msrb.mxu0 %v629_v38 }
  0x2e   :  { %414 = vmatpush.bf16.msrb.mxu0 %v628_v39 }
  0x32   :  { %415 = vmatpush.bf16.msrb.mxu0 %v627_v40 }
  0x36   :  { %416 = vmatpush.bf16.msrb.mxu0 %v626_v41 }
  0x3a   :  { %417 = vmatpush.bf16.msrb.mxu0 %v625_v42 }
  0x3e   :  { %418 = vmatpush.bf16.msrb.mxu0 %v624_v43 }
  0x41   :  { %419 = vmatmul.bf16.vlgmr.msrb.gmra.mxu0 %v346_v44 }
  0x9e   :  { %v104_v45 = vpop.f32.mrf.mxu0 }
  0x9f   :  { %v108_v53 = vadd.f32 %v632_v51, %v104_v45 }
  0xa1   :  { %v183_v46 = vpop.f32.mrf.mxu1 }
  0xa2   :  { %v187_v55 = vadd.f32 %v183_v46, %v108_v53 }
  0xa5   :  { %v262_v47 = vpop.f32.mrf.mxu2 }
  0xa6   :  { %v106_v48 = vpop.f32.mrf.mxu0  ;;  %v341_v49 = vpop.f32.mrf.mxu3  ;;  %v266_v56 = vadd.f32 %v262_v47, %v187_v55 }
  0xa8   :  { %v345_v57 = vadd.f32 %v341_v49, %v266_v56 }
  0xa9   :  { %v185_v50 = vpop.f32.mrf.mxu1 }
  0xad   :  { %v264_v52 = vpop.f32.mrf.mxu2 }
  0xae   :  { %v343_v54 = vpop.f32.mrf.mxu3 }
  0xbe   :  { %v420_v58 = vpop.f32.mrf.mxu0 }
  0xbf   :  { %v424_v59 = vadd.f32 %v420_v58, %v345_v57 }
  0xc1   :  { %v425_v60 = vmax.f32 %v424_v59, 0.0 }
  0xc3   :  { %v426_v61 = vpack.c.bf16 %v425_v60, %v425_v60 }
  0xc5   :  { %427 = vst [vmem:[%s821_s7] sm:$0xf] %v426_v61 }
  0xc6   :  { %v422_v62 = vpop.f32.mrf.mxu0 }

// kernel: modified_deeplabv3_plus_forward.29
= control target key start
LH: loop header
LB: loop body
LE: loop exit
PB: predicated region body
PF: predicated region fallthrough
CT: control target
= control target key end

     0   :  { %s767_s12 = smov 0   ;;  %s769_s13 = smov 0   ;;  %s837_s0 = inlined_call_operand.vmem [shape: bf16[128,128], index: 0, kind: input, shape index: {}]   ;;  %s838_s1 = inlined_call_operand.vmem [shape: bf16[128,128], index: 1, kind: input, shape index: {}]   ;;  %s839_s2 = inlined_call_operand.vmem [shape: f32[1,128], index: 2, kind: input, shape index: {}]   ;;  %s840_s3 = inlined_call_operand.vmem [shape: bf16[128,128], index: 3, kind: output, shape index: {}]  }
   0x1   :  { %s771_s14 = smov 0  }
   0x2 LB: > { %s32_s15 = sadd.s32 1, %s741_s13  ;;  %p584_p0 = scmp.ge.s32.totalorder %s745_s14, 1  ;;  %s745_s14 = sphi %s771_s14, %s13_s14   ;;  %s741_s13 = sphi %s769_s13, %s842_s13   ;;  %s737_s12 = sphi %s767_s12, %s841_s12  }
   0x3   : > { %p34_p1 = scmp.ge.s32.totalorder %s32_s15, 2  ;;  %p188_p2 = scmp.lt.s32.totalorder %s745_s14, 3 }
   0x5   : > { %s844_s15 = smov (%p34_p1, %s32_s15), 0  ;;  %p189_p3 = pnand %p584_p0, %p188_p2 }
   0x6   : > { %s585_s24 = sshll.u32 (!%p189_p3), %s737_s12, 3 }
   0x7   : > { %192 = sbr.rel (%p189_p3) target bundleno = 193 (0xc1), region = 32  ;;  %p230_p4 = scmp.lt.s32.totalorder (!%p189_p3), %s585_s24, 15 }
   0xc   : > { %v650_v0 = vld [vmem:[%s838_s1 + $0x38] sm:$0xff]  ;;  %v649_v1 = vld [vmem:[%s838_s1 + $0x30] sm:$0xff]  ;;  %v648_v2 = vld [vmem:[%s838_s1 + $0x28] sm:$0xff]  ;;  %s846_s24 = smov (!%p230_p4, %s585_s24), 15 }
   0xd   : > { %375 = vmatpush.bf16.msra.mxu0 %v650_v0  ;;  %674 = vmatpush.bf16.msra.mxu1 %v650_v0  ;;  %v647_v3 = vld [vmem:[%s838_s1 + $0x20] sm:$0xff]  ;;  %v646_v4 = vld [vmem:[%s838_s1 + $0x18] sm:$0xff]  ;;  %v645_v5 = vld [vmem:[%s838_s1 + $0x10] sm:$0xff]  ;;  %s586_s4 = sshll.u32 %s846_s24, 2 }
   0xe   : > { %675 = vmatpush.bf16.msra.mxu2 %v650_v0  ;;  %676 = vmatpush.bf16.msra.mxu3 %v650_v0  ;;  %v644_v6 = vld [vmem:[%s838_s1 + $0x8] sm:$0xff]  ;;  %v643_v7 = vld [vmem:[%s838_s1] sm:$0xff]  ;;  %s236_s9 = scalar_lea.vmem %s837_s0, %s586_s4  ;;  %s257_s17 = scalar_lea.vmem %s840_s3, %s586_s4 }
   0xf   : > { %v639_v8 = vld [vmem:[%s236_s9] sm:$0xff]  ;;  %v640_v9 = vld [vmem:[%s236_s9 + $0x8] sm:$0xff]  ;;  %v641_v10 = vld [vmem:[%s236_s9 + $0x10] sm:$0xff] }
  0x10   : > { %v642_v11 = vld [vmem:[%s236_s9 + $0x18] sm:$0xff]  ;;  %v722_v14 = vld [vmem:[%s839_s2] ss:$0 sm:$0xff] }
  0x11   : > { %376 = vmatpush.bf16.msra.mxu0 %v649_v1  ;;  %677 = vmatpush.bf16.msra.mxu1 %v649_v1 }
  0x12   : > { %678 = vmatpush.bf16.msra.mxu2 %v649_v1  ;;  %679 = vmatpush.bf16.msra.mxu3 %v649_v1 }
  0x15   : > { %377 = vmatpush.bf16.msra.mxu0 %v648_v2  ;;  %680 = vmatpush.bf16.msra.mxu1 %v648_v2 }
  0x16   : > { %681 = vmatpush.bf16.msra.mxu2 %v648_v2  ;;  %682 = vmatpush.bf16.msra.mxu3 %v648_v2 }
  0x19   : > { %378 = vmatpush.bf16.msra.mxu0 %v647_v3  ;;  %683 = vmatpush.bf16.msra.mxu1 %v647_v3 }
  0x1a   : > { %684 = vmatpush.bf16.msra.mxu2 %v647_v3  ;;  %685 = vmatpush.bf16.msra.mxu3 %v647_v3 }
  0x1d   : > { %379 = vmatpush.bf16.msra.mxu0 %v646_v4  ;;  %686 = vmatpush.bf16.msra.mxu1 %v646_v4 }
  0x1e   : > { %687 = vmatpush.bf16.msra.mxu2 %v646_v4  ;;  %688 = vmatpush.bf16.msra.mxu3 %v646_v4 }
  0x21   : > { %380 = vmatpush.bf16.msra.mxu0 %v645_v5  ;;  %689 = vmatpush.bf16.msra.mxu1 %v645_v5 }
  0x22   : > { %690 = vmatpush.bf16.msra.mxu2 %v645_v5  ;;  %691 = vmatpush.bf16.msra.mxu3 %v645_v5 }
  0x25   : > { %381 = vmatpush.bf16.msra.mxu0 %v644_v6  ;;  %692 = vmatpush.bf16.msra.mxu1 %v644_v6 }
  0x26   : > { %693 = vmatpush.bf16.msra.mxu2 %v644_v6  ;;  %694 = vmatpush.bf16.msra.mxu3 %v644_v6 }
  0x29   : > { %382 = vmatpush.bf16.msra.mxu0 %v643_v7  ;;  %695 = vmatpush.bf16.msra.mxu1 %v643_v7 }
  0x2a   : > { %696 = vmatpush.bf16.msra.mxu2 %v643_v7  ;;  %697 = vmatpush.bf16.msra.mxu3 %v643_v7 }
  0x2c   : > { %383 = vmatmul.bf16.vlgmr.msra.gmra.mxu0 %v639_v8  ;;  %388 = vmatmul.bf16.vlgmr.msra.gmra.mxu1 %v640_v9 }
  0x2d   : > { %393 = vmatmul.bf16.vlgmr.msra.gmra.mxu2 %v641_v10  ;;  %398 = vmatmul.bf16.vlgmr.msra.gmra.mxu3 %v642_v11 }
  0xa9   : > { %v384_v12 = vpop.f32.mrf.mxu0  ;;  %v389_v13 = vpop.f32.mrf.mxu1 }
  0xaa   : > { %v435_v15 = vadd.f32 %v722_v14, %v384_v12  ;;  %v437_v16 = vadd.f32 %v722_v14, %v389_v13 }
  0xac   : > { %v443_v23 = vmax.f32 %v435_v15, 0.0  ;;  %v445_v24 = vmax.f32 %v437_v16, 0.0 }
  0xb0   : > { %v394_v17 = vpop.f32.mrf.mxu2  ;;  %v399_v18 = vpop.f32.mrf.mxu3 }
  0xb1   : > { %v386_v19 = vpop.f32.mrf.mxu0  ;;  %v391_v20 = vpop.f32.mrf.mxu1  ;;  %v439_v29 = vadd.f32 %v722_v14, %v394_v17  ;;  %v441_v30 = vadd.f32 %v722_v14, %v399_v18 }
  0xb2   : > { %v436_v21 = vadd.f32 %v722_v14, %v386_v19  ;;  %v438_v22 = vadd.f32 %v722_v14, %v391_v20 }
  0xb3   : > { %v447_v35 = vmax.f32 %v439_v29, 0.0  ;;  %v449_v36 = vmax.f32 %v441_v30, 0.0 }
  0xb4   : > { %v444_v25 = vmax.f32 %v436_v21, 0.0  ;;  %v446_v26 = vmax.f32 %v438_v22, 0.0 }
  0xb6   : > { %v654_v27 = vpack.c.bf16 %v444_v25, %v443_v23  ;;  %v659_v28 = vpack.c.bf16 %v446_v26, %v445_v24 }
  0xb8   : > { %655 = vst [vmem:[%s257_s17] sm:$0xff] %v654_v27   ;;  %v396_v31 = vpop.f32.mrf.mxu2  ;;  %v401_v32 = vpop.f32.mrf.mxu3 }
  0xb9   : > { %671 = vst [vmem:[%s257_s17 + $0x8] sm:$0xff] %v659_v28   ;;  %v440_v33 = vadd.f32 %v722_v14, %v396_v31  ;;  %v442_v34 = vadd.f32 %v722_v14, %v401_v32 }
  0xbb   : > { %v448_v37 = vmax.f32 %v440_v33, 0.0  ;;  %v450_v38 = vmax.f32 %v442_v34, 0.0 }
  0xbd   : > { %v664_v39 = vpack.c.bf16 %v448_v37, %v447_v35  ;;  %v669_v40 = vpack.c.bf16 %v450_v38, %v449_v36 }
  0xbf   : > { %672 = vst [vmem:[%s257_s17 + $0x10] sm:$0xff] %v664_v39  }
  0xc0   : > { %673 = vst [vmem:[%s257_s17 + $0x18] sm:$0xff] %v669_v40  }
  0xc1 PF: > { %s13_s14 = sadd.s32 1, %s745_s14   ;;  %s841_s12 = smov %s741_s13 }
  0xc2   : > { %p10_p5 = scmp.ge.s32.totalorder %s13_s14, 4   ;;  %s842_s13 = smov %s844_s15 }
  0xc4   :  { %12 = sbr.rel (!%p10_p5) target bundleno = 2 (0x2), region = 76 }

// kernel: modified_deeplabv3_plus_forward.30
= control target key start
LH: loop header
LB: loop body
LE: loop exit
PB: predicated region body
PF: predicated region fallthrough
CT: control target
= control target key end

     0   :  { %s1258_s12 = smov 0   ;;  %s1260_s13 = smov 0   ;;  %s1431_s0 = inlined_call_operand.vmem [shape: bf16[128,2304], index: 0, kind: input, shape index: {}]   ;;  %s1432_s1 = inlined_call_operand.vmem [shape: bf16[2304,128], index: 1, kind: input, shape index: {}]   ;;  %s1433_s2 = inlined_call_operand.vmem [shape: f32[1,128], index: 2, kind: input, shape index: {}]   ;;  %s1434_s3 = inlined_call_operand.vmem [shape: bf16[128,128], index: 3, kind: output, shape index: {}]  }
   0x1   :  { %s1262_s14 = smov 0   ;;  %s1264_s15 = smov 0  }
   0x2   :  { %s1266_s16 = smov 0   ;;  %s1268_s17 = smov 0  }
   0x3   :  { %s1270_s18 = smov 0  }
   0x4 LB: > { %s25_s19 = sadd.s32 1, %s1227_s16  ;;  %s32_s20 = sadd.s32 1, %s1231_s17  ;;  %s1235_s18 = sphi %s1270_s18, %s13_s18   ;;  %s1231_s17 = sphi %s1268_s17, %s1440_s17   ;;  %s1227_s16 = sphi %s1266_s16, %s1439_s16   ;;  %s1223_s15 = sphi %s1264_s15, %s1438_s15   ;;  %s1219_s14 = sphi %s1262_s14, %s1437_s14   ;;  %s1215_s13 = sphi %s1260_s13, %s1436_s13   ;;  %s1211_s12 = sphi %s1258_s12, %s1435_s12  }
   0x5   : > { %p26_p0 = scmp.ge.s32.totalorder %s25_s19, 6  ;;  %p48_p1 = scmp.ne.s32.totalorder %s1215_s13, %s1211_s12 }
   0x6   : > { %p49_p2 = scmp.eq.s32.totalorder %s1235_s18, 0  ;;  %s41_s24 = sadd.s32 1, %s1215_s13 }
   0x7   : > { %s1442_s19 = smov (%p26_p0, %s25_s19), 0  ;;  %s1444_s20 = smov (!%p26_p0, %s32_s20), %s1231_s17 }
   0x8   : > { %p50_p3 = por %p49_p2, %p48_p1  ;;  %p34_p4 = scmp.ge.s32.totalorder %s1444_s20, 2 }
   0x9   : > { %s37_s21 = ssub.s32 %s1227_s16, %s1442_s19  ;;  %p881_p6 = scmp.ge.s32.totalorder %s1235_s18, 12 }
   0xa   : > { %s1446_s20 = smov (%p34_p4, %s1444_s20), 0 }
   0xb   : > { %s36_s22 = ssub.s32 %s1231_s17, %s1446_s20  ;;  %162 = sbr.rel (%p881_p6) target bundleno = 41 (0x29), region = 20 }
   0xc   : > { %s38_s23 = sor.u32 %s37_s21, %s36_s22 }
   0xd   : > { %p39_p5 = scmp.eq.s32.totalorder %s38_s23, 0 }
   0xf   : > { %s1309_s25 = scalar_select %p39_p5, %s1215_s13, %s41_s24  }
  0x10   : > { %165 = sbr.rel (!%p50_p3) target bundleno = 41 (0x29), region = 24  ;;  %s167_s26 = sand.u32 (%p50_p3), 1, %s1215_s13  }
  0x11   : > { %s171_s27 = smul.u32 (%p50_p3), 3, %s1227_s16 }
  0x12   : > { %s1120_s28 = smul.u32 (%p50_p3), 96, %s167_s26 }
  0x13   : > { %s1121_s29 = smul.u32 (%p50_p3), 144, %s1231_s17 }
  0x14   : > { %s169_s8 = scalar_lea.vmem (%p50_p3), [#allocation3], %s1120_s28 }
  0x15   : > { %s173_s30 = sadd.s32 %s1121_s29, %s171_s27 }
  0x16   : > { %s884_s4 = sshll.u32 %s173_s30, 2 }
  0x17   : > { %s1318_s7 = scalar_lea.vmem %s1431_s0, %s884_s4 }
  0x18   : > { %v190_v0 = vld [vmem:[%s1318_s7] sm:$0xff]  ;;  %v192_v1 = vld [vmem:[%s1318_s7 + $0x48] sm:$0xff]  ;;  %v194_v2 = vld [vmem:[%s1318_s7 + $0x90] sm:$0xff] }
  0x19   : > { %191 = vst [vmem:[%s169_s8] sm:$0xff] %v190_v0  ;;  %v196_v3 = vld [vmem:[%s1318_s7 + $0xd8] sm:$0xff]  ;;  %v198_v4 = vld [vmem:[%s1318_s7 + $0x120] sm:$0xff]  ;;  %v200_v5 = vld [vmem:[%s1318_s7 + $0x168] sm:$0xff] }
  0x1a   : > { %193 = vst [vmem:[%s169_s8 + $0xc] sm:$0xff] %v192_v1  ;;  %v202_v6 = vld [vmem:[%s1318_s7 + $0x1b0] sm:$0xff]  ;;  %v204_v7 = vld [vmem:[%s1318_s7 + $0x1f8] sm:$0xff]  ;;  %v885_v8 = vld [vmem:[%s1318_s7 + $0x8] sm:$0xf] }
  0x1b   : > { %195 = vst [vmem:[%s169_s8 + $0x18] sm:$0xff] %v194_v2  ;;  %v887_v9 = vld [vmem:[%s1318_s7 + $0x50] sm:$0xf]  ;;  %v889_v10 = vld [vmem:[%s1318_s7 + $0x98] sm:$0xf] }
  0x1c   : > { %197 = vst [vmem:[%s169_s8 + $0x24] sm:$0xff] %v196_v3  ;;  %v891_v11 = vld [vmem:[%s1318_s7 + $0xe0] sm:$0xf]  ;;  %v893_v12 = vld [vmem:[%s1318_s7 + $0x128] sm:$0xf] }
  0x1d   : > { %199 = vst [vmem:[%s169_s8 + $0x30] sm:$0xff] %v198_v4  ;;  %v895_v13 = vld [vmem:[%s1318_s7 + $0x170] sm:$0xf]  ;;  %v897_v14 = vld [vmem:[%s1318_s7 + $0x1b8] sm:$0xf] }
  0x1e   : > { %201 = vst [vmem:[%s169_s8 + $0x3c] sm:$0xff] %v200_v5  ;;  %v899_v15 = vld [vmem:[%s1318_s7 + $0x200] sm:$0xf] }
  0x1f   : > { %203 = vst [vmem:[%s169_s8 + $0x48] sm:$0xff] %v202_v6 }
  0x20   : > { %205 = vst [vmem:[%s169_s8 + $0x54] sm:$0xff] %v204_v7 }
  0x21   : > { %886 = vst [vmem:[%s169_s8 + $0x8] sm:$0xf] %v885_v8 }
  0x22   : > { %888 = vst [vmem:[%s169_s8 + $0x14] sm:$0xf] %v887_v9 }
  0x23   : > { %890 = vst [vmem:[%s169_s8 + $0x20] sm:$0xf] %v889_v10 }
  0x24   : > { %892 = vst [vmem:[%s169_s8 + $0x2c] sm:$0xf] %v891_v11 }
  0x25   : > { %894 = vst [vmem:[%s169_s8 + $0x38] sm:$0xf] %v893_v12 }
  0x26   : > { %896 = vst [vmem:[%s169_s8 + $0x44] sm:$0xf] %v895_v13 }
  0x27   : > { %898 = vst [vmem:[%s169_s8 + $0x50] sm:$0xf] %v897_v14 }
  0x28   : > { %900 = vst [vmem:[%s169_s8 + $0x5c] sm:$0xf] %v899_v15 }
  0x29 PF: > { %p901_p7 = scmp.ge.s32.totalorder %s1235_s18, 1  ;;  %p246_p8 = scmp.lt.s32.totalorder %s1235_s18, 13 }
  0x2b   : > { %p247_p9 = pnand %p901_p7, %p246_p8 }
  0x2c   : > { %s253_s9 = sand.u32 (!%p247_p9), 1, %s1211_s12   ;;  %s292_s10 = smul.u32 (!%p247_p9), 48, %s1219_s14 }
  0x2d   : > { %250 = sbr.rel (%p247_p9) target bundleno = 308 (0x134), region = 54  ;;  %s903_s21 = sshll.u32 (!%p247_p9), %s1223_s15, 3 }
  0x2e   : > { %s1122_s11 = smul.u32 (!%p247_p9), 96, %s253_s9  ;;  %p293_p10 = scmp.lt.s32.totalorder (!%p247_p9), %s292_s10, 287 }
  0x2f   : > { %p305_p11 = scmp.lt.s32.totalorder (!%p247_p9), %s903_s21, 15  ;;  %p905_p12 = scmp.ne.s32.totalorder (!%p247_p9), %s1219_s14, 0 }
  0x30   : > { %s1351_s12 = scalar_lea.vmem (!%p247_p9), [#allocation3], %s1122_s11 }
  0x32   : > { %s1448_s10 = smov (!%p293_p10, %s292_s10), 287  ;;  %s1450_s21 = smov (!%p305_p11, %s903_s21), 15 }
  0x33   : > { %s902_s22 = sshll.u32 %s1448_s10, 2  ;;  %s904_s27 = sshll.u32 %s1450_s21, 2 }
  0x34   : > { %s1344_s26 = scalar_lea.vmem %s1432_s1, %s902_s22  ;;  %s1349_s30 = scalar_lea.vmem %s1434_s3, %s904_s27 }
  0x35   : > { %316 = sbr.rel (%p905_p12) target bundleno = 67 (0x43), region = 62 }
  0x3a   : > { %v1237_v16 = vmov 0.0  }
  0x3b   : > { %317 = vst [vmem:[#allocation2 + $0x30] sm:$0xff] %v1237_v16 }
  0x3c   : > { %318 = vst [vmem:[#allocation2] sm:$0xff] %v1237_v16 }
  0x3d   : > { %319 = vst [vmem:[#allocation2 + $0x18] sm:$0xff] %v1237_v16 }
  0x3e   : > { %320 = vst [vmem:[#allocation2 + $0x10] sm:$0xff] %v1237_v16 }
  0x3f   : > { %321 = vst [vmem:[#allocation2 + $0x8] sm:$0xff] %v1237_v16 }
  0x40   : > { %322 = vst [vmem:[#allocation2 + $0x20] sm:$0xff] %v1237_v16 }
  0x41   : > { %323 = vst [vmem:[#allocation2 + $0x28] sm:$0xff] %v1237_v16 }
  0x42   : > { %324 = vst [vmem:[#allocation2 + $0x38] sm:$0xff] %v1237_v16 }
  0x43 PF: > { %v1072_v17 = vld [vmem:[%s1344_s26 + $0x38] sm:$0xff]  ;;  %v1071_v20 = vld [vmem:[%s1344_s26 + $0x30] sm:$0xff]  ;;  %v1070_v23 = vld [vmem:[%s1344_s26 + $0x28] sm:$0xff]  ;;  %p1050_p13 = scmp.ne.s32.totalorder %s1219_s14, 5 }
  0x44   : > { %v1080_v18 = vld [vmem:[%s1344_s26 + $0x78] sm:$0xff]  ;;  %605 = vmatpush.bf16.msra.mxu0 %v1072_v17  ;;  %v1079_v21 = vld [vmem:[%s1344_s26 + $0x70] sm:$0xff]  ;;  %1112 = vmatpush.bf16.msra.mxu3 %v1072_v17  ;;  %v1078_v24 = vld [vmem:[%s1344_s26 + $0x68] sm:$0xff] }
  0x45   : > { %v1088_v19 = vld [vmem:[%s1344_s26 + $0xb8] sm:$0xff]  ;;  %634 = vmatpush.bf16.msra.mxu1 %v1080_v18  ;;  %v1087_v22 = vld [vmem:[%s1344_s26 + $0xb0] sm:$0xff]  ;;  %v1086_v25 = vld [vmem:[%s1344_s26 + $0xa8] sm:$0xff] }
  0x46   : > { %663 = vmatpush.bf16.msra.mxu2 %v1088_v19  ;;  %v1069_v26 = vld [vmem:[%s1344_s26 + $0x20] sm:$0xff]  ;;  %v1068_v29 = vld [vmem:[%s1344_s26 + $0x18] sm:$0xff]  ;;  %v1067_v32 = vld [vmem:[%s1344_s26 + $0x10] sm:$0xff] }
  0x47   : > { %v1077_v27 = vld [vmem:[%s1344_s26 + $0x60] sm:$0xff]  ;;  %v1076_v30 = vld [vmem:[%s1344_s26 + $0x58] sm:$0xff]  ;;  %v1075_v33 = vld [vmem:[%s1344_s26 + $0x50] sm:$0xff] }
  0x48   : > { %606 = vmatpush.bf16.msra.mxu0 %v1071_v20  ;;  %1113 = vmatpush.bf16.msra.mxu3 %v1071_v20  ;;  %v1085_v28 = vld [vmem:[%s1344_s26 + $0xa0] sm:$0xff]  ;;  %v1084_v31 = vld [vmem:[%s1344_s26 + $0x98] sm:$0xff]  ;;  %v1083_v34 = vld [vmem:[%s1344_s26 + $0x90] sm:$0xff] }
  0x49   : > { %635 = vmatpush.bf16.msra.mxu1 %v1079_v21  ;;  %v1066_v35 = vld [vmem:[%s1344_s26 + $0x8] sm:$0xff]  ;;  %v1065_v38 = vld [vmem:[%s1344_s26] sm:$0xff]  ;;  %v910_v44 = vld [vmem:[%s1351_s12 + $0xc] sm:$0xf0] }
  0x4a   : > { %664 = vmatpush.bf16.msra.mxu2 %v1087_v22  ;;  %v1074_v36 = vld [vmem:[%s1344_s26 + $0x48] sm:$0xff]  ;;  %v1073_v39 = vld [vmem:[%s1344_s26 + $0x40] sm:$0xff]  ;;  %v1055_v46 = vld [vmem:[%s1351_s12 + $0x10] sm:$0xf0] }
  0x4b   : > { %v1082_v37 = vld [vmem:[%s1344_s26 + $0x88] sm:$0xff]  ;;  %v1081_v40 = vld [vmem:[%s1344_s26 + $0x80] sm:$0xff]  ;;  %v920_v47 = vld [vmem:[%s1351_s12 + $0x18] sm:$0xf] }
  0x4c   : > { %607 = vmatpush.bf16.msra.mxu0 %v1070_v23  ;;  %1114 = vmatpush.bf16.msra.mxu3 %v1070_v23  ;;  %v908_v41 = vld [vmem:[%s1351_s12] sm:$0xf]  ;;  %v1054_v42 = vld [vmem:[%s1351_s12 + $0x8] sm:$0xf0]  ;;  %v1053_v43 = vld [vmem:[%s1351_s12 + $0x4] sm:$0xf] }
  0x4d   : > { %636 = vmatpush.bf16.msra.mxu1 %v1078_v24  ;;  %v916_v45 = vld [vmem:[%s1351_s12 + $0x8] sm:$0xf]  ;;  %v1057_v48 = vld [vmem:[%s1351_s12 + $0x20] sm:$0xf0]  ;;  %v909_v49 = vor.u32 %v1054_v42, %v908_v41  ;;  %v913_v50 = vor.u32 %v1053_v43, %v910_v44  ;;  %v1056_v53 = vld [vmem:[%s1351_s12 + $0x1c] sm:$0xf] }
  0x4e   : > { %665 = vmatpush.bf16.msra.mxu2 %v1086_v25  ;;  %v917_v51 = vor.u32 %v1055_v46, %v916_v45  ;;  %v921_v52 = vor.u32 %v1057_v48, %v920_v47  ;;  %v922_v54 = vld [vmem:[%s1351_s12 + $0x24] sm:$0xf0]  ;;  %v928_v55 = vld [vmem:[%s1351_s12 + $0x20] sm:$0xf]  ;;  %v1058_v56 = vld [vmem:[%s1351_s12 + $0x28] sm:$0xf0] }
  0x4f   : > { %v932_v57 = vld [vmem:[%s1351_s12 + $0x30] sm:$0xf]  ;;  %v1060_v58 = vld [vmem:[%s1351_s12 + $0x38] sm:$0xf0]  ;;  %v925_v59 = vor.u32 %v1056_v53, %v922_v54  ;;  %v929_v60 = vor.u32 %v1058_v56, %v928_v55  ;;  %v1059_v62 = vld [vmem:[%s1351_s12 + $0x34] sm:$0xf] }
  0x50   : > { %608 = vmatpush.bf16.msra.mxu0 %v1069_v26  ;;  %1115 = vmatpush.bf16.msra.mxu3 %v1069_v26  ;;  %v933_v61 = vor.u32 %v1060_v58, %v932_v57  ;;  %v934_v63 = vld [vmem:[%s1351_s12 + $0x3c] sm:$0xf0]  ;;  %v940_v0 = vld [vmem:[%s1351_s12 + $0x38] sm:$0xf]  ;;  %v1061_v1 = vld [vmem:[%s1351_s12 + $0x40] sm:$0xf0] }
  0x51   : > { %637 = vmatpush.bf16.msra.mxu1 %v1077_v27  ;;  %v944_v2 = vld [vmem:[%s1351_s12 + $0x48] sm:$0xf]  ;;  %v1063_v3 = vld [vmem:[%s1351_s12 + $0x50] sm:$0xf0]  ;;  %v937_v4 = vor.u32 %v1059_v62, %v934_v63  ;;  %v941_v5 = vor.u32 %v1061_v1, %v940_v0  ;;  %v1062_v7 = vld [vmem:[%s1351_s12 + $0x4c] sm:$0xf] }
  0x52   : > { %666 = vmatpush.bf16.msra.mxu2 %v1085_v28  ;;  %v945_v6 = vor.u32 %v1063_v3, %v944_v2  ;;  %v946_v8 = vld [vmem:[%s1351_s12 + $0x54] sm:$0xf0]  ;;  %v952_v9 = vld [vmem:[%s1351_s12 + $0x50] sm:$0xf]  ;;  %v1064_v10 = vld [vmem:[%s1351_s12 + $0x58] sm:$0xf0] }
  0x53   : > { %v949_v11 = vor.u32 %v1062_v7, %v946_v8  ;;  %v953_v12 = vor.u32 %v1064_v10, %v952_v9  ;;  %v325_v16 = vld [vmem:[#allocation2 + $0x30] sm:$0xff]  ;;  %v326_v24 = vld [vmem:[#allocation2] sm:$0xff]  ;;  %v329_v44 = vld [vmem:[#allocation2 + $0x8] sm:$0xff] }
  0x54   : > { %609 = vmatpush.bf16.msra.mxu0 %v1068_v29  ;;  %1116 = vmatpush.bf16.msra.mxu3 %v1068_v29  ;;  %v331_v58 = vld [vmem:[#allocation2 + $0x28] sm:$0xff]  ;;  %v332_v1 = vld [vmem:[#allocation2 + $0x38] sm:$0xff] }
  0x55   : > { %638 = vmatpush.bf16.msra.mxu1 %v1076_v30 }
  0x56   : > { %667 = vmatpush.bf16.msra.mxu2 %v1084_v31  ;;  %v327_v31 = vld [vmem:[#allocation2 + $0x18] sm:$0xff] }
  0x58   : > { %610 = vmatpush.bf16.msra.mxu0 %v1067_v32  ;;  %1117 = vmatpush.bf16.msra.mxu3 %v1067_v32 }
  0x59   : > { %639 = vmatpush.bf16.msra.mxu1 %v1075_v33 }
  0x5a   : > { %668 = vmatpush.bf16.msra.mxu2 %v1083_v34 }
  0x5c   : > { %611 = vmatpush.bf16.msra.mxu0 %v1066_v35  ;;  %1118 = vmatpush.bf16.msra.mxu3 %v1066_v35 }
  0x5d   : > { %640 = vmatpush.bf16.msra.mxu1 %v1074_v36 }
  0x5e   : > { %669 = vmatpush.bf16.msra.mxu2 %v1082_v37 }
  0x60   : > { %612 = vmatpush.bf16.msra.mxu0 %v1065_v38  ;;  %1119 = vmatpush.bf16.msra.mxu3 %v1065_v38  ;;  %v328_v38 = vld [vmem:[#allocation2 + $0x10] sm:$0xff] }
  0x61   : > { %641 = vmatpush.bf16.msra.mxu1 %v1073_v39 }
  0x62   : > { %670 = vmatpush.bf16.msra.mxu2 %v1081_v40 }
  0x63   : > { %613 = vmatmul.bf16.vlgmr.msra.gmra.mxu0 %v909_v49  ;;  %618 = vmatmul.bf16.vlgmr.msra.gmra.mxu3 %v921_v52 }
  0x64   : > { %642 = vmatmul.bf16.vlgmr.msra.gmra.mxu1 %v913_v50 }
  0x65   : > { %671 = vmatmul.bf16.vlgmr.msra.gmra.mxu2 %v917_v51  ;;  %v330_v51 = vld [vmem:[#allocation2 + $0x20] sm:$0xff] }
  0x73   : > { %623 = vmatmul.bf16.gmra.mxu3 %v933_v61 }
  0x74   : > { %647 = vmatmul.bf16.gmra.mxu1 %v925_v59 }
  0x75   : > { %676 = vmatmul.bf16.gmra.mxu2 %v929_v60 }
  0x83   : > { %628 = vmatmul.bf16.gmra.mxu3 %v945_v6 }
  0x84   : > { %652 = vmatmul.bf16.gmra.mxu1 %v937_v4 }
  0x85   : > { %681 = vmatmul.bf16.gmra.mxu2 %v941_v5 }
  0x94   : > { %657 = vmatmul.bf16.gmra.mxu1 %v949_v11 }
  0x95   : > { %686 = vmatmul.bf16.gmra.mxu2 %v953_v12 }
  0xe0   : > { %v614_v14 = vpop.f32.mrf.mxu0 }
  0xe1   : > { %v643_v13 = vpop.f32.mrf.mxu1 }
  0xe2   : > { %v644_v15 = vadd.f32 %v643_v13, %v614_v14 }
  0xe6   : > { %v619_v22 = vpop.f32.mrf.mxu3 }
  0xe8   : > { %v672_v17 = vpop.f32.mrf.mxu2  ;;  %v616_v21 = vpop.f32.mrf.mxu0 }
  0xe9   : > { %v673_v18 = vadd.f32 %v672_v17, %v644_v15  ;;  %v645_v19 = vpop.f32.mrf.mxu1 }
  0xea   : > { %v646_v23 = vadd.f32 %v645_v19, %v616_v21 }
  0xeb   : > { %v692_v20 = vadd.f32 %v673_v18, %v325_v16 }
  0xed   : > { %700 = vst [vmem:[#allocation2 + $0x30] sm:$0xff] %v692_v20 }
  0xee   : > { %v621_v30 = vpop.f32.mrf.mxu3 }
  0xf0   : > { %v674_v25 = vpop.f32.mrf.mxu2 }
  0xf1   : > { %v675_v26 = vadd.f32 %v674_v25, %v646_v23  ;;  %v648_v27 = vpop.f32.mrf.mxu1 }
  0xf2   : > { %v649_v29 = vadd.f32 %v648_v27, %v619_v22 }
  0xf3   : > { %v693_v28 = vadd.f32 %v675_v26, %v326_v24 }
  0xf5   : > { %701 = vst [vmem:[#allocation2] sm:$0xff] %v693_v28 }
  0xf6   : > { %v624_v37 = vpop.f32.mrf.mxu3 }
  0xf8   : > { %v677_v32 = vpop.f32.mrf.mxu2 }
  0xf9   : > { %v678_v33 = vadd.f32 %v677_v32, %v649_v29  ;;  %v650_v34 = vpop.f32.mrf.mxu1 }
  0xfa   : > { %v651_v36 = vadd.f32 %v650_v34, %v621_v30 }
  0xfb   : > { %v694_v35 = vadd.f32 %v678_v33, %v327_v31 }
  0xfd   : > { %702 = vst [vmem:[#allocation2 + $0x18] sm:$0xff] %v694_v35 }
  0xfe   : > { %v626_v48 = vpop.f32.mrf.mxu3 }
 0x100   : > { %v679_v39 = vpop.f32.mrf.mxu2 }
 0x101   : > { %v680_v40 = vadd.f32 %v679_v39, %v651_v36  ;;  %v653_v41 = vpop.f32.mrf.mxu1 }
 0x102   : > { %v654_v43 = vadd.f32 %v653_v41, %v624_v37 }
 0x103   : > { %v695_v42 = vadd.f32 %v680_v40, %v328_v38 }
 0x105   : > { %703 = vst [vmem:[#allocation2 + $0x10] sm:$0xff] %v695_v42 }
 0x106   : > { %v629_v56 = vpop.f32.mrf.mxu3 }
 0x108   : > { %v682_v45 = vpop.f32.mrf.mxu2 }
 0x109   : > { %v683_v46 = vadd.f32 %v682_v45, %v654_v43  ;;  %v655_v47 = vpop.f32.mrf.mxu1 }
 0x10a   : > { %v656_v50 = vadd.f32 %v655_v47, %v626_v48 }
 0x10b   : > { %v696_v49 = vadd.f32 %v683_v46, %v329_v44 }
 0x10d   : > { %704 = vst [vmem:[#allocation2 + $0x8] sm:$0xff] %v696_v49 }
 0x10e   : > { %v631_v63 = vpop.f32.mrf.mxu3 }
 0x110   : > { %v684_v52 = vpop.f32.mrf.mxu2 }
 0x111   : > { %v685_v53 = vadd.f32 %v684_v52, %v656_v50  ;;  %v658_v54 = vpop.f32.mrf.mxu1 }
 0x112   : > { %v659_v57 = vadd.f32 %v658_v54, %v629_v56 }
 0x113   : > { %v697_v55 = vadd.f32 %v685_v53, %v330_v51 }
 0x115   : > { %705 = vst [vmem:[#allocation2 + $0x20] sm:$0xff] %v697_v55 }
 0x118   : > { %v687_v59 = vpop.f32.mrf.mxu2 }
 0x119   : > { %v688_v60 = vadd.f32 %v687_v59, %v659_v57  ;;  %v660_v62 = vpop.f32.mrf.mxu1 }
 0x11a   : > { %v661_v0 = vadd.f32 %v660_v62, %v631_v63 }
 0x11b   : > { %v698_v61 = vadd.f32 %v688_v60, %v331_v58 }
 0x11d   : > { %706 = vst [vmem:[#allocation2 + $0x28] sm:$0xff] %v698_v61 }
 0x120   : > { %v689_v2 = vpop.f32.mrf.mxu2 }
 0x121   : > { %v690_v3 = vadd.f32 %v689_v2, %v661_v0  ;;  %711 = sbr.rel (%p1050_p13) target bundleno = 308 (0x134), region = 66 }
 0x123   : > { %v699_v4 = vadd.f32 %v690_v3, %v332_v1 }
 0x125   : > { %707 = vst [vmem:[#allocation2 + $0x38] sm:$0xff] %v699_v4 }
 0x126   : > { %v712_v5 = vld [vmem:[#allocation2 + $0x30] sm:$0xff]  ;;  %v713_v6 = vld [vmem:[#allocation2] sm:$0xff]  ;;  %v714_v8 = vld [vmem:[#allocation2 + $0x18] sm:$0xff] }
 0x127   : > { %v1180_v7 = vld [vmem:[%s1433_s2] ss:$0 sm:$0xff]  ;;  %v715_v9 = vld [vmem:[#allocation2 + $0x10] sm:$0xff]  ;;  %v716_v10 = vld [vmem:[#allocation2 + $0x8] sm:$0xff] }
 0x128   : > { %v717_v11 = vld [vmem:[#allocation2 + $0x20] sm:$0xff]  ;;  %v718_v12 = vld [vmem:[#allocation2 + $0x28] sm:$0xff]  ;;  %v724_v13 = vadd.f32 %v1180_v7, %v712_v5  ;;  %v725_v14 = vadd.f32 %v1180_v7, %v713_v6  ;;  %v726_v15 = vadd.f32 %v1180_v7, %v714_v8  ;;  %v727_v16 = vadd.f32 %v1180_v7, %v715_v9 }
 0x129   : > { %v728_v18 = vadd.f32 %v1180_v7, %v716_v10  ;;  %v729_v19 = vadd.f32 %v1180_v7, %v717_v11  ;;  %v730_v20 = vadd.f32 %v1180_v7, %v718_v12 }
 0x12a   : > { %v732_v22 = vmax.f32 %v724_v13, 0.0  ;;  %v733_v23 = vmax.f32 %v725_v14, 0.0  ;;  %v734_v24 = vmax.f32 %v726_v15, 0.0  ;;  %v735_v25 = vmax.f32 %v727_v16, 0.0 }
 0x12b   : > { %v736_v26 = vmax.f32 %v728_v18, 0.0  ;;  %v737_v27 = vmax.f32 %v729_v19, 0.0  ;;  %v738_v28 = vmax.f32 %v730_v20, 0.0 }
 0x12c   : > { %v719_v17 = vld [vmem:[#allocation2 + $0x38] sm:$0xff]  ;;  %v1092_v30 = vpack.c.bf16 %v733_v23, %v732_v22  ;;  %v1097_v31 = vpack.c.bf16 %v735_v25, %v734_v24 }
 0x12d   : > { %v731_v21 = vadd.f32 %v1180_v7, %v719_v17  ;;  %v1102_v32 = vpack.c.bf16 %v737_v27, %v736_v26 }
 0x12e   : > { %1093 = vst [vmem:[%s1349_s30] sm:$0xff] %v1092_v30  }
 0x12f   : > { %v739_v29 = vmax.f32 %v731_v21, 0.0  ;;  %1109 = vst [vmem:[%s1349_s30 + $0x8] sm:$0xff] %v1097_v31  }
 0x130   : > { %1110 = vst [vmem:[%s1349_s30 + $0x10] sm:$0xff] %v1102_v32  }
 0x131   : > { %v1107_v33 = vpack.c.bf16 %v739_v29, %v738_v28 }
 0x133   : > { %1111 = vst [vmem:[%s1349_s30 + $0x18] sm:$0xff] %v1107_v33  }
 0x134 PF: > { %s13_s18 = sadd.s32 1, %s1235_s18   ;;  %s1435_s12 = smov %s1215_s13 }
 0x135   : > { %p10_p0 = scmp.ge.s32.totalorder %s13_s18, 14   ;;  %s1436_s13 = smov %s1309_s25 }
 0x136   : > { %s1437_s14 = smov %s1227_s16  ;;  %s1438_s15 = smov %s1231_s17 }
 0x137   : > { %s1439_s16 = smov %s1442_s19  ;;  %s1440_s17 = smov %s1446_s20 }
 0x138   :  { %12 = sbr.rel (!%p10_p0) target bundleno = 4 (0x4), region = 113 }

// kernel: modified_deeplabv3_plus_forward.32
= control target key start
LH: loop header
LB: loop body
LE: loop exit
PB: predicated region body
PF: predicated region fallthrough
CT: control target
= control target key end

     0   :  { %s728_s12 = smov 0   ;;  %s730_s13 = smov 0   ;;  %s791_s0 = inlined_call_operand.vmem [shape: bf16[128,128], index: 0, kind: input, shape index: {}]   ;;  %s792_s1 = inlined_call_operand.vmem [shape: bf16[128,128], index: 1, kind: input, shape index: {}]   ;;  %s793_s2 = inlined_call_operand.vmem [shape: f32[1,128], index: 2, kind: input, shape index: {}]   ;;  %s794_s3 = inlined_call_operand.vmem [shape: f32[128,128], index: 3, kind: output, shape index: {}]  }
   0x1   :  { %s732_s14 = smov 0  }
   0x2 LB: > { %s32_s15 = sadd.s32 1, %s702_s13  ;;  %p568_p0 = scmp.ge.s32.totalorder %s706_s14, 1  ;;  %s706_s14 = sphi %s732_s14, %s13_s14   ;;  %s702_s13 = sphi %s730_s13, %s796_s13   ;;  %s698_s12 = sphi %s728_s12, %s795_s12  }
   0x3   : > { %p34_p1 = scmp.ge.s32.totalorder %s32_s15, 2  ;;  %p188_p2 = scmp.lt.s32.totalorder %s706_s14, 3 }
   0x5   : > { %s798_s15 = smov (%p34_p1, %s32_s15), 0  ;;  %p189_p3 = pnand %p568_p0, %p188_p2 }
   0x6   : > { %s569_s24 = sshll.u32 (!%p189_p3), %s698_s12, 3 }
   0x7   : > { %192 = sbr.rel (%p189_p3) target bundleno = 189 (0xbd), region = 32  ;;  %p230_p4 = scmp.lt.s32.totalorder (!%p189_p3), %s569_s24, 15 }
   0xc   : > { %v634_v0 = vld [vmem:[%s792_s1 + $0x38] sm:$0xff]  ;;  %v633_v1 = vld [vmem:[%s792_s1 + $0x30] sm:$0xff]  ;;  %v632_v2 = vld [vmem:[%s792_s1 + $0x28] sm:$0xff]  ;;  %s800_s24 = smov (!%p230_p4, %s569_s24), 15 }
   0xd   : > { %375 = vmatpush.bf16.msra.mxu0 %v634_v0  ;;  %635 = vmatpush.bf16.msra.mxu1 %v634_v0  ;;  %v631_v3 = vld [vmem:[%s792_s1 + $0x20] sm:$0xff]  ;;  %v630_v4 = vld [vmem:[%s792_s1 + $0x18] sm:$0xff]  ;;  %v629_v5 = vld [vmem:[%s792_s1 + $0x10] sm:$0xff]  ;;  %s570_s4 = sshll.u32 %s800_s24, 2  ;;  %s572_s10 = sshll.u32 %s800_s24, 3 }
   0xe   : > { %636 = vmatpush.bf16.msra.mxu2 %v634_v0  ;;  %637 = vmatpush.bf16.msra.mxu3 %v634_v0  ;;  %v628_v6 = vld [vmem:[%s792_s1 + $0x8] sm:$0xff]  ;;  %v627_v7 = vld [vmem:[%s792_s1] sm:$0xff]  ;;  %s236_s9 = scalar_lea.vmem %s791_s0, %s570_s4  ;;  %s257_s18 = scalar_lea.vmem %s794_s3, %s572_s10 }
   0xf   : > { %v623_v8 = vld [vmem:[%s236_s9] sm:$0xff]  ;;  %v624_v9 = vld [vmem:[%s236_s9 + $0x8] sm:$0xff]  ;;  %v625_v10 = vld [vmem:[%s236_s9 + $0x10] sm:$0xff] }
  0x10   : > { %v626_v11 = vld [vmem:[%s236_s9 + $0x18] sm:$0xff]  ;;  %v683_v12 = vld [vmem:[%s793_s2] ss:$0 sm:$0xff] }
  0x11   : > { %376 = vmatpush.bf16.msra.mxu0 %v633_v1  ;;  %638 = vmatpush.bf16.msra.mxu1 %v633_v1 }
  0x12   : > { %639 = vmatpush.bf16.msra.mxu2 %v633_v1  ;;  %640 = vmatpush.bf16.msra.mxu3 %v633_v1 }
  0x15   : > { %377 = vmatpush.bf16.msra.mxu0 %v632_v2  ;;  %641 = vmatpush.bf16.msra.mxu1 %v632_v2 }
  0x16   : > { %642 = vmatpush.bf16.msra.mxu2 %v632_v2  ;;  %643 = vmatpush.bf16.msra.mxu3 %v632_v2 }
  0x19   : > { %378 = vmatpush.bf16.msra.mxu0 %v631_v3  ;;  %644 = vmatpush.bf16.msra.mxu1 %v631_v3 }
  0x1a   : > { %645 = vmatpush.bf16.msra.mxu2 %v631_v3  ;;  %646 = vmatpush.bf16.msra.mxu3 %v631_v3 }
  0x1d   : > { %379 = vmatpush.bf16.msra.mxu0 %v630_v4  ;;  %647 = vmatpush.bf16.msra.mxu1 %v630_v4 }
  0x1e   : > { %648 = vmatpush.bf16.msra.mxu2 %v630_v4  ;;  %649 = vmatpush.bf16.msra.mxu3 %v630_v4 }
  0x21   : > { %380 = vmatpush.bf16.msra.mxu0 %v629_v5  ;;  %650 = vmatpush.bf16.msra.mxu1 %v629_v5 }
  0x22   : > { %651 = vmatpush.bf16.msra.mxu2 %v629_v5  ;;  %652 = vmatpush.bf16.msra.mxu3 %v629_v5 }
  0x25   : > { %381 = vmatpush.bf16.msra.mxu0 %v628_v6  ;;  %653 = vmatpush.bf16.msra.mxu1 %v628_v6 }
  0x26   : > { %654 = vmatpush.bf16.msra.mxu2 %v628_v6  ;;  %655 = vmatpush.bf16.msra.mxu3 %v628_v6 }
  0x29   : > { %382 = vmatpush.bf16.msra.mxu0 %v627_v7  ;;  %656 = vmatpush.bf16.msra.mxu1 %v627_v7 }
  0x2a   : > { %657 = vmatpush.bf16.msra.mxu2 %v627_v7  ;;  %658 = vmatpush.bf16.msra.mxu3 %v627_v7 }
  0x2c   : > { %383 = vmatmul.bf16.vlgmr.msra.gmra.mxu0 %v623_v8  ;;  %388 = vmatmul.bf16.vlgmr.msra.gmra.mxu1 %v624_v9 }
  0x2d   : > { %393 = vmatmul.bf16.vlgmr.msra.gmra.mxu2 %v625_v10  ;;  %398 = vmatmul.bf16.vlgmr.msra.gmra.mxu3 %v626_v11 }
  0xa9   : > { %v384_v13 = vpop.f32.mrf.mxu0  ;;  %v389_v14 = vpop.f32.mrf.mxu1 }
  0xaa   : > { %v435_v15 = vadd.f32 %v683_v12, %v384_v13  ;;  %v437_v16 = vadd.f32 %v683_v12, %v389_v14 }
  0xac   : > { %443 = vst [vmem:[%s257_s18] sm:$0xff] %v435_v15 }
  0xad   : > { %445 = vst [vmem:[%s257_s18 + $0x10] sm:$0xff] %v437_v16 }
  0xb0   : > { %v394_v17 = vpop.f32.mrf.mxu2  ;;  %v399_v18 = vpop.f32.mrf.mxu3 }
  0xb1   : > { %v439_v19 = vadd.f32 %v683_v12, %v394_v17  ;;  %v441_v20 = vadd.f32 %v683_v12, %v399_v18  ;;  %v386_v21 = vpop.f32.mrf.mxu0  ;;  %v391_v22 = vpop.f32.mrf.mxu1 }
  0xb2   : > { %v436_v23 = vadd.f32 %v683_v12, %v386_v21  ;;  %v438_v24 = vadd.f32 %v683_v12, %v391_v22 }
  0xb3   : > { %447 = vst [vmem:[%s257_s18 + $0x20] sm:$0xff] %v439_v19 }
  0xb4   : > { %449 = vst [vmem:[%s257_s18 + $0x30] sm:$0xff] %v441_v20 }
  0xb5   : > { %444 = vst [vmem:[%s257_s18 + $0x8] sm:$0xff] %v436_v23 }
  0xb6   : > { %446 = vst [vmem:[%s257_s18 + $0x18] sm:$0xff] %v438_v24 }
  0xb8   : > { %v396_v25 = vpop.f32.mrf.mxu2  ;;  %v401_v26 = vpop.f32.mrf.mxu3 }
  0xb9   : > { %v440_v27 = vadd.f32 %v683_v12, %v396_v25  ;;  %v442_v28 = vadd.f32 %v683_v12, %v401_v26 }
  0xbb   : > { %448 = vst [vmem:[%s257_s18 + $0x28] sm:$0xff] %v440_v27 }
  0xbc   : > { %450 = vst [vmem:[%s257_s18 + $0x38] sm:$0xff] %v442_v28 }
  0xbd PF: > { %s13_s14 = sadd.s32 1, %s706_s14   ;;  %s795_s12 = smov %s702_s13 }
  0xbe   : > { %p10_p5 = scmp.ge.s32.totalorder %s13_s14, 4   ;;  %s796_s13 = smov %s798_s15 }
  0xc0   :  { %12 = sbr.rel (!%p10_p5) target bundleno = 2 (0x2), region = 76 }

// kernel: modified_deeplabv3_plus_forward.23
= control target key start
LH: loop header
LB: loop body
LE: loop exit
PB: predicated region body
PF: predicated region fallthrough
CT: control target
= control target key end

     0   :  { %s208_s1 = inlined_call_operand.vmem [shape: bf16[128,128], index: 1, kind: input, shape index: {}]   ;;  %s209_s2 = inlined_call_operand.vmem [shape: f32[1,128], index: 2, kind: input, shape index: {}]   ;;  %s210_s0 = inlined_call_operand.vmem [shape: bf16[8,128], index: 0, kind: input, shape index: {}]   ;;  %s211_s3 = inlined_call_operand.vmem [shape: f32[8,128], index: 3, kind: output, shape index: {}]  }
   0x1   :  { %v153_v0 = vld [vmem:[%s208_s1 + $0x38] sm:$0xff]  ;;  %v152_v1 = vld [vmem:[%s208_s1 + $0x30] sm:$0xff]  ;;  %v151_v2 = vld [vmem:[%s208_s1 + $0x28] sm:$0xff] }
   0x2   :  { %85 = vmatpush.bf16.msra.mxu0 %v153_v0  ;;  %v150_v3 = vld [vmem:[%s208_s1 + $0x20] sm:$0xff]  ;;  %v149_v4 = vld [vmem:[%s208_s1 + $0x18] sm:$0xff]  ;;  %v148_v5 = vld [vmem:[%s208_s1 + $0x10] sm:$0xff] }
   0x3   :  { %v147_v6 = vld [vmem:[%s208_s1 + $0x8] sm:$0xff]  ;;  %v146_v7 = vld [vmem:[%s208_s1] sm:$0xff] }
   0x4   :  { %v20_v8 = vld [vmem:[%s210_s0] sm:$0xf] }
   0x5   :  { %v154_v9 = vld [vmem:[%s209_s2] ss:$0 sm:$0xff] }
   0x6   :  { %86 = vmatpush.bf16.msra.mxu0 %v152_v1 }
   0xa   :  { %87 = vmatpush.bf16.msra.mxu0 %v151_v2 }
   0xe   :  { %88 = vmatpush.bf16.msra.mxu0 %v150_v3 }
  0x12   :  { %89 = vmatpush.bf16.msra.mxu0 %v149_v4 }
  0x16   :  { %90 = vmatpush.bf16.msra.mxu0 %v148_v5 }
  0x1a   :  { %91 = vmatpush.bf16.msra.mxu0 %v147_v6 }
  0x1e   :  { %92 = vmatpush.bf16.msra.mxu0 %v146_v7 }
  0x21   :  { %93 = vmatmul.bf16.vlgmr.msra.gmra.mxu0 %v20_v8 }
  0x9e   :  { %v94_v10 = vpop.f32.mrf.mxu0 }
  0x9f   :  { %v108_v11 = vadd.f32 %v154_v9, %v94_v10 }
  0xa1   :  { %109 = vst [vmem:[%s211_s3] sm:$0xff] %v108_v11 }
  0xa6   :  { %v96_v12 = vpop.f32.mrf.mxu0 }

</bundles_post_ra>
